<compile_context>
chip_gen: v7x
topology: tpu7x:2x2x1
jax: 0.10.0
libtpu: 0.0.40
codegen_flags: <defaults>
</compile_context>

<pallas_src>
import functools
import math

import jax
import jax.numpy as jnp
from jax import lax
from jax.experimental import pallas as pl
from jax.experimental.pallas import tpu as pltpu

# ----- hyperparameters (small, consistent with the module's __init__) -----
D_MODEL = 32
HEADS = 4
D_K = D_MODEL // HEADS
D_FF = 64
NX = 2
MAX_LEN = 16
SRC_VOCAB = 13
TGT_VOCAB = 11
LANES = 128
V_PAD = LANES                   # lane-dense padded vocab for the final projection
SRC_PAD = 0
TGT_PAD = 0
LN_EPS = 1e-5                   # torch.nn.LayerNorm default
SCALE = 1.0 / math.sqrt(D_K)
NEG_INF = -1e9


# --------------------- static slab layout (offsets) -----------------------

def _rup(n, m=8):
    return (n + m - 1) // m * m


class _SpecBuilder:
    """Assigns (row_offset, rows, cols) slots, 8-row aligned, in a [*, 128] slab."""

    def __init__(self):
        self.row = 0

    def leaf(self, rows, cols):
        assert cols <= LANES
        off = self.row
        self.row += _rup(rows)
        return (off, rows, cols)


def _attn_spec(sb):
    return {"w_qkv": sb.leaf(D_MODEL, 3 * D_MODEL),   # [Wq*scale | Wk | Wv]
            "b_qkv": sb.leaf(1, 3 * D_MODEL),
            "wo": sb.leaf(D_MODEL, D_MODEL),
            "bo": sb.leaf(1, D_MODEL)}


def _enc_spec(sb):
    return {"attn": _attn_spec(sb),
            "ln1_g": sb.leaf(1, D_MODEL), "ln1_b": sb.leaf(1, D_MODEL),
            "w1": sb.leaf(D_MODEL, D_FF), "b1": sb.leaf(1, D_FF),
            "w2": sb.leaf(D_FF, D_MODEL), "b2": sb.leaf(1, D_MODEL),
            "ln2_g": sb.leaf(1, D_MODEL), "ln2_b": sb.leaf(1, D_MODEL)}


def _dec_spec(sb):
    return {"self_attn": _attn_spec(sb),
            "ln_g": sb.leaf(1, D_MODEL), "ln_b": sb.leaf(1, D_MODEL),
            "enc": _enc_spec(sb)}


_sb = _SpecBuilder()
PARAM_SPEC = {
    "enc_layers": [_enc_spec(_sb) for _ in range(NX)],
    "dec_layers": [_dec_spec(_sb) for _ in range(NX)],
    "w_fc": _sb.leaf(D_MODEL, V_PAD),
    "b_fc": _sb.leaf(1, V_PAD),
}
PARAM_ROWS = _rup(_sb.row)


# ----------------------- in-kernel helper functions -----------------------

def _ld(ref, spec):
    """Load one packed leaf [rows, cols] from a slab ref (static, 8-aligned slice)."""
    off, r, c = spec
    return ref[off:off + r, :c]


def _layer_norm(x, g, b):
    mu = jnp.mean(x, axis=-1, keepdims=True)
    var = jnp.mean((x - mu) ** 2, axis=-1, keepdims=True)   # biased, like torch
    return (x - mu) * lax.rsqrt(var + LN_EPS) * g + b


def _stack_heads(x):
    """[N, H*Dk] (h-major lanes) -> [H*N, Dk] (h-major rows)."""
    return jnp.concatenate([x[:, h * D_K:(h + 1) * D_K] for h in range(HEADS)], axis=0)


def _unstack_heads(x):
    """[H*N, Dk] (h-major rows) -> [N, H*Dk] (h-major lanes)."""
    n = x.shape[0] // HEADS
    return jnp.concatenate([x[h * n:(h + 1) * n, :] for h in range(HEADS)], axis=1)


def _mha(slab_ref, sp, xq, xkv, bias_full, fused):
    """Multi-head attention, batch+head flattened.

    xq:  [Nq, D]   (Nq = B*Lq)          xkv: [Nk, D]
    bias_full: [H*Nq, H*Nk] additive mask (0 keep / -1e9 drop), block-diagonal
               over heads and batches — built once in the wrapper.
    """
    w = _ld(slab_ref, sp["w_qkv"])                        # [D, 3D] (q part pre-scaled)
    b = _ld(slab_ref, sp["b_qkv"])                        # [1, 3D]
    if fused:                                             # self-attention: one matmul
        qkv = jnp.dot(xq, w, preferred_element_type=jnp.float32) + b
        q = qkv[:, :D_MODEL]
        k = qkv[:, D_MODEL:2 * D_MODEL]
        v = qkv[:, 2 * D_MODEL:3 * D_MODEL]
    else:                                                 # cross-attention
        q = jnp.dot(xq, w[:, :D_MODEL],
                    preferred_element_type=jnp.float32) + b[:, :D_MODEL]
        kv = jnp.dot(xkv, w[:, D_MODEL:],
                     preferred_element_type=jnp.float32) + b[:, D_MODEL:]
        k = kv[:, :D_MODEL]
        v = kv[:, D_MODEL:]

    qs = _stack_heads(q)                                  # [H*Nq, Dk]
    ks = _stack_heads(k)                                  # [H*Nk, Dk]
    vs = _stack_heads(v)                                  # [H*Nk, Dk]

    # scores: contract d_k against d_k (no materialized K^T); 1 matmul for all
    # batches and heads; cross-head / cross-batch entries are killed by the bias.
    s = lax.dot_general(qs, ks, (((1,), (1,)), ((), ())),
                        preferred_element_type=jnp.float32)        # [H*Nq, H*Nk]
    s = s + bias_full
    # single batched softmax over all heads/batches (masked entries underflow to 0)
    s = s - jnp.max(s, axis=-1, keepdims=True)
    e = jnp.exp(s)
    inv = 1.0 / jnp.sum(e, axis=-1, keepdims=True)        # exact (review concern)
    p = e * inv
    o = _unstack_heads(jnp.dot(p, vs, preferred_element_type=jnp.float32))   # [Nq, D]
    return (jnp.dot(o, _ld(slab_ref, sp["wo"]), preferred_element_type=jnp.float32)
            + _ld(slab_ref, sp["bo"]))


def _encoder_block(slab_ref, sp, xq, xkv, bias_full, fused):
    mha_out = _mha(slab_ref, sp["attn"], xq, xkv, bias_full, fused)
    x = _layer_norm(xq + mha_out, _ld(slab_ref, sp["ln1_g"]), _ld(slab_ref, sp["ln1_b"]))
    # fused FFN: Linear -> ReLU -> Linear (dropout = identity in eval)
    h = jnp.dot(x, _ld(slab_ref, sp["w1"]),
                preferred_element_type=jnp.float32) + _ld(slab_ref, sp["b1"])
    h = jnp.maximum(h, 0.0)
    y = jnp.dot(h, _ld(slab_ref, sp["w2"]),
                preferred_element_type=jnp.float32) + _ld(slab_ref, sp["b2"])
    return _layer_norm(x + y, _ld(slab_ref, sp["ln2_g"]), _ld(slab_ref, sp["ln2_b"]))


# ----------------------------- the fused kernel ----------------------------

def _transformer_kernel(dspec, dyn_ref, slab_ref, out_ref):
    enc_bias = _ld(dyn_ref, dspec["enc_bias"])       # [H*B*Ls, H*B*Ls]
    cross_bias = _ld(dyn_ref, dspec["cross_bias"])   # [H*B*Lt, H*B*Ls]
    tgt_bias = _ld(dyn_ref, dspec["tgt_bias"])       # [H*B*Lt, H*B*Lt]

    # ------------------------------ encoder ------------------------------
    x = _ld(dyn_ref, dspec["src"])                   # [B*Ls, D]
    for i in range(NX):
        x = _encoder_block(slab_ref, PARAM_SPEC["enc_layers"][i], x, x,
                           enc_bias, fused=True)
    enc_out = x

    # ------------------------------ decoder ------------------------------
    y = _ld(dyn_ref, dspec["tgt"])                   # [B*Lt, D]
    for i in range(NX):
        sp = PARAM_SPEC["dec_layers"][i]
        mmha = _mha(slab_ref, sp["self_attn"], y, y, tgt_bias, fused=True)
        y = _layer_norm(y + mmha, _ld(slab_ref, sp["ln_g"]), _ld(slab_ref, sp["ln_b"]))
        y = _encoder_block(slab_ref, sp["enc"], y, enc_out, cross_bias, fused=False)

    # lane-dense (128-wide) final vocab projection
    out_ref[...] = (jnp.dot(y, _ld(slab_ref, PARAM_SPEC["w_fc"]),
                            preferred_element_type=jnp.float32)
                    + _ld(slab_ref, PARAM_SPEC["b_fc"]))


# --------------------------- parameter creation ---------------------------

def _init_linear(key, din, dout, scale=0.05):
    kw, kb = jax.random.split(key)
    return (scale * jax.random.normal(kw, (din, dout), jnp.float32),
            scale * jax.random.normal(kb, (1, dout), jnp.float32))


def _init_attention(key):
    ks = jax.random.split(key, 4)
    w_q, b_q = _init_linear(ks[0], D_MODEL, D_MODEL)
    w_k, b_k = _init_linear(ks[1], D_MODEL, D_MODEL)
    w_v, b_v = _init_linear(ks[2], D_MODEL, D_MODEL)
    w_o, b_o = _init_linear(ks[3], D_MODEL, D_MODEL)
    return {"w_q": w_q, "b_q": b_q, "w_k": w_k, "b_k": b_k,
            "w_v": w_v, "b_v": b_v, "w_o": w_o, "b_o": b_o}


def _init_encoder_block(key):
    ks = jax.random.split(key, 3)
    w1, b1 = _init_linear(ks[1], D_MODEL, D_FF)
    w2, b2 = _init_linear(ks[2], D_FF, D_MODEL)
    return {"attn": _init_attention(ks[0]),
            "ln1_g": jnp.ones((1, D_MODEL), jnp.float32),
            "ln1_b": jnp.zeros((1, D_MODEL), jnp.float32),
            "w1": w1, "b1": b1, "w2": w2, "b2": b2,
            "ln2_g": jnp.ones((1, D_MODEL), jnp.float32),
            "ln2_b": jnp.zeros((1, D_MODEL), jnp.float32)}


def _init_decoder_block(key):
    k1, k2 = jax.random.split(key)
    return {"self_attn": _init_attention(k1),
            "ln_g": jnp.ones((1, D_MODEL), jnp.float32),
            "ln_b": jnp.zeros((1, D_MODEL), jnp.float32),
            "enc": _init_encoder_block(k2)}


def init_transformer(key):
    ke, kd = jax.random.split(key)
    kes = jax.random.split(ke, NX + 2)
    kds = jax.random.split(kd, NX + 3)
    fc_w, fc_b = _init_linear(kds[NX + 2], D_MODEL, TGT_VOCAB)
    enc = {"word_emb": 0.05 * jax.random.normal(kes[0], (SRC_VOCAB, D_MODEL), jnp.float32),
           "pos_emb": 0.05 * jax.random.normal(kes[1], (MAX_LEN, D_MODEL), jnp.float32),
           "layers": [_init_encoder_block(kes[2 + i]) for i in range(NX)]}
    dec = {"word_emb": 0.05 * jax.random.normal(kds[0], (TGT_VOCAB, D_MODEL), jnp.float32),
           "pos_emb": 0.05 * jax.random.normal(kds[1], (MAX_LEN, D_MODEL), jnp.float32),
           "layers": [_init_decoder_block(kds[2 + i]) for i in range(NX)],
           "fc_w": fc_w, "fc_b": fc_b}
    return {"encoder": enc, "decoder": dec}


# -------------------- one-time packing into the param slab -----------------

def _put(slab, spec, arr):
    off, r, c = spec
    return slab.at[off:off + r, :c].set(arr.astype(jnp.float32))


def _pack_attn(slab, sp, p):
    # Fuse Q/K/V projections; fold the 1/sqrt(d_k) score scale into the Q part
    # (mathematically equivalent to scaling the scores; done once at pack time).
    w_qkv = jnp.concatenate([p["w_q"] * SCALE, p["w_k"], p["w_v"]], axis=1)
    b_qkv = jnp.concatenate([p["b_q"] * SCALE, p["b_k"], p["b_v"]], axis=1)
    slab = _put(slab, sp["w_qkv"], w_qkv)
    slab = _put(slab, sp["b_qkv"], b_qkv)
    slab = _put(slab, sp["wo"], p["w_o"])
    slab = _put(slab, sp["bo"], p["b_o"])
    return slab


def _pack_enc_block(slab, sp, p):
    slab = _pack_attn(slab, sp["attn"], p["attn"])
    for name in ("ln1_g", "ln1_b", "w1", "b1", "w2", "b2", "ln2_g", "ln2_b"):
        slab = _put(slab, sp[name], p[name])
    return slab


def _pack_dec_block(slab, sp, p):
    slab = _pack_attn(slab, sp["self_attn"], p["self_attn"])
    slab = _put(slab, sp["ln_g"], p["ln_g"])
    slab = _put(slab, sp["ln_b"], p["ln_b"])
    return _pack_enc_block(slab, sp["enc"], p["enc"])


def pack_params(params):
    """One-time: pack every weight into a single [PARAM_ROWS, 128] f32 slab."""
    slab = jnp.zeros((PARAM_ROWS, LANES), jnp.float32)
    for i in range(NX):
        slab = _pack_enc_block(slab, PARAM_SPEC["enc_layers"][i],
                               params["encoder"]["layers"][i])
    for i in range(NX):
        slab = _pack_dec_block(slab, PARAM_SPEC["dec_layers"][i],
                               params["decoder"]["layers"][i])
    fc_w = jnp.zeros((D_MODEL, V_PAD), jnp.float32).at[:, :TGT_VOCAB].set(
        params["decoder"]["fc_w"])
    fc_b = jnp.zeros((1, V_PAD), jnp.float32).at[:, :TGT_VOCAB].set(
        params["decoder"]["fc_b"])
    slab = _put(slab, PARAM_SPEC["w_fc"], fc_w)
    slab = _put(slab, PARAM_SPEC["b_fc"], fc_b)
    return {"slab": slab,
            "enc_word_emb": params["encoder"]["word_emb"],
            "enc_pos_emb": params["encoder"]["pos_emb"],
            "dec_word_emb": params["decoder"]["word_emb"],
            "dec_pos_emb": params["decoder"]["pos_emb"]}


# ------------------------------ forward pass ------------------------------

def _expand_heads(base):
    """[Nq, Nk] additive bias -> [H*Nq, H*Nk] with -1e9 on cross-head blocks
    (head-major row/col ordering, matching _stack_heads)."""
    nq, nk = base.shape
    full = jnp.tile(base, (HEADS, HEADS))
    hq = jnp.repeat(jnp.arange(HEADS), nq)
    hk = jnp.repeat(jnp.arange(HEADS), nk)
    return jnp.where(hq[:, None] == hk[None, :], full, NEG_INF).astype(jnp.float32)


def transformer_fwd(packed, src, tgt):
    B, Ls = src.shape
    _, Lt = tgt.shape
    nq_e, nq_d = B * Ls, B * Lt
    assert HEADS * max(nq_e, nq_d) <= LANES, "bias must fit in 128 lanes"

    # embeddings + positions (JAX glue; dropout is eval-mode identity)
    src_x = (jnp.take(packed["enc_word_emb"], src, axis=0)
             + packed["enc_pos_emb"][None, :Ls, :]).reshape(nq_e, D_MODEL)
    tgt_x = (jnp.take(packed["dec_word_emb"], tgt, axis=0)
             + packed["dec_pos_emb"][None, :Lt, :]).reshape(nq_d, D_MODEL)

    # additive base biases (0 keep / -1e9 drop), block-diagonal over batch
    keep = (src != SRC_PAD).reshape(-1)                       # [B*Ls] key padding
    col_b_src = jnp.repeat(jnp.arange(B), Ls)
    row_b_enc = jnp.repeat(jnp.arange(B), Ls)
    row_b_dec = jnp.repeat(jnp.arange(B), Lt)

    enc_base = jnp.where((row_b_enc[:, None] == col_b_src[None, :]) & keep[None, :],
                         0.0, NEG_INF).astype(jnp.float32)                  # [B*Ls, B*Ls]
    cross_base = jnp.where((row_b_dec[:, None] == col_b_src[None, :]) & keep[None, :],
                           0.0, NEG_INF).astype(jnp.float32)                # [B*Lt, B*Ls]
    pos_d = jnp.tile(jnp.arange(Lt), B)
    tgt_base = jnp.where((row_b_dec[:, None] == row_b_dec[None, :])
                         & (pos_d[:, None] >= pos_d[None, :]),
                         0.0, NEG_INF).astype(jnp.float32)                  # causal only
    # NOTE: tgt mask is causal-only, exactly as in the reference make_tgt_mask.

    # ---- dynamic slab: activations + head-expanded biases, ONE operand ----
    dsb = _SpecBuilder()
    dspec = {"src": dsb.leaf(nq_e, D_MODEL),
             "tgt": dsb.leaf(nq_d, D_MODEL),
             "enc_bias": dsb.leaf(HEADS * nq_e, HEADS * nq_e),
             "cross_bias": dsb.leaf(HEADS * nq_d, HEADS * nq_e),
             "tgt_bias": dsb.leaf(HEADS * nq_d, HEADS * nq_d)}
    pieces = [src_x, tgt_x,
              _expand_heads(enc_base), _expand_heads(cross_base), _expand_heads(tgt_base)]

    def _pad_piece(x):
        r, c = x.shape
        return jnp.pad(x.astype(jnp.float32), ((0, _rup(r) - r), (0, LANES - c)))

    dyn = jnp.concatenate([_pad_piece(p) for p in pieces], axis=0)   # [dyn_rows, 128]

    kernel = functools.partial(_transformer_kernel, dspec)
    out = pl.pallas_call(
        kernel,
        out_shape=jax.ShapeDtypeStruct((nq_d, V_PAD), jnp.float32),
        in_specs=[pl.BlockSpec(memory_space=pltpu.MemorySpace.VMEM),
                  pl.BlockSpec(memory_space=pltpu.MemorySpace.VMEM)],
        out_specs=pl.BlockSpec(memory_space=pltpu.MemorySpace.VMEM),
        compiler_params=pltpu.CompilerParams(vmem_limit_bytes=32 * 1024 * 1024),
    )(dyn, packed["slab"])

    return out[:, :TGT_VOCAB].reshape(B, Lt, TGT_VOCAB)


# --------------------------------- main -----------------------------------

if __name__ == "__main__":
    key = jax.random.PRNGKey(0)
    kp, ks, kt = jax.random.split(key, 3)

    params = init_transformer(kp)
    packed = pack_params(params)          # one-time pre-pack (not in the hot path)

    B, LS, LT = 2, 8, 8
    src = jax.random.randint(ks, (B, LS), 1, SRC_VOCAB, dtype=jnp.int32)
    tgt = jax.random.randint(kt, (B, LT), 1, TGT_VOCAB, dtype=jnp.int32)
    # inject padding tokens so the source pad mask is exercised
    src = src.at[:, -2:].set(SRC_PAD)

    fwd = jax.jit(transformer_fwd)
    out = fwd(packed, src, tgt)
    jax.block_until_ready(out)

    assert out.shape == (B, LT, TGT_VOCAB)
    assert bool(jnp.all(jnp.isfinite(out)))
    print("KERNEL_OK")
</pallas_src>

<mosaic_0001>
module attributes {stable_mosaic.version = 11 : i64} {
  func.func @_transformer_kernel(%arg0: memref<224x128xf32, #tpu.memory_space<vmem>>, %arg1: memref<1128x128xf32, #tpu.memory_space<vmem>>, %arg2: memref<16x128xf32, #tpu.memory_space<vmem>>) attributes {dimension_semantics = [], scalar_prefetch = 0 : i64, scratch_operands = 0 : i64, tpu.core_type = #tpu.core_type<tc>} {
    %c32 = arith.constant 32 : index
    %c0 = arith.constant 0 : index
    %0 = vector.load %arg0[%c32, %c0] : memref<224x128xf32, #tpu.memory_space<vmem>>, vector<64x64xf32>
    %c96 = arith.constant 96 : index
    %c0_0 = arith.constant 0 : index
    %1 = vector.load %arg0[%c96, %c0_0] : memref<224x128xf32, #tpu.memory_space<vmem>>, vector<64x64xf32>
    %c160 = arith.constant 160 : index
    %c0_1 = arith.constant 0 : index
    %2 = vector.load %arg0[%c160, %c0_1] : memref<224x128xf32, #tpu.memory_space<vmem>>, vector<64x64xf32>
    %c0_2 = arith.constant 0 : index
    %c0_3 = arith.constant 0 : index
    %3 = vector.load %arg0[%c0_2, %c0_3] : memref<224x128xf32, #tpu.memory_space<vmem>>, vector<16x32xf32>
    %c0_4 = arith.constant 0 : index
    %c0_5 = arith.constant 0 : index
    %4 = vector.load %arg1[%c0_4, %c0_5] : memref<1128x128xf32, #tpu.memory_space<vmem>>, vector<32x96xf32>
    %c32_6 = arith.constant 32 : index
    %c0_7 = arith.constant 0 : index
    %5 = vector.load %arg1[%c32_6, %c0_7] : memref<1128x128xf32, #tpu.memory_space<vmem>>, vector<1x96xf32>
    %cst = arith.constant dense<0.000000e+00> : vector<16x96xf32>
    %6 = tpu.matmul %3, %4, %cst {dimension_numbers = #tpu.dot_dimension_numbers<[1], [0], [0], [1], [0, 0, 1, 1], [], []>} : vector<16x32xf32>, vector<32x96xf32>, vector<16x96xf32> -> vector<16x96xf32>
    %7 = vector.broadcast %5 : vector<1x96xf32> to vector<16x96xf32>
    %8 = arith.addf %6, %7 : vector<16x96xf32>
    %9 = vector.extract_strided_slice %8 {offsets = [0, 0], sizes = [16, 32], strides = [1, 1]} : vector<16x96xf32> to vector<16x32xf32>
    %10 = vector.extract_strided_slice %8 {offsets = [0, 32], sizes = [16, 32], strides = [1, 1]} : vector<16x96xf32> to vector<16x32xf32>
    %11 = vector.extract_strided_slice %8 {offsets = [0, 64], sizes = [16, 32], strides = [1, 1]} : vector<16x96xf32> to vector<16x32xf32>
    %12 = vector.extract_strided_slice %9 {offsets = [0, 0], sizes = [16, 8], strides = [1, 1]} : vector<16x32xf32> to vector<16x8xf32>
    %13 = vector.extract_strided_slice %9 {offsets = [0, 8], sizes = [16, 8], strides = [1, 1]} : vector<16x32xf32> to vector<16x8xf32>
    %14 = vector.extract_strided_slice %9 {offsets = [0, 16], sizes = [16, 8], strides = [1, 1]} : vector<16x32xf32> to vector<16x8xf32>
    %15 = vector.extract_strided_slice %9 {offsets = [0, 24], sizes = [16, 8], strides = [1, 1]} : vector<16x32xf32> to vector<16x8xf32>
    %16 = tpu.concatenate %12, %13, %14, %15 in 0 : vector<16x8xf32>, vector<16x8xf32>, vector<16x8xf32>, vector<16x8xf32> -> vector<64x8xf32>
    %17 = vector.extract_strided_slice %10 {offsets = [0, 0], sizes = [16, 8], strides = [1, 1]} : vector<16x32xf32> to vector<16x8xf32>
    %18 = vector.extract_strided_slice %10 {offsets = [0, 8], sizes = [16, 8], strides = [1, 1]} : vector<16x32xf32> to vector<16x8xf32>
    %19 = vector.extract_strided_slice %10 {offsets = [0, 16], sizes = [16, 8], strides = [1, 1]} : vector<16x32xf32> to vector<16x8xf32>
    %20 = vector.extract_strided_slice %10 {offsets = [0, 24], sizes = [16, 8], strides = [1, 1]} : vector<16x32xf32> to vector<16x8xf32>
    %21 = tpu.concatenate %17, %18, %19, %20 in 0 : vector<16x8xf32>, vector<16x8xf32>, vector<16x8xf32>, vector<16x8xf32> -> vector<64x8xf32>
    %22 = vector.extract_strided_slice %11 {offsets = [0, 0], sizes = [16, 8], strides = [1, 1]} : vector<16x32xf32> to vector<16x8xf32>
    %23 = vector.extract_strided_slice %11 {offsets = [0, 8], sizes = [16, 8], strides = [1, 1]} : vector<16x32xf32> to vector<16x8xf32>
    %24 = vector.extract_strided_slice %11 {offsets = [0, 16], sizes = [16, 8], strides = [1, 1]} : vector<16x32xf32> to vector<16x8xf32>
    %25 = vector.extract_strided_slice %11 {offsets = [0, 24], sizes = [16, 8], strides = [1, 1]} : vector<16x32xf32> to vector<16x8xf32>
    %26 = tpu.concatenate %22, %23, %24, %25 in 0 : vector<16x8xf32>, vector<16x8xf32>, vector<16x8xf32>, vector<16x8xf32> -> vector<64x8xf32>
    %cst_8 = arith.constant dense<0.000000e+00> : vector<64x64xf32>
    %27 = tpu.matmul %16, %21, %cst_8 {dimension_numbers = #tpu.dot_dimension_numbers<[1], [1], [0], [0], [0, 0, 1, 0], [], []>} : vector<64x8xf32>, vector<64x8xf32>, vector<64x64xf32> -> vector<64x64xf32>
    %28 = arith.addf %27, %0 : vector<64x64xf32>
    %cst_9 = arith.constant dense<0xFF800000> : vector<64xf32>
    %29 = vector.multi_reduction <maximumf>, %28, %cst_9 [1] : vector<64x64xf32> to vector<64xf32>
    %30 = vector.shape_cast %29 : vector<64xf32> to vector<64x1xf32>
    %31 = vector.broadcast %30 : vector<64x1xf32> to vector<64x64xf32>
    %32 = arith.subf %28, %31 : vector<64x64xf32>
    %33 = math.exp %32 : vector<64x64xf32>
    %cst_10 = arith.constant dense<0.000000e+00> : vector<64xf32>
    %34 = vector.multi_reduction <add>, %33, %cst_10 [1] : vector<64x64xf32> to vector<64xf32>
    %35 = vector.shape_cast %34 : vector<64xf32> to vector<64x1xf32>
    %cst_11 = arith.constant 1.000000e+00 : f32
    %36 = vector.broadcast %cst_11 : f32 to vector<64x1xf32>
    %37 = arith.divf %36, %35 : vector<64x1xf32>
    %38 = vector.broadcast %37 : vector<64x1xf32> to vector<64x64xf32>
    %39 = arith.mulf %33, %38 : vector<64x64xf32>
    %cst_12 = arith.constant dense<0.000000e+00> : vector<64x8xf32>
    %40 = tpu.matmul %39, %26, %cst_12 {dimension_numbers = #tpu.dot_dimension_numbers<[1], [0], [0], [1], [0, 0, 1, 1], [], []>} : vector<64x64xf32>, vector<64x8xf32>, vector<64x8xf32> -> vector<64x8xf32>
    %41 = vector.extract_strided_slice %40 {offsets = [0, 0], sizes = [16, 8], strides = [1, 1]} : vector<64x8xf32> to vector<16x8xf32>
    %42 = vector.extract_strided_slice %40 {offsets = [16, 0], sizes = [16, 8], strides = [1, 1]} : vector<64x8xf32> to vector<16x8xf32>
    %43 = vector.extract_strided_slice %40 {offsets = [32, 0], sizes = [16, 8], strides = [1, 1]} : vector<64x8xf32> to vector<16x8xf32>
    %44 = vector.extract_strided_slice %40 {offsets = [48, 0], sizes = [16, 8], strides = [1, 1]} : vector<64x8xf32> to vector<16x8xf32>
    %45 = tpu.concatenate %41, %42, %43, %44 in 1 : vector<16x8xf32>, vector<16x8xf32>, vector<16x8xf32>, vector<16x8xf32> -> vector<16x32xf32>
    %c40 = arith.constant 40 : index
    %c0_13 = arith.constant 0 : index
    %46 = vector.load %arg1[%c40, %c0_13] : memref<1128x128xf32, #tpu.memory_space<vmem>>, vector<32x32xf32>
    %cst_14 = arith.constant dense<0.000000e+00> : vector<16x32xf32>
    %47 = tpu.matmul %45, %46, %cst_14 {dimension_numbers = #tpu.dot_dimension_numbers<[1], [0], [0], [1], [0, 0, 1, 1], [], []>} : vector<16x32xf32>, vector<32x32xf32>, vector<16x32xf32> -> vector<16x32xf32>
    %c72 = arith.constant 72 : index
    %c0_15 = arith.constant 0 : index
    %48 = vector.load %arg1[%c72, %c0_15] : memref<1128x128xf32, #tpu.memory_space<vmem>>, vector<1x32xf32>
    %49 = vector.broadcast %48 : vector<1x32xf32> to vector<16x32xf32>
    %50 = arith.addf %47, %49 : vector<16x32xf32>
    %51 = arith.addf %3, %50 : vector<16x32xf32>
    %c80 = arith.constant 80 : index
    %c0_16 = arith.constant 0 : index
    %52 = vector.load %arg1[%c80, %c0_16] : memref<1128x128xf32, #tpu.memory_space<vmem>>, vector<1x32xf32>
    %c88 = arith.constant 88 : index
    %c0_17 = arith.constant 0 : index
    %53 = vector.load %arg1[%c88, %c0_17] : memref<1128x128xf32, #tpu.memory_space<vmem>>, vector<1x32xf32>
    %cst_18 = arith.constant dense<0.000000e+00> : vector<16xf32>
    %54 = vector.multi_reduction <add>, %51, %cst_18 [1] : vector<16x32xf32> to vector<16xf32>
    %55 = vector.shape_cast %54 : vector<16xf32> to vector<16x1xf32>
    %cst_19 = arith.constant 3.200000e+01 : f32
    %56 = vector.broadcast %cst_19 : f32 to vector<16x1xf32>
    %57 = arith.divf %55, %56 : vector<16x1xf32>
    %58 = vector.broadcast %57 : vector<16x1xf32> to vector<16x32xf32>
    %59 = arith.subf %51, %58 : vector<16x32xf32>
    %60 = arith.mulf %59, %59 : vector<16x32xf32>
    %cst_20 = arith.constant dense<0.000000e+00> : vector<16xf32>
    %61 = vector.multi_reduction <add>, %60, %cst_20 [1] : vector<16x32xf32> to vector<16xf32>
    %62 = vector.shape_cast %61 : vector<16xf32> to vector<16x1xf32>
    %cst_21 = arith.constant 3.200000e+01 : f32
    %63 = vector.broadcast %cst_21 : f32 to vector<16x1xf32>
    %64 = arith.divf %62, %63 : vector<16x1xf32>
    %65 = vector.broadcast %57 : vector<16x1xf32> to vector<16x32xf32>
    %66 = arith.subf %51, %65 : vector<16x32xf32>
    %cst_22 = arith.constant 9.99999974E-6 : f32
    %67 = vector.broadcast %cst_22 : f32 to vector<16x1xf32>
    %68 = arith.addf %64, %67 : vector<16x1xf32>
    %69 = math.rsqrt %68 : vector<16x1xf32>
    %70 = vector.broadcast %69 : vector<16x1xf32> to vector<16x32xf32>
    %71 = arith.mulf %66, %70 : vector<16x32xf32>
    %72 = vector.broadcast %52 : vector<1x32xf32> to vector<16x32xf32>
    %73 = arith.mulf %71, %72 : vector<16x32xf32>
    %74 = vector.broadcast %53 : vector<1x32xf32> to vector<16x32xf32>
    %75 = arith.addf %73, %74 : vector<16x32xf32>
    %c96_23 = arith.constant 96 : index
    %c0_24 = arith.constant 0 : index
    %76 = vector.load %arg1[%c96_23, %c0_24] : memref<1128x128xf32, #tpu.memory_space<vmem>>, vector<32x64xf32>
    %cst_25 = arith.constant dense<0.000000e+00> : vector<16x64xf32>
    %77 = tpu.matmul %75, %76, %cst_25 {dimension_numbers = #tpu.dot_dimension_numbers<[1], [0], [0], [1], [0, 0, 1, 1], [], []>} : vector<16x32xf32>, vector<32x64xf32>, vector<16x64xf32> -> vector<16x64xf32>
    %c128 = arith.constant 128 : index
    %c0_26 = arith.constant 0 : index
    %78 = vector.load %arg1[%c128, %c0_26] : memref<1128x128xf32, #tpu.memory_space<vmem>>, vector<1x64xf32>
    %79 = vector.broadcast %78 : vector<1x64xf32> to vector<16x64xf32>
    %80 = arith.addf %77, %79 : vector<16x64xf32>
    %cst_27 = arith.constant 0.000000e+00 : f32
    %81 = vector.broadcast %cst_27 : f32 to vector<16x64xf32>
    %82 = arith.maximumf %80, %81 : vector<16x64xf32>
    %c136 = arith.constant 136 : index
    %c0_28 = arith.constant 0 : index
    %83 = vector.load %arg1[%c136, %c0_28] : memref<1128x128xf32, #tpu.memory_space<vmem>>, vector<64x32xf32>
    %cst_29 = arith.constant dense<0.000000e+00> : vector<16x32xf32>
    %84 = tpu.matmul %82, %83, %cst_29 {dimension_numbers = #tpu.dot_dimension_numbers<[1], [0], [0], [1], [0, 0, 1, 1], [], []>} : vector<16x64xf32>, vector<64x32xf32>, vector<16x32xf32> -> vector<16x32xf32>
    %c200 = arith.constant 200 : index
    %c0_30 = arith.constant 0 : index
    %85 = vector.load %arg1[%c200, %c0_30] : memref<1128x128xf32, #tpu.memory_space<vmem>>, vector<1x32xf32>
    %86 = vector.broadcast %85 : vector<1x32xf32> to vector<16x32xf32>
    %87 = arith.addf %84, %86 : vector<16x32xf32>
    %88 = arith.addf %75, %87 : vector<16x32xf32>
    %c208 = arith.constant 208 : index
    %c0_31 = arith.constant 0 : index
    %89 = vector.load %arg1[%c208, %c0_31] : memref<1128x128xf32, #tpu.memory_space<vmem>>, vector<1x32xf32>
    %c216 = arith.constant 216 : index
    %c0_32 = arith.constant 0 : index
    %90 = vector.load %arg1[%c216, %c0_32] : memref<1128x128xf32, #tpu.memory_space<vmem>>, vector<1x32xf32>
    %cst_33 = arith.constant dense<0.000000e+00> : vector<16xf32>
    %91 = vector.multi_reduction <add>, %88, %cst_33 [1] : vector<16x32xf32> to vector<16xf32>
    %92 = vector.shape_cast %91 : vector<16xf32> to vector<16x1xf32>
    %cst_34 = arith.constant 3.200000e+01 : f32
    %93 = vector.broadcast %cst_34 : f32 to vector<16x1xf32>
    %94 = arith.divf %92, %93 : vector<16x1xf32>
    %95 = vector.broadcast %94 : vector<16x1xf32> to vector<16x32xf32>
    %96 = arith.subf %88, %95 : vector<16x32xf32>
    %97 = arith.mulf %96, %96 : vector<16x32xf32>
    %cst_35 = arith.constant dense<0.000000e+00> : vector<16xf32>
    %98 = vector.multi_reduction <add>, %97, %cst_35 [1] : vector<16x32xf32> to vector<16xf32>
    %99 = vector.shape_cast %98 : vector<16xf32> to vector<16x1xf32>
    %cst_36 = arith.constant 3.200000e+01 : f32
    %100 = vector.broadcast %cst_36 : f32 to vector<16x1xf32>
    %101 = arith.divf %99, %100 : vector<16x1xf32>
    %102 = vector.broadcast %94 : vector<16x1xf32> to vector<16x32xf32>
    %103 = arith.subf %88, %102 : vector<16x32xf32>
    %cst_37 = arith.constant 9.99999974E-6 : f32
    %104 = vector.broadcast %cst_37 : f32 to vector<16x1xf32>
    %105 = arith.addf %101, %104 : vector<16x1xf32>
    %106 = math.rsqrt %105 : vector<16x1xf32>
    %107 = vector.broadcast %106 : vector<16x1xf32> to vector<16x32xf32>
    %108 = arith.mulf %103, %107 : vector<16x32xf32>
    %109 = vector.broadcast %89 : vector<1x32xf32> to vector<16x32xf32>
    %110 = arith.mulf %108, %109 : vector<16x32xf32>
    %111 = vector.broadcast %90 : vector<1x32xf32> to vector<16x32xf32>
    %112 = arith.addf %110, %111 : vector<16x32xf32>
    %c224 = arith.constant 224 : index
    %c0_38 = arith.constant 0 : index
    %113 = vector.load %arg1[%c224, %c0_38] : memref<1128x128xf32, #tpu.memory_space<vmem>>, vector<32x96xf32>
    %c256 = arith.constant 256 : index
    %c0_39 = arith.constant 0 : index
    %114 = vector.load %arg1[%c256, %c0_39] : memref<1128x128xf32, #tpu.memory_space<vmem>>, vector<1x96xf32>
    %cst_40 = arith.constant dense<0.000000e+00> : vector<16x96xf32>
    %115 = tpu.matmul %112, %113, %cst_40 {dimension_numbers = #tpu.dot_dimension_numbers<[1], [0], [0], [1], [0, 0, 1, 1], [], []>} : vector<16x32xf32>, vector<32x96xf32>, vector<16x96xf32> -> vector<16x96xf32>
    %116 = vector.broadcast %114 : vector<1x96xf32> to vector<16x96xf32>
    %117 = arith.addf %115, %116 : vector<16x96xf32>
    %118 = vector.extract_strided_slice %117 {offsets = [0, 0], sizes = [16, 32], strides = [1, 1]} : vector<16x96xf32> to vector<16x32xf32>
    %119 = vector.extract_strided_slice %117 {offsets = [0, 32], sizes = [16, 32], strides = [1, 1]} : vector<16x96xf32> to vector<16x32xf32>
    %120 = vector.extract_strided_slice %117 {offsets = [0, 64], sizes = [16, 32], strides = [1, 1]} : vector<16x96xf32> to vector<16x32xf32>
    %121 = vector.extract_strided_slice %118 {offsets = [0, 0], sizes = [16, 8], strides = [1, 1]} : vector<16x32xf32> to vector<16x8xf32>
    %122 = vector.extract_strided_slice %118 {offsets = [0, 8], sizes = [16, 8], strides = [1, 1]} : vector<16x32xf32> to vector<16x8xf32>
    %123 = vector.extract_strided_slice %118 {offsets = [0, 16], sizes = [16, 8], strides = [1, 1]} : vector<16x32xf32> to vector<16x8xf32>
    %124 = vector.extract_strided_slice %118 {offsets = [0, 24], sizes = [16, 8], strides = [1, 1]} : vector<16x32xf32> to vector<16x8xf32>
    %125 = tpu.concatenate %121, %122, %123, %124 in 0 : vector<16x8xf32>, vector<16x8xf32>, vector<16x8xf32>, vector<16x8xf32> -> vector<64x8xf32>
    %126 = vector.extract_strided_slice %119 {offsets = [0, 0], sizes = [16, 8], strides = [1, 1]} : vector<16x32xf32> to vector<16x8xf32>
    %127 = vector.extract_strided_slice %119 {offsets = [0, 8], sizes = [16, 8], strides = [1, 1]} : vector<16x32xf32> to vector<16x8xf32>
    %128 = vector.extract_strided_slice %119 {offsets = [0, 16], sizes = [16, 8], strides = [1, 1]} : vector<16x32xf32> to vector<16x8xf32>
    %129 = vector.extract_strided_slice %119 {offsets = [0, 24], sizes = [16, 8], strides = [1, 1]} : vector<16x32xf32> to vector<16x8xf32>
    %130 = tpu.concatenate %126, %127, %128, %129 in 0 : vector<16x8xf32>, vector<16x8xf32>, vector<16x8xf32>, vector<16x8xf32> -> vector<64x8xf32>
    %131 = vector.extract_strided_slice %120 {offsets = [0, 0], sizes = [16, 8], strides = [1, 1]} : vector<16x32xf32> to vector<16x8xf32>
    %132 = vector.extract_strided_slice %120 {offsets = [0, 8], sizes = [16, 8], strides = [1, 1]} : vector<16x32xf32> to vector<16x8xf32>
    %133 = vector.extract_strided_slice %120 {offsets = [0, 16], sizes = [16, 8], strides = [1, 1]} : vector<16x32xf32> to vector<16x8xf32>
    %134 = vector.extract_strided_slice %120 {offsets = [0, 24], sizes = [16, 8], strides = [1, 1]} : vector<16x32xf32> to vector<16x8xf32>
    %135 = tpu.concatenate %131, %132, %133, %134 in 0 : vector<16x8xf32>, vector<16x8xf32>, vector<16x8xf32>, vector<16x8xf32> -> vector<64x8xf32>
    %cst_41 = arith.constant dense<0.000000e+00> : vector<64x64xf32>
    %136 = tpu.matmul %125, %130, %cst_41 {dimension_numbers = #tpu.dot_dimension_numbers<[1], [1], [0], [0], [0, 0, 1, 0], [], []>} : vector<64x8xf32>, vector<64x8xf32>, vector<64x64xf32> -> vector<64x64xf32>
    %137 = arith.addf %136, %0 : vector<64x64xf32>
    %cst_42 = arith.constant dense<0xFF800000> : vector<64xf32>
    %138 = vector.multi_reduction <maximumf>, %137, %cst_42 [1] : vector<64x64xf32> to vector<64xf32>
    %139 = vector.shape_cast %138 : vector<64xf32> to vector<64x1xf32>
    %140 = vector.broadcast %139 : vector<64x1xf32> to vector<64x64xf32>
    %141 = arith.subf %137, %140 : vector<64x64xf32>
    %142 = math.exp %141 : vector<64x64xf32>
    %cst_43 = arith.constant dense<0.000000e+00> : vector<64xf32>
    %143 = vector.multi_reduction <add>, %142, %cst_43 [1] : vector<64x64xf32> to vector<64xf32>
    %144 = vector.shape_cast %143 : vector<64xf32> to vector<64x1xf32>
    %cst_44 = arith.constant 1.000000e+00 : f32
    %145 = vector.broadcast %cst_44 : f32 to vector<64x1xf32>
    %146 = arith.divf %145, %144 : vector<64x1xf32>
    %147 = vector.broadcast %146 : vector<64x1xf32> to vector<64x64xf32>
    %148 = arith.mulf %142, %147 : vector<64x64xf32>
    %cst_45 = arith.constant dense<0.000000e+00> : vector<64x8xf32>
    %149 = tpu.matmul %148, %135, %cst_45 {dimension_numbers = #tpu.dot_dimension_numbers<[1], [0], [0], [1], [0, 0, 1, 1], [], []>} : vector<64x64xf32>, vector<64x8xf32>, vector<64x8xf32> -> vector<64x8xf32>
    %150 = vector.extract_strided_slice %149 {offsets = [0, 0], sizes = [16, 8], strides = [1, 1]} : vector<64x8xf32> to vector<16x8xf32>
    %151 = vector.extract_strided_slice %149 {offsets = [16, 0], sizes = [16, 8], strides = [1, 1]} : vector<64x8xf32> to vector<16x8xf32>
    %152 = vector.extract_strided_slice %149 {offsets = [32, 0], sizes = [16, 8], strides = [1, 1]} : vector<64x8xf32> to vector<16x8xf32>
    %153 = vector.extract_strided_slice %149 {offsets = [48, 0], sizes = [16, 8], strides = [1, 1]} : vector<64x8xf32> to vector<16x8xf32>
    %154 = tpu.concatenate %150, %151, %152, %153 in 1 : vector<16x8xf32>, vector<16x8xf32>, vector<16x8xf32>, vector<16x8xf32> -> vector<16x32xf32>
    %c264 = arith.constant 264 : index
    %c0_46 = arith.constant 0 : index
    %155 = vector.load %arg1[%c264, %c0_46] : memref<1128x128xf32, #tpu.memory_space<vmem>>, vector<32x32xf32>
    %cst_47 = arith.constant dense<0.000000e+00> : vector<16x32xf32>
    %156 = tpu.matmul %154, %155, %cst_47 {dimension_numbers = #tpu.dot_dimension_numbers<[1], [0], [0], [1], [0, 0, 1, 1], [], []>} : vector<16x32xf32>, vector<32x32xf32>, vector<16x32xf32> -> vector<16x32xf32>
    %c296 = arith.constant 296 : index
    %c0_48 = arith.constant 0 : index
    %157 = vector.load %arg1[%c296, %c0_48] : memref<1128x128xf32, #tpu.memory_space<vmem>>, vector<1x32xf32>
    %158 = vector.broadcast %157 : vector<1x32xf32> to vector<16x32xf32>
    %159 = arith.addf %156, %158 : vector<16x32xf32>
    %160 = arith.addf %112, %159 : vector<16x32xf32>
    %c304 = arith.constant 304 : index
    %c0_49 = arith.constant 0 : index
    %161 = vector.load %arg1[%c304, %c0_49] : memref<1128x128xf32, #tpu.memory_space<vmem>>, vector<1x32xf32>
    %c312 = arith.constant 312 : index
    %c0_50 = arith.constant 0 : index
    %162 = vector.load %arg1[%c312, %c0_50] : memref<1128x128xf32, #tpu.memory_space<vmem>>, vector<1x32xf32>
    %cst_51 = arith.constant dense<0.000000e+00> : vector<16xf32>
    %163 = vector.multi_reduction <add>, %160, %cst_51 [1] : vector<16x32xf32> to vector<16xf32>
    %164 = vector.shape_cast %163 : vector<16xf32> to vector<16x1xf32>
    %cst_52 = arith.constant 3.200000e+01 : f32
    %165 = vector.broadcast %cst_52 : f32 to vector<16x1xf32>
    %166 = arith.divf %164, %165 : vector<16x1xf32>
    %167 = vector.broadcast %166 : vector<16x1xf32> to vector<16x32xf32>
    %168 = arith.subf %160, %167 : vector<16x32xf32>
    %169 = arith.mulf %168, %168 : vector<16x32xf32>
    %cst_53 = arith.constant dense<0.000000e+00> : vector<16xf32>
    %170 = vector.multi_reduction <add>, %169, %cst_53 [1] : vector<16x32xf32> to vector<16xf32>
    %171 = vector.shape_cast %170 : vector<16xf32> to vector<16x1xf32>
    %cst_54 = arith.constant 3.200000e+01 : f32
    %172 = vector.broadcast %cst_54 : f32 to vector<16x1xf32>
    %173 = arith.divf %171, %172 : vector<16x1xf32>
    %174 = vector.broadcast %166 : vector<16x1xf32> to vector<16x32xf32>
    %175 = arith.subf %160, %174 : vector<16x32xf32>
    %cst_55 = arith.constant 9.99999974E-6 : f32
    %176 = vector.broadcast %cst_55 : f32 to vector<16x1xf32>
    %177 = arith.addf %173, %176 : vector<16x1xf32>
    %178 = math.rsqrt %177 : vector<16x1xf32>
    %179 = vector.broadcast %178 : vector<16x1xf32> to vector<16x32xf32>
    %180 = arith.mulf %175, %179 : vector<16x32xf32>
    %181 = vector.broadcast %161 : vector<1x32xf32> to vector<16x32xf32>
    %182 = arith.mulf %180, %181 : vector<16x32xf32>
    %183 = vector.broadcast %162 : vector<1x32xf32> to vector<16x32xf32>
    %184 = arith.addf %182, %183 : vector<16x32xf32>
    %c320 = arith.constant 320 : index
    %c0_56 = arith.constant 0 : index
    %185 = vector.load %arg1[%c320, %c0_56] : memref<1128x128xf32, #tpu.memory_space<vmem>>, vector<32x64xf32>
    %cst_57 = arith.constant dense<0.000000e+00> : vector<16x64xf32>
    %186 = tpu.matmul %184, %185, %cst_57 {dimension_numbers = #tpu.dot_dimension_numbers<[1], [0], [0], [1], [0, 0, 1, 1], [], []>} : vector<16x32xf32>, vector<32x64xf32>, vector<16x64xf32> -> vector<16x64xf32>
    %c352 = arith.constant 352 : index
    %c0_58 = arith.constant 0 : index
    %187 = vector.load %arg1[%c352, %c0_58] : memref<1128x128xf32, #tpu.memory_space<vmem>>, vector<1x64xf32>
    %188 = vector.broadcast %187 : vector<1x64xf32> to vector<16x64xf32>
    %189 = arith.addf %186, %188 : vector<16x64xf32>
    %cst_59 = arith.constant 0.000000e+00 : f32
    %190 = vector.broadcast %cst_59 : f32 to vector<16x64xf32>
    %191 = arith.maximumf %189, %190 : vector<16x64xf32>
    %c360 = arith.constant 360 : index
    %c0_60 = arith.constant 0 : index
    %192 = vector.load %arg1[%c360, %c0_60] : memref<1128x128xf32, #tpu.memory_space<vmem>>, vector<64x32xf32>
    %cst_61 = arith.constant dense<0.000000e+00> : vector<16x32xf32>
    %193 = tpu.matmul %191, %192, %cst_61 {dimension_numbers = #tpu.dot_dimension_numbers<[1], [0], [0], [1], [0, 0, 1, 1], [], []>} : vector<16x64xf32>, vector<64x32xf32>, vector<16x32xf32> -> vector<16x32xf32>
    %c424 = arith.constant 424 : index
    %c0_62 = arith.constant 0 : index
    %194 = vector.load %arg1[%c424, %c0_62] : memref<1128x128xf32, #tpu.memory_space<vmem>>, vector<1x32xf32>
    %195 = vector.broadcast %194 : vector<1x32xf32> to vector<16x32xf32>
    %196 = arith.addf %193, %195 : vector<16x32xf32>
    %197 = arith.addf %184, %196 : vector<16x32xf32>
    %c432 = arith.constant 432 : index
    %c0_63 = arith.constant 0 : index
    %198 = vector.load %arg1[%c432, %c0_63] : memref<1128x128xf32, #tpu.memory_space<vmem>>, vector<1x32xf32>
    %c440 = arith.constant 440 : index
    %c0_64 = arith.constant 0 : index
    %199 = vector.load %arg1[%c440, %c0_64] : memref<1128x128xf32, #tpu.memory_space<vmem>>, vector<1x32xf32>
    %cst_65 = arith.constant dense<0.000000e+00> : vector<16xf32>
    %200 = vector.multi_reduction <add>, %197, %cst_65 [1] : vector<16x32xf32> to vector<16xf32>
    %201 = vector.shape_cast %200 : vector<16xf32> to vector<16x1xf32>
    %cst_66 = arith.constant 3.200000e+01 : f32
    %202 = vector.broadcast %cst_66 : f32 to vector<16x1xf32>
    %203 = arith.divf %201, %202 : vector<16x1xf32>
    %204 = vector.broadcast %203 : vector<16x1xf32> to vector<16x32xf32>
    %205 = arith.subf %197, %204 : vector<16x32xf32>
    %206 = arith.mulf %205, %205 : vector<16x32xf32>
    %cst_67 = arith.constant dense<0.000000e+00> : vector<16xf32>
    %207 = vector.multi_reduction <add>, %206, %cst_67 [1] : vector<16x32xf32> to vector<16xf32>
    %208 = vector.shape_cast %207 : vector<16xf32> to vector<16x1xf32>
    %cst_68 = arith.constant 3.200000e+01 : f32
    %209 = vector.broadcast %cst_68 : f32 to vector<16x1xf32>
    %210 = arith.divf %208, %209 : vector<16x1xf32>
    %211 = vector.broadcast %203 : vector<16x1xf32> to vector<16x32xf32>
    %212 = arith.subf %197, %211 : vector<16x32xf32>
    %cst_69 = arith.constant 9.99999974E-6 : f32
    %213 = vector.broadcast %cst_69 : f32 to vector<16x1xf32>
    %214 = arith.addf %210, %213 : vector<16x1xf32>
    %215 = math.rsqrt %214 : vector<16x1xf32>
    %216 = vector.broadcast %215 : vector<16x1xf32> to vector<16x32xf32>
    %217 = arith.mulf %212, %216 : vector<16x32xf32>
    %218 = vector.broadcast %198 : vector<1x32xf32> to vector<16x32xf32>
    %219 = arith.mulf %217, %218 : vector<16x32xf32>
    %220 = vector.broadcast %199 : vector<1x32xf32> to vector<16x32xf32>
    %221 = arith.addf %219, %220 : vector<16x32xf32>
    %c16 = arith.constant 16 : index
    %c0_70 = arith.constant 0 : index
    %222 = vector.load %arg0[%c16, %c0_70] : memref<224x128xf32, #tpu.memory_space<vmem>>, vector<16x32xf32>
    %c448 = arith.constant 448 : index
    %c0_71 = arith.constant 0 : index
    %223 = vector.load %arg1[%c448, %c0_71] : memref<1128x128xf32, #tpu.memory_space<vmem>>, vector<32x96xf32>
    %c480 = arith.constant 480 : index
    %c0_72 = arith.constant 0 : index
    %224 = vector.load %arg1[%c480, %c0_72] : memref<1128x128xf32, #tpu.memory_space<vmem>>, vector<1x96xf32>
    %cst_73 = arith.constant dense<0.000000e+00> : vector<16x96xf32>
    %225 = tpu.matmul %222, %223, %cst_73 {dimension_numbers = #tpu.dot_dimension_numbers<[1], [0], [0], [1], [0, 0, 1, 1], [], []>} : vector<16x32xf32>, vector<32x96xf32>, vector<16x96xf32> -> vector<16x96xf32>
    %226 = vector.broadcast %224 : vector<1x96xf32> to vector<16x96xf32>
    %227 = arith.addf %225, %226 : vector<16x96xf32>
    %228 = vector.extract_strided_slice %227 {offsets = [0, 0], sizes = [16, 32], strides = [1, 1]} : vector<16x96xf32> to vector<16x32xf32>
    %229 = vector.extract_strided_slice %227 {offsets = [0, 32], sizes = [16, 32], strides = [1, 1]} : vector<16x96xf32> to vector<16x32xf32>
    %230 = vector.extract_strided_slice %227 {offsets = [0, 64], sizes = [16, 32], strides = [1, 1]} : vector<16x96xf32> to vector<16x32xf32>
    %231 = vector.extract_strided_slice %228 {offsets = [0, 0], sizes = [16, 8], strides = [1, 1]} : vector<16x32xf32> to vector<16x8xf32>
    %232 = vector.extract_strided_slice %228 {offsets = [0, 8], sizes = [16, 8], strides = [1, 1]} : vector<16x32xf32> to vector<16x8xf32>
    %233 = vector.extract_strided_slice %228 {offsets = [0, 16], sizes = [16, 8], strides = [1, 1]} : vector<16x32xf32> to vector<16x8xf32>
    %234 = vector.extract_strided_slice %228 {offsets = [0, 24], sizes = [16, 8], strides = [1, 1]} : vector<16x32xf32> to vector<16x8xf32>
    %235 = tpu.concatenate %231, %232, %233, %234 in 0 : vector<16x8xf32>, vector<16x8xf32>, vector<16x8xf32>, vector<16x8xf32> -> vector<64x8xf32>
    %236 = vector.extract_strided_slice %229 {offsets = [0, 0], sizes = [16, 8], strides = [1, 1]} : vector<16x32xf32> to vector<16x8xf32>
    %237 = vector.extract_strided_slice %229 {offsets = [0, 8], sizes = [16, 8], strides = [1, 1]} : vector<16x32xf32> to vector<16x8xf32>
    %238 = vector.extract_strided_slice %229 {offsets = [0, 16], sizes = [16, 8], strides = [1, 1]} : vector<16x32xf32> to vector<16x8xf32>
    %239 = vector.extract_strided_slice %229 {offsets = [0, 24], sizes = [16, 8], strides = [1, 1]} : vector<16x32xf32> to vector<16x8xf32>
    %240 = tpu.concatenate %236, %237, %238, %239 in 0 : vector<16x8xf32>, vector<16x8xf32>, vector<16x8xf32>, vector<16x8xf32> -> vector<64x8xf32>
    %241 = vector.extract_strided_slice %230 {offsets = [0, 0], sizes = [16, 8], strides = [1, 1]} : vector<16x32xf32> to vector<16x8xf32>
    %242 = vector.extract_strided_slice %230 {offsets = [0, 8], sizes = [16, 8], strides = [1, 1]} : vector<16x32xf32> to vector<16x8xf32>
    %243 = vector.extract_strided_slice %230 {offsets = [0, 16], sizes = [16, 8], strides = [1, 1]} : vector<16x32xf32> to vector<16x8xf32>
    %244 = vector.extract_strided_slice %230 {offsets = [0, 24], sizes = [16, 8], strides = [1, 1]} : vector<16x32xf32> to vector<16x8xf32>
    %245 = tpu.concatenate %241, %242, %243, %244 in 0 : vector<16x8xf32>, vector<16x8xf32>, vector<16x8xf32>, vector<16x8xf32> -> vector<64x8xf32>
    %cst_74 = arith.constant dense<0.000000e+00> : vector<64x64xf32>
    %246 = tpu.matmul %235, %240, %cst_74 {dimension_numbers = #tpu.dot_dimension_numbers<[1], [1], [0], [0], [0, 0, 1, 0], [], []>} : vector<64x8xf32>, vector<64x8xf32>, vector<64x64xf32> -> vector<64x64xf32>
    %247 = arith.addf %246, %2 : vector<64x64xf32>
    %cst_75 = arith.constant dense<0xFF800000> : vector<64xf32>
    %248 = vector.multi_reduction <maximumf>, %247, %cst_75 [1] : vector<64x64xf32> to vector<64xf32>
    %249 = vector.shape_cast %248 : vector<64xf32> to vector<64x1xf32>
    %250 = vector.broadcast %249 : vector<64x1xf32> to vector<64x64xf32>
    %251 = arith.subf %247, %250 : vector<64x64xf32>
    %252 = math.exp %251 : vector<64x64xf32>
    %cst_76 = arith.constant dense<0.000000e+00> : vector<64xf32>
    %253 = vector.multi_reduction <add>, %252, %cst_76 [1] : vector<64x64xf32> to vector<64xf32>
    %254 = vector.shape_cast %253 : vector<64xf32> to vector<64x1xf32>
    %cst_77 = arith.constant 1.000000e+00 : f32
    %255 = vector.broadcast %cst_77 : f32 to vector<64x1xf32>
    %256 = arith.divf %255, %254 : vector<64x1xf32>
    %257 = vector.broadcast %256 : vector<64x1xf32> to vector<64x64xf32>
    %258 = arith.mulf %252, %257 : vector<64x64xf32>
    %cst_78 = arith.constant dense<0.000000e+00> : vector<64x8xf32>
    %259 = tpu.matmul %258, %245, %cst_78 {dimension_numbers = #tpu.dot_dimension_numbers<[1], [0], [0], [1], [0, 0, 1, 1], [], []>} : vector<64x64xf32>, vector<64x8xf32>, vector<64x8xf32> -> vector<64x8xf32>
    %260 = vector.extract_strided_slice %259 {offsets = [0, 0], sizes = [16, 8], strides = [1, 1]} : vector<64x8xf32> to vector<16x8xf32>
    %261 = vector.extract_strided_slice %259 {offsets = [16, 0], sizes = [16, 8], strides = [1, 1]} : vector<64x8xf32> to vector<16x8xf32>
    %262 = vector.extract_strided_slice %259 {offsets = [32, 0], sizes = [16, 8], strides = [1, 1]} : vector<64x8xf32> to vector<16x8xf32>
    %263 = vector.extract_strided_slice %259 {offsets = [48, 0], sizes = [16, 8], strides = [1, 1]} : vector<64x8xf32> to vector<16x8xf32>
    %264 = tpu.concatenate %260, %261, %262, %263 in 1 : vector<16x8xf32>, vector<16x8xf32>, vector<16x8xf32>, vector<16x8xf32> -> vector<16x32xf32>
    %c488 = arith.constant 488 : index
    %c0_79 = arith.constant 0 : index
    %265 = vector.load %arg1[%c488, %c0_79] : memref<1128x128xf32, #tpu.memory_space<vmem>>, vector<32x32xf32>
    %cst_80 = arith.constant dense<0.000000e+00> : vector<16x32xf32>
    %266 = tpu.matmul %264, %265, %cst_80 {dimension_numbers = #tpu.dot_dimension_numbers<[1], [0], [0], [1], [0, 0, 1, 1], [], []>} : vector<16x32xf32>, vector<32x32xf32>, vector<16x32xf32> -> vector<16x32xf32>
    %c520 = arith.constant 520 : index
    %c0_81 = arith.constant 0 : index
    %267 = vector.load %arg1[%c520, %c0_81] : memref<1128x128xf32, #tpu.memory_space<vmem>>, vector<1x32xf32>
    %268 = vector.broadcast %267 : vector<1x32xf32> to vector<16x32xf32>
    %269 = arith.addf %266, %268 : vector<16x32xf32>
    %270 = arith.addf %222, %269 : vector<16x32xf32>
    %c528 = arith.constant 528 : index
    %c0_82 = arith.constant 0 : index
    %271 = vector.load %arg1[%c528, %c0_82] : memref<1128x128xf32, #tpu.memory_space<vmem>>, vector<1x32xf32>
    %c536 = arith.constant 536 : index
    %c0_83 = arith.constant 0 : index
    %272 = vector.load %arg1[%c536, %c0_83] : memref<1128x128xf32, #tpu.memory_space<vmem>>, vector<1x32xf32>
    %cst_84 = arith.constant dense<0.000000e+00> : vector<16xf32>
    %273 = vector.multi_reduction <add>, %270, %cst_84 [1] : vector<16x32xf32> to vector<16xf32>
    %274 = vector.shape_cast %273 : vector<16xf32> to vector<16x1xf32>
    %cst_85 = arith.constant 3.200000e+01 : f32
    %275 = vector.broadcast %cst_85 : f32 to vector<16x1xf32>
    %276 = arith.divf %274, %275 : vector<16x1xf32>
    %277 = vector.broadcast %276 : vector<16x1xf32> to vector<16x32xf32>
    %278 = arith.subf %270, %277 : vector<16x32xf32>
    %279 = arith.mulf %278, %278 : vector<16x32xf32>
    %cst_86 = arith.constant dense<0.000000e+00> : vector<16xf32>
    %280 = vector.multi_reduction <add>, %279, %cst_86 [1] : vector<16x32xf32> to vector<16xf32>
    %281 = vector.shape_cast %280 : vector<16xf32> to vector<16x1xf32>
    %cst_87 = arith.constant 3.200000e+01 : f32
    %282 = vector.broadcast %cst_87 : f32 to vector<16x1xf32>
    %283 = arith.divf %281, %282 : vector<16x1xf32>
    %284 = vector.broadcast %276 : vector<16x1xf32> to vector<16x32xf32>
    %285 = arith.subf %270, %284 : vector<16x32xf32>
    %cst_88 = arith.constant 9.99999974E-6 : f32
    %286 = vector.broadcast %cst_88 : f32 to vector<16x1xf32>
    %287 = arith.addf %283, %286 : vector<16x1xf32>
    %288 = math.rsqrt %287 : vector<16x1xf32>
    %289 = vector.broadcast %288 : vector<16x1xf32> to vector<16x32xf32>
    %290 = arith.mulf %285, %289 : vector<16x32xf32>
    %291 = vector.broadcast %271 : vector<1x32xf32> to vector<16x32xf32>
    %292 = arith.mulf %290, %291 : vector<16x32xf32>
    %293 = vector.broadcast %272 : vector<1x32xf32> to vector<16x32xf32>
    %294 = arith.addf %292, %293 : vector<16x32xf32>
    %c544 = arith.constant 544 : index
    %c0_89 = arith.constant 0 : index
    %295 = vector.load %arg1[%c544, %c0_89] : memref<1128x128xf32, #tpu.memory_space<vmem>>, vector<32x96xf32>
    %c576 = arith.constant 576 : index
    %c0_90 = arith.constant 0 : index
    %296 = vector.load %arg1[%c576, %c0_90] : memref<1128x128xf32, #tpu.memory_space<vmem>>, vector<1x96xf32>
    %297 = vector.extract_strided_slice %295 {offsets = [0, 0], sizes = [32, 32], strides = [1, 1]} : vector<32x96xf32> to vector<32x32xf32>
    %cst_91 = arith.constant dense<0.000000e+00> : vector<16x32xf32>
    %298 = tpu.matmul %294, %297, %cst_91 {dimension_numbers = #tpu.dot_dimension_numbers<[1], [0], [0], [1], [0, 0, 1, 1], [], []>} : vector<16x32xf32>, vector<32x32xf32>, vector<16x32xf32> -> vector<16x32xf32>
    %299 = vector.extract_strided_slice %296 {offsets = [0, 0], sizes = [1, 32], strides = [1, 1]} : vector<1x96xf32> to vector<1x32xf32>
    %300 = vector.broadcast %299 : vector<1x32xf32> to vector<16x32xf32>
    %301 = arith.addf %298, %300 : vector<16x32xf32>
    %302 = vector.extract_strided_slice %295 {offsets = [0, 32], sizes = [32, 64], strides = [1, 1]} : vector<32x96xf32> to vector<32x64xf32>
    %cst_92 = arith.constant dense<0.000000e+00> : vector<16x64xf32>
    %303 = tpu.matmul %221, %302, %cst_92 {dimension_numbers = #tpu.dot_dimension_numbers<[1], [0], [0], [1], [0, 0, 1, 1], [], []>} : vector<16x32xf32>, vector<32x64xf32>, vector<16x64xf32> -> vector<16x64xf32>
    %304 = vector.extract_strided_slice %296 {offsets = [0, 32], sizes = [1, 64], strides = [1, 1]} : vector<1x96xf32> to vector<1x64xf32>
    %305 = vector.broadcast %304 : vector<1x64xf32> to vector<16x64xf32>
    %306 = arith.addf %303, %305 : vector<16x64xf32>
    %307 = vector.extract_strided_slice %306 {offsets = [0, 0], sizes = [16, 32], strides = [1, 1]} : vector<16x64xf32> to vector<16x32xf32>
    %308 = vector.extract_strided_slice %306 {offsets = [0, 32], sizes = [16, 32], strides = [1, 1]} : vector<16x64xf32> to vector<16x32xf32>
    %309 = vector.extract_strided_slice %301 {offsets = [0, 0], sizes = [16, 8], strides = [1, 1]} : vector<16x32xf32> to vector<16x8xf32>
    %310 = vector.extract_strided_slice %301 {offsets = [0, 8], sizes = [16, 8], strides = [1, 1]} : vector<16x32xf32> to vector<16x8xf32>
    %311 = vector.extract_strided_slice %301 {offsets = [0, 16], sizes = [16, 8], strides = [1, 1]} : vector<16x32xf32> to vector<16x8xf32>
    %312 = vector.extract_strided_slice %301 {offsets = [0, 24], sizes = [16, 8], strides = [1, 1]} : vector<16x32xf32> to vector<16x8xf32>
    %313 = tpu.concatenate %309, %310, %311, %312 in 0 : vector<16x8xf32>, vector<16x8xf32>, vector<16x8xf32>, vector<16x8xf32> -> vector<64x8xf32>
    %314 = vector.extract_strided_slice %307 {offsets = [0, 0], sizes = [16, 8], strides = [1, 1]} : vector<16x32xf32> to vector<16x8xf32>
    %315 = vector.extract_strided_slice %307 {offsets = [0, 8], sizes = [16, 8], strides = [1, 1]} : vector<16x32xf32> to vector<16x8xf32>
    %316 = vector.extract_strided_slice %307 {offsets = [0, 16], sizes = [16, 8], strides = [1, 1]} : vector<16x32xf32> to vector<16x8xf32>
    %317 = vector.extract_strided_slice %307 {offsets = [0, 24], sizes = [16, 8], strides = [1, 1]} : vector<16x32xf32> to vector<16x8xf32>
    %318 = tpu.concatenate %314, %315, %316, %317 in 0 : vector<16x8xf32>, vector<16x8xf32>, vector<16x8xf32>, vector<16x8xf32> -> vector<64x8xf32>
    %319 = vector.extract_strided_slice %308 {offsets = [0, 0], sizes = [16, 8], strides = [1, 1]} : vector<16x32xf32> to vector<16x8xf32>
    %320 = vector.extract_strided_slice %308 {offsets = [0, 8], sizes = [16, 8], strides = [1, 1]} : vector<16x32xf32> to vector<16x8xf32>
    %321 = vector.extract_strided_slice %308 {offsets = [0, 16], sizes = [16, 8], strides = [1, 1]} : vector<16x32xf32> to vector<16x8xf32>
    %322 = vector.extract_strided_slice %308 {offsets = [0, 24], sizes = [16, 8], strides = [1, 1]} : vector<16x32xf32> to vector<16x8xf32>
    %323 = tpu.concatenate %319, %320, %321, %322 in 0 : vector<16x8xf32>, vector<16x8xf32>, vector<16x8xf32>, vector<16x8xf32> -> vector<64x8xf32>
    %cst_93 = arith.constant dense<0.000000e+00> : vector<64x64xf32>
    %324 = tpu.matmul %313, %318, %cst_93 {dimension_numbers = #tpu.dot_dimension_numbers<[1], [1], [0], [0], [0, 0, 1, 0], [], []>} : vector<64x8xf32>, vector<64x8xf32>, vector<64x64xf32> -> vector<64x64xf32>
    %325 = arith.addf %324, %1 : vector<64x64xf32>
    %cst_94 = arith.constant dense<0xFF800000> : vector<64xf32>
    %326 = vector.multi_reduction <maximumf>, %325, %cst_94 [1] : vector<64x64xf32> to vector<64xf32>
    %327 = vector.shape_cast %326 : vector<64xf32> to vector<64x1xf32>
    %328 = vector.broadcast %327 : vector<64x1xf32> to vector<64x64xf32>
    %329 = arith.subf %325, %328 : vector<64x64xf32>
    %330 = math.exp %329 : vector<64x64xf32>
    %cst_95 = arith.constant dense<0.000000e+00> : vector<64xf32>
    %331 = vector.multi_reduction <add>, %330, %cst_95 [1] : vector<64x64xf32> to vector<64xf32>
    %332 = vector.shape_cast %331 : vector<64xf32> to vector<64x1xf32>
    %cst_96 = arith.constant 1.000000e+00 : f32
    %333 = vector.broadcast %cst_96 : f32 to vector<64x1xf32>
    %334 = arith.divf %333, %332 : vector<64x1xf32>
    %335 = vector.broadcast %334 : vector<64x1xf32> to vector<64x64xf32>
    %336 = arith.mulf %330, %335 : vector<64x64xf32>
    %cst_97 = arith.constant dense<0.000000e+00> : vector<64x8xf32>
    %337 = tpu.matmul %336, %323, %cst_97 {dimension_numbers = #tpu.dot_dimension_numbers<[1], [0], [0], [1], [0, 0, 1, 1], [], []>} : vector<64x64xf32>, vector<64x8xf32>, vector<64x8xf32> -> vector<64x8xf32>
    %338 = vector.extract_strided_slice %337 {offsets = [0, 0], sizes = [16, 8], strides = [1, 1]} : vector<64x8xf32> to vector<16x8xf32>
    %339 = vector.extract_strided_slice %337 {offsets = [16, 0], sizes = [16, 8], strides = [1, 1]} : vector<64x8xf32> to vector<16x8xf32>
    %340 = vector.extract_strided_slice %337 {offsets = [32, 0], sizes = [16, 8], strides = [1, 1]} : vector<64x8xf32> to vector<16x8xf32>
    %341 = vector.extract_strided_slice %337 {offsets = [48, 0], sizes = [16, 8], strides = [1, 1]} : vector<64x8xf32> to vector<16x8xf32>
    %342 = tpu.concatenate %338, %339, %340, %341 in 1 : vector<16x8xf32>, vector<16x8xf32>, vector<16x8xf32>, vector<16x8xf32> -> vector<16x32xf32>
    %c584 = arith.constant 584 : index
    %c0_98 = arith.constant 0 : index
    %343 = vector.load %arg1[%c584, %c0_98] : memref<1128x128xf32, #tpu.memory_space<vmem>>, vector<32x32xf32>
    %cst_99 = arith.constant dense<0.000000e+00> : vector<16x32xf32>
    %344 = tpu.matmul %342, %343, %cst_99 {dimension_numbers = #tpu.dot_dimension_numbers<[1], [0], [0], [1], [0, 0, 1, 1], [], []>} : vector<16x32xf32>, vector<32x32xf32>, vector<16x32xf32> -> vector<16x32xf32>
    %c616 = arith.constant 616 : index
    %c0_100 = arith.constant 0 : index
    %345 = vector.load %arg1[%c616, %c0_100] : memref<1128x128xf32, #tpu.memory_space<vmem>>, vector<1x32xf32>
    %346 = vector.broadcast %345 : vector<1x32xf32> to vector<16x32xf32>
    %347 = arith.addf %344, %346 : vector<16x32xf32>
    %348 = arith.addf %294, %347 : vector<16x32xf32>
    %c624 = arith.constant 624 : index
    %c0_101 = arith.constant 0 : index
    %349 = vector.load %arg1[%c624, %c0_101] : memref<1128x128xf32, #tpu.memory_space<vmem>>, vector<1x32xf32>
    %c632 = arith.constant 632 : index
    %c0_102 = arith.constant 0 : index
    %350 = vector.load %arg1[%c632, %c0_102] : memref<1128x128xf32, #tpu.memory_space<vmem>>, vector<1x32xf32>
    %cst_103 = arith.constant dense<0.000000e+00> : vector<16xf32>
    %351 = vector.multi_reduction <add>, %348, %cst_103 [1] : vector<16x32xf32> to vector<16xf32>
    %352 = vector.shape_cast %351 : vector<16xf32> to vector<16x1xf32>
    %cst_104 = arith.constant 3.200000e+01 : f32
    %353 = vector.broadcast %cst_104 : f32 to vector<16x1xf32>
    %354 = arith.divf %352, %353 : vector<16x1xf32>
    %355 = vector.broadcast %354 : vector<16x1xf32> to vector<16x32xf32>
    %356 = arith.subf %348, %355 : vector<16x32xf32>
    %357 = arith.mulf %356, %356 : vector<16x32xf32>
    %cst_105 = arith.constant dense<0.000000e+00> : vector<16xf32>
    %358 = vector.multi_reduction <add>, %357, %cst_105 [1] : vector<16x32xf32> to vector<16xf32>
    %359 = vector.shape_cast %358 : vector<16xf32> to vector<16x1xf32>
    %cst_106 = arith.constant 3.200000e+01 : f32
    %360 = vector.broadcast %cst_106 : f32 to vector<16x1xf32>
    %361 = arith.divf %359, %360 : vector<16x1xf32>
    %362 = vector.broadcast %354 : vector<16x1xf32> to vector<16x32xf32>
    %363 = arith.subf %348, %362 : vector<16x32xf32>
    %cst_107 = arith.constant 9.99999974E-6 : f32
    %364 = vector.broadcast %cst_107 : f32 to vector<16x1xf32>
    %365 = arith.addf %361, %364 : vector<16x1xf32>
    %366 = math.rsqrt %365 : vector<16x1xf32>
    %367 = vector.broadcast %366 : vector<16x1xf32> to vector<16x32xf32>
    %368 = arith.mulf %363, %367 : vector<16x32xf32>
    %369 = vector.broadcast %349 : vector<1x32xf32> to vector<16x32xf32>
    %370 = arith.mulf %368, %369 : vector<16x32xf32>
    %371 = vector.broadcast %350 : vector<1x32xf32> to vector<16x32xf32>
    %372 = arith.addf %370, %371 : vector<16x32xf32>
    %c640 = arith.constant 640 : index
    %c0_108 = arith.constant 0 : index
    %373 = vector.load %arg1[%c640, %c0_108] : memref<1128x128xf32, #tpu.memory_space<vmem>>, vector<32x64xf32>
    %cst_109 = arith.constant dense<0.000000e+00> : vector<16x64xf32>
    %374 = tpu.matmul %372, %373, %cst_109 {dimension_numbers = #tpu.dot_dimension_numbers<[1], [0], [0], [1], [0, 0, 1, 1], [], []>} : vector<16x32xf32>, vector<32x64xf32>, vector<16x64xf32> -> vector<16x64xf32>
    %c672 = arith.constant 672 : index
    %c0_110 = arith.constant 0 : index
    %375 = vector.load %arg1[%c672, %c0_110] : memref<1128x128xf32, #tpu.memory_space<vmem>>, vector<1x64xf32>
    %376 = vector.broadcast %375 : vector<1x64xf32> to vector<16x64xf32>
    %377 = arith.addf %374, %376 : vector<16x64xf32>
    %cst_111 = arith.constant 0.000000e+00 : f32
    %378 = vector.broadcast %cst_111 : f32 to vector<16x64xf32>
    %379 = arith.maximumf %377, %378 : vector<16x64xf32>
    %c680 = arith.constant 680 : index
    %c0_112 = arith.constant 0 : index
    %380 = vector.load %arg1[%c680, %c0_112] : memref<1128x128xf32, #tpu.memory_space<vmem>>, vector<64x32xf32>
    %cst_113 = arith.constant dense<0.000000e+00> : vector<16x32xf32>
    %381 = tpu.matmul %379, %380, %cst_113 {dimension_numbers = #tpu.dot_dimension_numbers<[1], [0], [0], [1], [0, 0, 1, 1], [], []>} : vector<16x64xf32>, vector<64x32xf32>, vector<16x32xf32> -> vector<16x32xf32>
    %c744 = arith.constant 744 : index
    %c0_114 = arith.constant 0 : index
    %382 = vector.load %arg1[%c744, %c0_114] : memref<1128x128xf32, #tpu.memory_space<vmem>>, vector<1x32xf32>
    %383 = vector.broadcast %382 : vector<1x32xf32> to vector<16x32xf32>
    %384 = arith.addf %381, %383 : vector<16x32xf32>
    %385 = arith.addf %372, %384 : vector<16x32xf32>
    %c752 = arith.constant 752 : index
    %c0_115 = arith.constant 0 : index
    %386 = vector.load %arg1[%c752, %c0_115] : memref<1128x128xf32, #tpu.memory_space<vmem>>, vector<1x32xf32>
    %c760 = arith.constant 760 : index
    %c0_116 = arith.constant 0 : index
    %387 = vector.load %arg1[%c760, %c0_116] : memref<1128x128xf32, #tpu.memory_space<vmem>>, vector<1x32xf32>
    %cst_117 = arith.constant dense<0.000000e+00> : vector<16xf32>
    %388 = vector.multi_reduction <add>, %385, %cst_117 [1] : vector<16x32xf32> to vector<16xf32>
    %389 = vector.shape_cast %388 : vector<16xf32> to vector<16x1xf32>
    %cst_118 = arith.constant 3.200000e+01 : f32
    %390 = vector.broadcast %cst_118 : f32 to vector<16x1xf32>
    %391 = arith.divf %389, %390 : vector<16x1xf32>
    %392 = vector.broadcast %391 : vector<16x1xf32> to vector<16x32xf32>
    %393 = arith.subf %385, %392 : vector<16x32xf32>
    %394 = arith.mulf %393, %393 : vector<16x32xf32>
    %cst_119 = arith.constant dense<0.000000e+00> : vector<16xf32>
    %395 = vector.multi_reduction <add>, %394, %cst_119 [1] : vector<16x32xf32> to vector<16xf32>
    %396 = vector.shape_cast %395 : vector<16xf32> to vector<16x1xf32>
    %cst_120 = arith.constant 3.200000e+01 : f32
    %397 = vector.broadcast %cst_120 : f32 to vector<16x1xf32>
    %398 = arith.divf %396, %397 : vector<16x1xf32>
    %399 = vector.broadcast %391 : vector<16x1xf32> to vector<16x32xf32>
    %400 = arith.subf %385, %399 : vector<16x32xf32>
    %cst_121 = arith.constant 9.99999974E-6 : f32
    %401 = vector.broadcast %cst_121 : f32 to vector<16x1xf32>
    %402 = arith.addf %398, %401 : vector<16x1xf32>
    %403 = math.rsqrt %402 : vector<16x1xf32>
    %404 = vector.broadcast %403 : vector<16x1xf32> to vector<16x32xf32>
    %405 = arith.mulf %400, %404 : vector<16x32xf32>
    %406 = vector.broadcast %386 : vector<1x32xf32> to vector<16x32xf32>
    %407 = arith.mulf %405, %406 : vector<16x32xf32>
    %408 = vector.broadcast %387 : vector<1x32xf32> to vector<16x32xf32>
    %409 = arith.addf %407, %408 : vector<16x32xf32>
    %c768 = arith.constant 768 : index
    %c0_122 = arith.constant 0 : index
    %410 = vector.load %arg1[%c768, %c0_122] : memref<1128x128xf32, #tpu.memory_space<vmem>>, vector<32x96xf32>
    %c800 = arith.constant 800 : index
    %c0_123 = arith.constant 0 : index
    %411 = vector.load %arg1[%c800, %c0_123] : memref<1128x128xf32, #tpu.memory_space<vmem>>, vector<1x96xf32>
    %cst_124 = arith.constant dense<0.000000e+00> : vector<16x96xf32>
    %412 = tpu.matmul %409, %410, %cst_124 {dimension_numbers = #tpu.dot_dimension_numbers<[1], [0], [0], [1], [0, 0, 1, 1], [], []>} : vector<16x32xf32>, vector<32x96xf32>, vector<16x96xf32> -> vector<16x96xf32>
    %413 = vector.broadcast %411 : vector<1x96xf32> to vector<16x96xf32>
    %414 = arith.addf %412, %413 : vector<16x96xf32>
    %415 = vector.extract_strided_slice %414 {offsets = [0, 0], sizes = [16, 32], strides = [1, 1]} : vector<16x96xf32> to vector<16x32xf32>
    %416 = vector.extract_strided_slice %414 {offsets = [0, 32], sizes = [16, 32], strides = [1, 1]} : vector<16x96xf32> to vector<16x32xf32>
    %417 = vector.extract_strided_slice %414 {offsets = [0, 64], sizes = [16, 32], strides = [1, 1]} : vector<16x96xf32> to vector<16x32xf32>
    %418 = vector.extract_strided_slice %415 {offsets = [0, 0], sizes = [16, 8], strides = [1, 1]} : vector<16x32xf32> to vector<16x8xf32>
    %419 = vector.extract_strided_slice %415 {offsets = [0, 8], sizes = [16, 8], strides = [1, 1]} : vector<16x32xf32> to vector<16x8xf32>
    %420 = vector.extract_strided_slice %415 {offsets = [0, 16], sizes = [16, 8], strides = [1, 1]} : vector<16x32xf32> to vector<16x8xf32>
    %421 = vector.extract_strided_slice %415 {offsets = [0, 24], sizes = [16, 8], strides = [1, 1]} : vector<16x32xf32> to vector<16x8xf32>
    %422 = tpu.concatenate %418, %419, %420, %421 in 0 : vector<16x8xf32>, vector<16x8xf32>, vector<16x8xf32>, vector<16x8xf32> -> vector<64x8xf32>
    %423 = vector.extract_strided_slice %416 {offsets = [0, 0], sizes = [16, 8], strides = [1, 1]} : vector<16x32xf32> to vector<16x8xf32>
    %424 = vector.extract_strided_slice %416 {offsets = [0, 8], sizes = [16, 8], strides = [1, 1]} : vector<16x32xf32> to vector<16x8xf32>
    %425 = vector.extract_strided_slice %416 {offsets = [0, 16], sizes = [16, 8], strides = [1, 1]} : vector<16x32xf32> to vector<16x8xf32>
    %426 = vector.extract_strided_slice %416 {offsets = [0, 24], sizes = [16, 8], strides = [1, 1]} : vector<16x32xf32> to vector<16x8xf32>
    %427 = tpu.concatenate %423, %424, %425, %426 in 0 : vector<16x8xf32>, vector<16x8xf32>, vector<16x8xf32>, vector<16x8xf32> -> vector<64x8xf32>
    %428 = vector.extract_strided_slice %417 {offsets = [0, 0], sizes = [16, 8], strides = [1, 1]} : vector<16x32xf32> to vector<16x8xf32>
    %429 = vector.extract_strided_slice %417 {offsets = [0, 8], sizes = [16, 8], strides = [1, 1]} : vector<16x32xf32> to vector<16x8xf32>
    %430 = vector.extract_strided_slice %417 {offsets = [0, 16], sizes = [16, 8], strides = [1, 1]} : vector<16x32xf32> to vector<16x8xf32>
    %431 = vector.extract_strided_slice %417 {offsets = [0, 24], sizes = [16, 8], strides = [1, 1]} : vector<16x32xf32> to vector<16x8xf32>
    %432 = tpu.concatenate %428, %429, %430, %431 in 0 : vector<16x8xf32>, vector<16x8xf32>, vector<16x8xf32>, vector<16x8xf32> -> vector<64x8xf32>
    %cst_125 = arith.constant dense<0.000000e+00> : vector<64x64xf32>
    %433 = tpu.matmul %422, %427, %cst_125 {dimension_numbers = #tpu.dot_dimension_numbers<[1], [1], [0], [0], [0, 0, 1, 0], [], []>} : vector<64x8xf32>, vector<64x8xf32>, vector<64x64xf32> -> vector<64x64xf32>
    %434 = arith.addf %433, %2 : vector<64x64xf32>
    %cst_126 = arith.constant dense<0xFF800000> : vector<64xf32>
    %435 = vector.multi_reduction <maximumf>, %434, %cst_126 [1] : vector<64x64xf32> to vector<64xf32>
    %436 = vector.shape_cast %435 : vector<64xf32> to vector<64x1xf32>
    %437 = vector.broadcast %436 : vector<64x1xf32> to vector<64x64xf32>
    %438 = arith.subf %434, %437 : vector<64x64xf32>
    %439 = math.exp %438 : vector<64x64xf32>
    %cst_127 = arith.constant dense<0.000000e+00> : vector<64xf32>
    %440 = vector.multi_reduction <add>, %439, %cst_127 [1] : vector<64x64xf32> to vector<64xf32>
    %441 = vector.shape_cast %440 : vector<64xf32> to vector<64x1xf32>
    %cst_128 = arith.constant 1.000000e+00 : f32
    %442 = vector.broadcast %cst_128 : f32 to vector<64x1xf32>
    %443 = arith.divf %442, %441 : vector<64x1xf32>
    %444 = vector.broadcast %443 : vector<64x1xf32> to vector<64x64xf32>
    %445 = arith.mulf %439, %444 : vector<64x64xf32>
    %cst_129 = arith.constant dense<0.000000e+00> : vector<64x8xf32>
    %446 = tpu.matmul %445, %432, %cst_129 {dimension_numbers = #tpu.dot_dimension_numbers<[1], [0], [0], [1], [0, 0, 1, 1], [], []>} : vector<64x64xf32>, vector<64x8xf32>, vector<64x8xf32> -> vector<64x8xf32>
    %447 = vector.extract_strided_slice %446 {offsets = [0, 0], sizes = [16, 8], strides = [1, 1]} : vector<64x8xf32> to vector<16x8xf32>
    %448 = vector.extract_strided_slice %446 {offsets = [16, 0], sizes = [16, 8], strides = [1, 1]} : vector<64x8xf32> to vector<16x8xf32>
    %449 = vector.extract_strided_slice %446 {offsets = [32, 0], sizes = [16, 8], strides = [1, 1]} : vector<64x8xf32> to vector<16x8xf32>
    %450 = vector.extract_strided_slice %446 {offsets = [48, 0], sizes = [16, 8], strides = [1, 1]} : vector<64x8xf32> to vector<16x8xf32>
    %451 = tpu.concatenate %447, %448, %449, %450 in 1 : vector<16x8xf32>, vector<16x8xf32>, vector<16x8xf32>, vector<16x8xf32> -> vector<16x32xf32>
    %c808 = arith.constant 808 : index
    %c0_130 = arith.constant 0 : index
    %452 = vector.load %arg1[%c808, %c0_130] : memref<1128x128xf32, #tpu.memory_space<vmem>>, vector<32x32xf32>
    %cst_131 = arith.constant dense<0.000000e+00> : vector<16x32xf32>
    %453 = tpu.matmul %451, %452, %cst_131 {dimension_numbers = #tpu.dot_dimension_numbers<[1], [0], [0], [1], [0, 0, 1, 1], [], []>} : vector<16x32xf32>, vector<32x32xf32>, vector<16x32xf32> -> vector<16x32xf32>
    %c840 = arith.constant 840 : index
    %c0_132 = arith.constant 0 : index
    %454 = vector.load %arg1[%c840, %c0_132] : memref<1128x128xf32, #tpu.memory_space<vmem>>, vector<1x32xf32>
    %455 = vector.broadcast %454 : vector<1x32xf32> to vector<16x32xf32>
    %456 = arith.addf %453, %455 : vector<16x32xf32>
    %457 = arith.addf %409, %456 : vector<16x32xf32>
    %c848 = arith.constant 848 : index
    %c0_133 = arith.constant 0 : index
    %458 = vector.load %arg1[%c848, %c0_133] : memref<1128x128xf32, #tpu.memory_space<vmem>>, vector<1x32xf32>
    %c856 = arith.constant 856 : index
    %c0_134 = arith.constant 0 : index
    %459 = vector.load %arg1[%c856, %c0_134] : memref<1128x128xf32, #tpu.memory_space<vmem>>, vector<1x32xf32>
    %cst_135 = arith.constant dense<0.000000e+00> : vector<16xf32>
    %460 = vector.multi_reduction <add>, %457, %cst_135 [1] : vector<16x32xf32> to vector<16xf32>
    %461 = vector.shape_cast %460 : vector<16xf32> to vector<16x1xf32>
    %cst_136 = arith.constant 3.200000e+01 : f32
    %462 = vector.broadcast %cst_136 : f32 to vector<16x1xf32>
    %463 = arith.divf %461, %462 : vector<16x1xf32>
    %464 = vector.broadcast %463 : vector<16x1xf32> to vector<16x32xf32>
    %465 = arith.subf %457, %464 : vector<16x32xf32>
    %466 = arith.mulf %465, %465 : vector<16x32xf32>
    %cst_137 = arith.constant dense<0.000000e+00> : vector<16xf32>
    %467 = vector.multi_reduction <add>, %466, %cst_137 [1] : vector<16x32xf32> to vector<16xf32>
    %468 = vector.shape_cast %467 : vector<16xf32> to vector<16x1xf32>
    %cst_138 = arith.constant 3.200000e+01 : f32
    %469 = vector.broadcast %cst_138 : f32 to vector<16x1xf32>
    %470 = arith.divf %468, %469 : vector<16x1xf32>
    %471 = vector.broadcast %463 : vector<16x1xf32> to vector<16x32xf32>
    %472 = arith.subf %457, %471 : vector<16x32xf32>
    %cst_139 = arith.constant 9.99999974E-6 : f32
    %473 = vector.broadcast %cst_139 : f32 to vector<16x1xf32>
    %474 = arith.addf %470, %473 : vector<16x1xf32>
    %475 = math.rsqrt %474 : vector<16x1xf32>
    %476 = vector.broadcast %475 : vector<16x1xf32> to vector<16x32xf32>
    %477 = arith.mulf %472, %476 : vector<16x32xf32>
    %478 = vector.broadcast %458 : vector<1x32xf32> to vector<16x32xf32>
    %479 = arith.mulf %477, %478 : vector<16x32xf32>
    %480 = vector.broadcast %459 : vector<1x32xf32> to vector<16x32xf32>
    %481 = arith.addf %479, %480 : vector<16x32xf32>
    %c864 = arith.constant 864 : index
    %c0_140 = arith.constant 0 : index
    %482 = vector.load %arg1[%c864, %c0_140] : memref<1128x128xf32, #tpu.memory_space<vmem>>, vector<32x96xf32>
    %c896 = arith.constant 896 : index
    %c0_141 = arith.constant 0 : index
    %483 = vector.load %arg1[%c896, %c0_141] : memref<1128x128xf32, #tpu.memory_space<vmem>>, vector<1x96xf32>
    %484 = vector.extract_strided_slice %482 {offsets = [0, 0], sizes = [32, 32], strides = [1, 1]} : vector<32x96xf32> to vector<32x32xf32>
    %cst_142 = arith.constant dense<0.000000e+00> : vector<16x32xf32>
    %485 = tpu.matmul %481, %484, %cst_142 {dimension_numbers = #tpu.dot_dimension_numbers<[1], [0], [0], [1], [0, 0, 1, 1], [], []>} : vector<16x32xf32>, vector<32x32xf32>, vector<16x32xf32> -> vector<16x32xf32>
    %486 = vector.extract_strided_slice %483 {offsets = [0, 0], sizes = [1, 32], strides = [1, 1]} : vector<1x96xf32> to vector<1x32xf32>
    %487 = vector.broadcast %486 : vector<1x32xf32> to vector<16x32xf32>
    %488 = arith.addf %485, %487 : vector<16x32xf32>
    %489 = vector.extract_strided_slice %482 {offsets = [0, 32], sizes = [32, 64], strides = [1, 1]} : vector<32x96xf32> to vector<32x64xf32>
    %cst_143 = arith.constant dense<0.000000e+00> : vector<16x64xf32>
    %490 = tpu.matmul %221, %489, %cst_143 {dimension_numbers = #tpu.dot_dimension_numbers<[1], [0], [0], [1], [0, 0, 1, 1], [], []>} : vector<16x32xf32>, vector<32x64xf32>, vector<16x64xf32> -> vector<16x64xf32>
    %491 = vector.extract_strided_slice %483 {offsets = [0, 32], sizes = [1, 64], strides = [1, 1]} : vector<1x96xf32> to vector<1x64xf32>
    %492 = vector.broadcast %491 : vector<1x64xf32> to vector<16x64xf32>
    %493 = arith.addf %490, %492 : vector<16x64xf32>
    %494 = vector.extract_strided_slice %493 {offsets = [0, 0], sizes = [16, 32], strides = [1, 1]} : vector<16x64xf32> to vector<16x32xf32>
    %495 = vector.extract_strided_slice %493 {offsets = [0, 32], sizes = [16, 32], strides = [1, 1]} : vector<16x64xf32> to vector<16x32xf32>
    %496 = vector.extract_strided_slice %488 {offsets = [0, 0], sizes = [16, 8], strides = [1, 1]} : vector<16x32xf32> to vector<16x8xf32>
    %497 = vector.extract_strided_slice %488 {offsets = [0, 8], sizes = [16, 8], strides = [1, 1]} : vector<16x32xf32> to vector<16x8xf32>
    %498 = vector.extract_strided_slice %488 {offsets = [0, 16], sizes = [16, 8], strides = [1, 1]} : vector<16x32xf32> to vector<16x8xf32>
    %499 = vector.extract_strided_slice %488 {offsets = [0, 24], sizes = [16, 8], strides = [1, 1]} : vector<16x32xf32> to vector<16x8xf32>
    %500 = tpu.concatenate %496, %497, %498, %499 in 0 : vector<16x8xf32>, vector<16x8xf32>, vector<16x8xf32>, vector<16x8xf32> -> vector<64x8xf32>
    %501 = vector.extract_strided_slice %494 {offsets = [0, 0], sizes = [16, 8], strides = [1, 1]} : vector<16x32xf32> to vector<16x8xf32>
    %502 = vector.extract_strided_slice %494 {offsets = [0, 8], sizes = [16, 8], strides = [1, 1]} : vector<16x32xf32> to vector<16x8xf32>
    %503 = vector.extract_strided_slice %494 {offsets = [0, 16], sizes = [16, 8], strides = [1, 1]} : vector<16x32xf32> to vector<16x8xf32>
    %504 = vector.extract_strided_slice %494 {offsets = [0, 24], sizes = [16, 8], strides = [1, 1]} : vector<16x32xf32> to vector<16x8xf32>
    %505 = tpu.concatenate %501, %502, %503, %504 in 0 : vector<16x8xf32>, vector<16x8xf32>, vector<16x8xf32>, vector<16x8xf32> -> vector<64x8xf32>
    %506 = vector.extract_strided_slice %495 {offsets = [0, 0], sizes = [16, 8], strides = [1, 1]} : vector<16x32xf32> to vector<16x8xf32>
    %507 = vector.extract_strided_slice %495 {offsets = [0, 8], sizes = [16, 8], strides = [1, 1]} : vector<16x32xf32> to vector<16x8xf32>
    %508 = vector.extract_strided_slice %495 {offsets = [0, 16], sizes = [16, 8], strides = [1, 1]} : vector<16x32xf32> to vector<16x8xf32>
    %509 = vector.extract_strided_slice %495 {offsets = [0, 24], sizes = [16, 8], strides = [1, 1]} : vector<16x32xf32> to vector<16x8xf32>
    %510 = tpu.concatenate %506, %507, %508, %509 in 0 : vector<16x8xf32>, vector<16x8xf32>, vector<16x8xf32>, vector<16x8xf32> -> vector<64x8xf32>
    %cst_144 = arith.constant dense<0.000000e+00> : vector<64x64xf32>
    %511 = tpu.matmul %500, %505, %cst_144 {dimension_numbers = #tpu.dot_dimension_numbers<[1], [1], [0], [0], [0, 0, 1, 0], [], []>} : vector<64x8xf32>, vector<64x8xf32>, vector<64x64xf32> -> vector<64x64xf32>
    %512 = arith.addf %511, %1 : vector<64x64xf32>
    %cst_145 = arith.constant dense<0xFF800000> : vector<64xf32>
    %513 = vector.multi_reduction <maximumf>, %512, %cst_145 [1] : vector<64x64xf32> to vector<64xf32>
    %514 = vector.shape_cast %513 : vector<64xf32> to vector<64x1xf32>
    %515 = vector.broadcast %514 : vector<64x1xf32> to vector<64x64xf32>
    %516 = arith.subf %512, %515 : vector<64x64xf32>
    %517 = math.exp %516 : vector<64x64xf32>
    %cst_146 = arith.constant dense<0.000000e+00> : vector<64xf32>
    %518 = vector.multi_reduction <add>, %517, %cst_146 [1] : vector<64x64xf32> to vector<64xf32>
    %519 = vector.shape_cast %518 : vector<64xf32> to vector<64x1xf32>
    %cst_147 = arith.constant 1.000000e+00 : f32
    %520 = vector.broadcast %cst_147 : f32 to vector<64x1xf32>
    %521 = arith.divf %520, %519 : vector<64x1xf32>
    %522 = vector.broadcast %521 : vector<64x1xf32> to vector<64x64xf32>
    %523 = arith.mulf %517, %522 : vector<64x64xf32>
    %cst_148 = arith.constant dense<0.000000e+00> : vector<64x8xf32>
    %524 = tpu.matmul %523, %510, %cst_148 {dimension_numbers = #tpu.dot_dimension_numbers<[1], [0], [0], [1], [0, 0, 1, 1], [], []>} : vector<64x64xf32>, vector<64x8xf32>, vector<64x8xf32> -> vector<64x8xf32>
    %525 = vector.extract_strided_slice %524 {offsets = [0, 0], sizes = [16, 8], strides = [1, 1]} : vector<64x8xf32> to vector<16x8xf32>
    %526 = vector.extract_strided_slice %524 {offsets = [16, 0], sizes = [16, 8], strides = [1, 1]} : vector<64x8xf32> to vector<16x8xf32>
    %527 = vector.extract_strided_slice %524 {offsets = [32, 0], sizes = [16, 8], strides = [1, 1]} : vector<64x8xf32> to vector<16x8xf32>
    %528 = vector.extract_strided_slice %524 {offsets = [48, 0], sizes = [16, 8], strides = [1, 1]} : vector<64x8xf32> to vector<16x8xf32>
    %529 = tpu.concatenate %525, %526, %527, %528 in 1 : vector<16x8xf32>, vector<16x8xf32>, vector<16x8xf32>, vector<16x8xf32> -> vector<16x32xf32>
    %c904 = arith.constant 904 : index
    %c0_149 = arith.constant 0 : index
    %530 = vector.load %arg1[%c904, %c0_149] : memref<1128x128xf32, #tpu.memory_space<vmem>>, vector<32x32xf32>
    %cst_150 = arith.constant dense<0.000000e+00> : vector<16x32xf32>
    %531 = tpu.matmul %529, %530, %cst_150 {dimension_numbers = #tpu.dot_dimension_numbers<[1], [0], [0], [1], [0, 0, 1, 1], [], []>} : vector<16x32xf32>, vector<32x32xf32>, vector<16x32xf32> -> vector<16x32xf32>
    %c936 = arith.constant 936 : index
    %c0_151 = arith.constant 0 : index
    %532 = vector.load %arg1[%c936, %c0_151] : memref<1128x128xf32, #tpu.memory_space<vmem>>, vector<1x32xf32>
    %533 = vector.broadcast %532 : vector<1x32xf32> to vector<16x32xf32>
    %534 = arith.addf %531, %533 : vector<16x32xf32>
    %535 = arith.addf %481, %534 : vector<16x32xf32>
    %c944 = arith.constant 944 : index
    %c0_152 = arith.constant 0 : index
    %536 = vector.load %arg1[%c944, %c0_152] : memref<1128x128xf32, #tpu.memory_space<vmem>>, vector<1x32xf32>
    %c952 = arith.constant 952 : index
    %c0_153 = arith.constant 0 : index
    %537 = vector.load %arg1[%c952, %c0_153] : memref<1128x128xf32, #tpu.memory_space<vmem>>, vector<1x32xf32>
    %cst_154 = arith.constant dense<0.000000e+00> : vector<16xf32>
    %538 = vector.multi_reduction <add>, %535, %cst_154 [1] : vector<16x32xf32> to vector<16xf32>
    %539 = vector.shape_cast %538 : vector<16xf32> to vector<16x1xf32>
    %cst_155 = arith.constant 3.200000e+01 : f32
    %540 = vector.broadcast %cst_155 : f32 to vector<16x1xf32>
    %541 = arith.divf %539, %540 : vector<16x1xf32>
    %542 = vector.broadcast %541 : vector<16x1xf32> to vector<16x32xf32>
    %543 = arith.subf %535, %542 : vector<16x32xf32>
    %544 = arith.mulf %543, %543 : vector<16x32xf32>
    %cst_156 = arith.constant dense<0.000000e+00> : vector<16xf32>
    %545 = vector.multi_reduction <add>, %544, %cst_156 [1] : vector<16x32xf32> to vector<16xf32>
    %546 = vector.shape_cast %545 : vector<16xf32> to vector<16x1xf32>
    %cst_157 = arith.constant 3.200000e+01 : f32
    %547 = vector.broadcast %cst_157 : f32 to vector<16x1xf32>
    %548 = arith.divf %546, %547 : vector<16x1xf32>
    %549 = vector.broadcast %541 : vector<16x1xf32> to vector<16x32xf32>
    %550 = arith.subf %535, %549 : vector<16x32xf32>
    %cst_158 = arith.constant 9.99999974E-6 : f32
    %551 = vector.broadcast %cst_158 : f32 to vector<16x1xf32>
    %552 = arith.addf %548, %551 : vector<16x1xf32>
    %553 = math.rsqrt %552 : vector<16x1xf32>
    %554 = vector.broadcast %553 : vector<16x1xf32> to vector<16x32xf32>
    %555 = arith.mulf %550, %554 : vector<16x32xf32>
    %556 = vector.broadcast %536 : vector<1x32xf32> to vector<16x32xf32>
    %557 = arith.mulf %555, %556 : vector<16x32xf32>
    %558 = vector.broadcast %537 : vector<1x32xf32> to vector<16x32xf32>
    %559 = arith.addf %557, %558 : vector<16x32xf32>
    %c960 = arith.constant 960 : index
    %c0_159 = arith.constant 0 : index
    %560 = vector.load %arg1[%c960, %c0_159] : memref<1128x128xf32, #tpu.memory_space<vmem>>, vector<32x64xf32>
    %cst_160 = arith.constant dense<0.000000e+00> : vector<16x64xf32>
    %561 = tpu.matmul %559, %560, %cst_160 {dimension_numbers = #tpu.dot_dimension_numbers<[1], [0], [0], [1], [0, 0, 1, 1], [], []>} : vector<16x32xf32>, vector<32x64xf32>, vector<16x64xf32> -> vector<16x64xf32>
    %c992 = arith.constant 992 : index
    %c0_161 = arith.constant 0 : index
    %562 = vector.load %arg1[%c992, %c0_161] : memref<1128x128xf32, #tpu.memory_space<vmem>>, vector<1x64xf32>
    %563 = vector.broadcast %562 : vector<1x64xf32> to vector<16x64xf32>
    %564 = arith.addf %561, %563 : vector<16x64xf32>
    %cst_162 = arith.constant 0.000000e+00 : f32
    %565 = vector.broadcast %cst_162 : f32 to vector<16x64xf32>
    %566 = arith.maximumf %564, %565 : vector<16x64xf32>
    %c1000 = arith.constant 1000 : index
    %c0_163 = arith.constant 0 : index
    %567 = vector.load %arg1[%c1000, %c0_163] : memref<1128x128xf32, #tpu.memory_space<vmem>>, vector<64x32xf32>
    %cst_164 = arith.constant dense<0.000000e+00> : vector<16x32xf32>
    %568 = tpu.matmul %566, %567, %cst_164 {dimension_numbers = #tpu.dot_dimension_numbers<[1], [0], [0], [1], [0, 0, 1, 1], [], []>} : vector<16x64xf32>, vector<64x32xf32>, vector<16x32xf32> -> vector<16x32xf32>
    %c1064 = arith.constant 1064 : index
    %c0_165 = arith.constant 0 : index
    %569 = vector.load %arg1[%c1064, %c0_165] : memref<1128x128xf32, #tpu.memory_space<vmem>>, vector<1x32xf32>
    %570 = vector.broadcast %569 : vector<1x32xf32> to vector<16x32xf32>
    %571 = arith.addf %568, %570 : vector<16x32xf32>
    %572 = arith.addf %559, %571 : vector<16x32xf32>
    %c1072 = arith.constant 1072 : index
    %c0_166 = arith.constant 0 : index
    %573 = vector.load %arg1[%c1072, %c0_166] : memref<1128x128xf32, #tpu.memory_space<vmem>>, vector<1x32xf32>
    %c1080 = arith.constant 1080 : index
    %c0_167 = arith.constant 0 : index
    %574 = vector.load %arg1[%c1080, %c0_167] : memref<1128x128xf32, #tpu.memory_space<vmem>>, vector<1x32xf32>
    %cst_168 = arith.constant dense<0.000000e+00> : vector<16xf32>
    %575 = vector.multi_reduction <add>, %572, %cst_168 [1] : vector<16x32xf32> to vector<16xf32>
    %576 = vector.shape_cast %575 : vector<16xf32> to vector<16x1xf32>
    %cst_169 = arith.constant 3.200000e+01 : f32
    %577 = vector.broadcast %cst_169 : f32 to vector<16x1xf32>
    %578 = arith.divf %576, %577 : vector<16x1xf32>
    %579 = vector.broadcast %578 : vector<16x1xf32> to vector<16x32xf32>
    %580 = arith.subf %572, %579 : vector<16x32xf32>
    %581 = arith.mulf %580, %580 : vector<16x32xf32>
    %cst_170 = arith.constant dense<0.000000e+00> : vector<16xf32>
    %582 = vector.multi_reduction <add>, %581, %cst_170 [1] : vector<16x32xf32> to vector<16xf32>
    %583 = vector.shape_cast %582 : vector<16xf32> to vector<16x1xf32>
    %cst_171 = arith.constant 3.200000e+01 : f32
    %584 = vector.broadcast %cst_171 : f32 to vector<16x1xf32>
    %585 = arith.divf %583, %584 : vector<16x1xf32>
    %586 = vector.broadcast %578 : vector<16x1xf32> to vector<16x32xf32>
    %587 = arith.subf %572, %586 : vector<16x32xf32>
    %cst_172 = arith.constant 9.99999974E-6 : f32
    %588 = vector.broadcast %cst_172 : f32 to vector<16x1xf32>
    %589 = arith.addf %585, %588 : vector<16x1xf32>
    %590 = math.rsqrt %589 : vector<16x1xf32>
    %591 = vector.broadcast %590 : vector<16x1xf32> to vector<16x32xf32>
    %592 = arith.mulf %587, %591 : vector<16x32xf32>
    %593 = vector.broadcast %573 : vector<1x32xf32> to vector<16x32xf32>
    %594 = arith.mulf %592, %593 : vector<16x32xf32>
    %595 = vector.broadcast %574 : vector<1x32xf32> to vector<16x32xf32>
    %596 = arith.addf %594, %595 : vector<16x32xf32>
    %c1088 = arith.constant 1088 : index
    %c0_173 = arith.constant 0 : index
    %597 = vector.load %arg1[%c1088, %c0_173] : memref<1128x128xf32, #tpu.memory_space<vmem>>, vector<32x128xf32>
    %cst_174 = arith.constant dense<0.000000e+00> : vector<16x128xf32>
    %598 = tpu.matmul %596, %597, %cst_174 {dimension_numbers = #tpu.dot_dimension_numbers<[1], [0], [0], [1], [0, 0, 1, 1], [], []>} : vector<16x32xf32>, vector<32x128xf32>, vector<16x128xf32> -> vector<16x128xf32>
    %c1120 = arith.constant 1120 : index
    %c0_175 = arith.constant 0 : index
    %599 = vector.load %arg1[%c1120, %c0_175] : memref<1128x128xf32, #tpu.memory_space<vmem>>, vector<1x128xf32>
    %600 = vector.broadcast %599 : vector<1x128xf32> to vector<16x128xf32>
    %601 = arith.addf %598, %600 : vector<16x128xf32>
    %c0_176 = arith.constant 0 : index
    %c0_177 = arith.constant 0 : index
    %602 = vector.load %arg2[%c0_176, %c0_177] : memref<16x128xf32, #tpu.memory_space<vmem>>, vector<16x128xf32>
    tpu.vector_store %arg2[%c0_176, %c0_177], %601 {strides = array<i32>} : memref<16x128xf32, #tpu.memory_space<vmem>>, vector<16x128xf32>,
    return
  }
}

</mosaic_0001>

<bundles_post_ra>
// kernel: tile.30
= control target key start
LH: loop header
LB: loop body
LE: loop exit
PB: predicated region body
PF: predicated region fallthrough
CT: control target
= control target key end

     0   :  { %s504_s0 = inlined_call_operand.vmem [shape: f32[16,16], index: 0, kind: input, shape index: {}]   ;;  %s505_s1 = inlined_call_operand.vmem [shape: f32[4,16,4,16], index: 1, kind: output, shape index: {}]  }
   0x1   :  { %v4_v0 = vld [vmem:[%s504_s0] ss:$0 sm:$0xff]  ;;  %v179_v1 = vld [vmem:[%s504_s0 + $0x1] ss:$0 sm:$0xff]  ;;  %v184_v2 = vld [vmem:[%s504_s0 + $0x2] ss:$0 sm:$0xff] }
   0x2   :  { %5 = vst [vmem:[%s505_s1] sm:$0xf] %v4_v0  ;;  %176 = vst [vmem:[%s505_s1 + $0x40] sm:$0xf] %v4_v0  ;;  %v189_v3 = vld [vmem:[%s504_s0 + $0x3] ss:$0 sm:$0xff] }
   0x3   :  { %177 = vst [vmem:[%s505_s1 + $0x80] sm:$0xf] %v4_v0  ;;  %178 = vst [vmem:[%s505_s1 + $0xc0] sm:$0xf] %v4_v0  ;;  %v194_v4 = vld [vmem:[%s504_s0 + $0x4] ss:$0 sm:$0xff] }
   0x4   :  { %180 = vst [vmem:[%s505_s1 + $0x4] sm:$0xf] %v179_v1  ;;  %181 = vst [vmem:[%s505_s1 + $0x44] sm:$0xf] %v179_v1  ;;  %v199_v5 = vld [vmem:[%s504_s0 + $0x5] ss:$0 sm:$0xff] }
   0x5   :  { %182 = vst [vmem:[%s505_s1 + $0x84] sm:$0xf] %v179_v1  ;;  %183 = vst [vmem:[%s505_s1 + $0xc4] sm:$0xf] %v179_v1  ;;  %v204_v6 = vld [vmem:[%s504_s0 + $0x6] ss:$0 sm:$0xff] }
   0x6   :  { %185 = vst [vmem:[%s505_s1 + $0x8] sm:$0xf] %v184_v2  ;;  %186 = vst [vmem:[%s505_s1 + $0x48] sm:$0xf] %v184_v2  ;;  %v209_v7 = vld [vmem:[%s504_s0 + $0x7] ss:$0 sm:$0xff] }
   0x7   :  { %187 = vst [vmem:[%s505_s1 + $0x88] sm:$0xf] %v184_v2  ;;  %188 = vst [vmem:[%s505_s1 + $0xc8] sm:$0xf] %v184_v2  ;;  %v214_v8 = vld [vmem:[%s504_s0 + $0x8] ss:$0 sm:$0xff] }
   0x8   :  { %190 = vst [vmem:[%s505_s1 + $0xc] sm:$0xf] %v189_v3  ;;  %191 = vst [vmem:[%s505_s1 + $0x4c] sm:$0xf] %v189_v3  ;;  %v219_v9 = vld [vmem:[%s504_s0 + $0x9] ss:$0 sm:$0xff] }
   0x9   :  { %192 = vst [vmem:[%s505_s1 + $0x8c] sm:$0xf] %v189_v3  ;;  %193 = vst [vmem:[%s505_s1 + $0xcc] sm:$0xf] %v189_v3  ;;  %v224_v10 = vld [vmem:[%s504_s0 + $0xa] ss:$0 sm:$0xff] }
   0xa   :  { %195 = vst [vmem:[%s505_s1 + $0x10] sm:$0xf] %v194_v4  ;;  %196 = vst [vmem:[%s505_s1 + $0x50] sm:$0xf] %v194_v4  ;;  %v229_v11 = vld [vmem:[%s504_s0 + $0xb] ss:$0 sm:$0xff] }
   0xb   :  { %197 = vst [vmem:[%s505_s1 + $0x90] sm:$0xf] %v194_v4  ;;  %198 = vst [vmem:[%s505_s1 + $0xd0] sm:$0xf] %v194_v4  ;;  %v234_v12 = vld [vmem:[%s504_s0 + $0xc] ss:$0 sm:$0xff] }
   0xc   :  { %200 = vst [vmem:[%s505_s1 + $0x14] sm:$0xf] %v199_v5  ;;  %201 = vst [vmem:[%s505_s1 + $0x54] sm:$0xf] %v199_v5  ;;  %v239_v13 = vld [vmem:[%s504_s0 + $0xd] ss:$0 sm:$0xff] }
   0xd   :  { %202 = vst [vmem:[%s505_s1 + $0x94] sm:$0xf] %v199_v5  ;;  %203 = vst [vmem:[%s505_s1 + $0xd4] sm:$0xf] %v199_v5  ;;  %v244_v14 = vld [vmem:[%s504_s0 + $0xe] ss:$0 sm:$0xff] }
   0xe   :  { %205 = vst [vmem:[%s505_s1 + $0x18] sm:$0xf] %v204_v6  ;;  %206 = vst [vmem:[%s505_s1 + $0x58] sm:$0xf] %v204_v6  ;;  %v249_v15 = vld [vmem:[%s504_s0 + $0xf] ss:$0 sm:$0xff] }
   0xf   :  { %207 = vst [vmem:[%s505_s1 + $0x98] sm:$0xf] %v204_v6  ;;  %208 = vst [vmem:[%s505_s1 + $0xd8] sm:$0xf] %v204_v6 }
  0x10   :  { %210 = vst [vmem:[%s505_s1 + $0x1c] sm:$0xf] %v209_v7  ;;  %211 = vst [vmem:[%s505_s1 + $0x5c] sm:$0xf] %v209_v7 }
  0x11   :  { %212 = vst [vmem:[%s505_s1 + $0x9c] sm:$0xf] %v209_v7  ;;  %213 = vst [vmem:[%s505_s1 + $0xdc] sm:$0xf] %v209_v7 }
  0x12   :  { %215 = vst [vmem:[%s505_s1 + $0x20] sm:$0xf] %v214_v8  ;;  %216 = vst [vmem:[%s505_s1 + $0x60] sm:$0xf] %v214_v8 }
  0x13   :  { %217 = vst [vmem:[%s505_s1 + $0xa0] sm:$0xf] %v214_v8  ;;  %218 = vst [vmem:[%s505_s1 + $0xe0] sm:$0xf] %v214_v8 }
  0x14   :  { %220 = vst [vmem:[%s505_s1 + $0x24] sm:$0xf] %v219_v9  ;;  %221 = vst [vmem:[%s505_s1 + $0x64] sm:$0xf] %v219_v9 }
  0x15   :  { %222 = vst [vmem:[%s505_s1 + $0xa4] sm:$0xf] %v219_v9  ;;  %223 = vst [vmem:[%s505_s1 + $0xe4] sm:$0xf] %v219_v9 }
  0x16   :  { %225 = vst [vmem:[%s505_s1 + $0x28] sm:$0xf] %v224_v10  ;;  %226 = vst [vmem:[%s505_s1 + $0x68] sm:$0xf] %v224_v10 }
  0x17   :  { %227 = vst [vmem:[%s505_s1 + $0xa8] sm:$0xf] %v224_v10  ;;  %228 = vst [vmem:[%s505_s1 + $0xe8] sm:$0xf] %v224_v10 }
  0x18   :  { %230 = vst [vmem:[%s505_s1 + $0x2c] sm:$0xf] %v229_v11  ;;  %231 = vst [vmem:[%s505_s1 + $0x6c] sm:$0xf] %v229_v11 }
  0x19   :  { %232 = vst [vmem:[%s505_s1 + $0xac] sm:$0xf] %v229_v11  ;;  %233 = vst [vmem:[%s505_s1 + $0xec] sm:$0xf] %v229_v11 }
  0x1a   :  { %235 = vst [vmem:[%s505_s1 + $0x30] sm:$0xf] %v234_v12  ;;  %236 = vst [vmem:[%s505_s1 + $0x70] sm:$0xf] %v234_v12 }
  0x1b   :  { %237 = vst [vmem:[%s505_s1 + $0xb0] sm:$0xf] %v234_v12  ;;  %238 = vst [vmem:[%s505_s1 + $0xf0] sm:$0xf] %v234_v12 }
  0x1c   :  { %240 = vst [vmem:[%s505_s1 + $0x34] sm:$0xf] %v239_v13  ;;  %241 = vst [vmem:[%s505_s1 + $0x74] sm:$0xf] %v239_v13 }
  0x1d   :  { %242 = vst [vmem:[%s505_s1 + $0xb4] sm:$0xf] %v239_v13  ;;  %243 = vst [vmem:[%s505_s1 + $0xf4] sm:$0xf] %v239_v13 }
  0x1e   :  { %245 = vst [vmem:[%s505_s1 + $0x38] sm:$0xf] %v244_v14  ;;  %246 = vst [vmem:[%s505_s1 + $0x78] sm:$0xf] %v244_v14 }
  0x1f   :  { %247 = vst [vmem:[%s505_s1 + $0xb8] sm:$0xf] %v244_v14  ;;  %248 = vst [vmem:[%s505_s1 + $0xf8] sm:$0xf] %v244_v14 }
  0x20   :  { %250 = vst [vmem:[%s505_s1 + $0x3c] sm:$0xf] %v249_v15  ;;  %251 = vst [vmem:[%s505_s1 + $0x7c] sm:$0xf] %v249_v15 }
  0x21   :  { %252 = vst [vmem:[%s505_s1 + $0xbc] sm:$0xf] %v249_v15  ;;  %253 = vst [vmem:[%s505_s1 + $0xfc] sm:$0xf] %v249_v15 }

// kernel: eq.64
= control target key start
LH: loop header
LB: loop body
LE: loop exit
PB: predicated region body
PF: predicated region fallthrough
CT: control target
= control target key end

     0   :  { %vm7_vm0 = vcmask 130048   ;;  %s37_s8 = smov 16   ;;  %s38_s9 = smov 32   ;;  %vm13_vm1 = vcmask 523648   ;;  %vm19_vm2 = vcmask 392448   ;;  %vm25_vm3 = vcmask 261248   ;;  %s55_s0 = inlined_call_operand.vmem [shape: s32[4,16], index: 0, kind: input, shape index: {}]   ;;  %s56_s1 = inlined_call_operand.vmem [shape: s32[64], index: 1, kind: output, shape index: {}]  }
   0x1   :  { %v4_v0 = vld [vmem:[%s55_s0] sm:$0xf]  ;;  %s36_s0 = smov 48  }
   0x2   :  { %5 = vst [vmem:[#allocation1] sm:$0xf] %v4_v0 }
   0x9   :  { %v10_v1 = vld [vmem:[#allocation1 + $0x3] sm:$0x1]   ;;  %v22_v2 = vld [vmem:[#allocation1 + $0x1] sm:$0x1]   ;;  %v6_v3 = vld [vmem:[#allocation1] sm:$0x1]  }
   0xa   :  { %11 = vrot.lane.b32.xlu0 %v10_v1, %s36_s0  ;;  %23 = vrot.lane.b32.xlu1 %v22_v2, %s37_s8  ;;  %v16_v4 = vld [vmem:[#allocation1 + $0x2] sm:$0x1]   ;;  %8 = vst.msk [vmem:[#allocation0] sm:$0x1] %vm7_vm0, %v6_v3  }
   0xe   :  { %17 = vrot.lane.b32.xlu0 %v16_v4, %s38_s9 }
  0x7c   :  { %v12_v5 = vpop.permute.xlu0 %11   ;;  %v24_v6 = vpop.permute.xlu1 %23  }
  0x7d   :  { %14 = vst.msk [vmem:[#allocation0] sm:$0x1] %vm13_vm1, %v12_v5  }
  0x80   :  { %v18_v7 = vpop.permute.xlu0 %17  }
  0x81   :  { %20 = vst.msk [vmem:[#allocation0] sm:$0x1] %vm19_vm2, %v18_v7  }
  0x82   :  { %26 = vst.msk [vmem:[#allocation0] sm:$0x1] %vm25_vm3, %v24_v6  }
  0x89   :  { %v30_v8 = vld [vmem:[#allocation0] sm:$0x1] }
  0x8a   :  { %32 = vst [vmem:[%s56_s1] sm:$0x1] %v30_v8 }

// kernel: tile.31
= control target key start
LH: loop header
LB: loop body
LE: loop exit
PB: predicated region body
PF: predicated region fallthrough
CT: control target
= control target key end

     0   :  { %vm322_vm0 = vcmask 1047556   ;;  %s806_s10 = smov 48   ;;  %vm324_vm1 = vcmask 130048   ;;  %s808_s28 = smov 16   ;;  %vm397_vm2 = vcmask 523648   ;;  %vm484_vm3 = vcmask 392448   ;;  %s1195_s0 = inlined_call_operand.vmem [shape: f32[4,16,4,16], index: 0, kind: input, shape index: {}]   ;;  %s1196_s1 = inlined_call_operand.vmem [shape: f32[64,64], index: 1, kind: output, shape index: {}]  }
   0x1   :  { %v768_v0 = vld [vmem:[%s1195_s0 + $0x1c] sm:$0xf]  ;;  %v769_v1 = vld [vmem:[%s1195_s0 + $0x18] sm:$0xf]  ;;  %v770_v2 = vld [vmem:[%s1195_s0 + $0x14] sm:$0xf] }
   0x2   :  { %288 = vst [vmem:[#allocation0 + $0x38] sm:$0xf] %v768_v0  ;;  %293 = vst [vmem:[#allocation0 + $0x30] sm:$0xf] %v769_v1  ;;  %v771_v3 = vld [vmem:[%s1195_s0 + $0x10] sm:$0xf] }
   0x3   :  { %298 = vst [vmem:[#allocation0 + $0x28] sm:$0xf] %v770_v2  ;;  %v772_v4 = vld [vmem:[%s1195_s0 + $0xc] sm:$0xf]  ;;  %v773_v5 = vld [vmem:[%s1195_s0 + $0x8] sm:$0xf] }
   0x4   :  { %303 = vst [vmem:[#allocation0 + $0x20] sm:$0xf] %v771_v3  ;;  %308 = vst [vmem:[#allocation0 + $0x18] sm:$0xf] %v772_v4  ;;  %v774_v6 = vld [vmem:[%s1195_s0 + $0x4] sm:$0xf] }
   0x5   :  { %313 = vst [vmem:[#allocation0 + $0x10] sm:$0xf] %v773_v5  ;;  %v318_v7 = vld [vmem:[%s1195_s0] sm:$0xf]  ;;  %317 = vst [vmem:[#allocation0 + $0x8] sm:$0xf] %v774_v6 }
   0x6   :  { %319 = vst [vmem:[#allocation0] sm:$0xf] %v318_v7  ;;  %v760_v8 = vld [vmem:[%s1195_s0 + $0x3c] sm:$0xf]  ;;  %v761_v9 = vld [vmem:[%s1195_s0 + $0x38] sm:$0xf] }
   0x7   :  { %v762_v10 = vld [vmem:[%s1195_s0 + $0x34] sm:$0xf]  ;;  %248 = vst [vmem:[#allocation0 + $0x78] sm:$0xf] %v760_v8  ;;  %253 = vst [vmem:[#allocation0 + $0x70] sm:$0xf] %v761_v9 }
   0x8   :  { %258 = vst [vmem:[#allocation0 + $0x68] sm:$0xf] %v762_v10  ;;  %v763_v11 = vld [vmem:[%s1195_s0 + $0x30] sm:$0xf]  ;;  %v764_v12 = vld [vmem:[%s1195_s0 + $0x2c] sm:$0xf] }
   0x9   :  { %v765_v13 = vld [vmem:[%s1195_s0 + $0x28] sm:$0xf]  ;;  %263 = vst [vmem:[#allocation0 + $0x60] sm:$0xf] %v763_v11  ;;  %268 = vst [vmem:[#allocation0 + $0x58] sm:$0xf] %v764_v12 }
   0xa   :  { %273 = vst [vmem:[#allocation0 + $0x50] sm:$0xf] %v765_v13  ;;  %v766_v14 = vld [vmem:[%s1195_s0 + $0x24] sm:$0xf]  ;;  %v767_v15 = vld [vmem:[%s1195_s0 + $0x20] sm:$0xf] }
   0xb   :  { %v736_v16 = vld [vmem:[%s1195_s0 + $0x9c] sm:$0xf]  ;;  %278 = vst [vmem:[#allocation0 + $0x48] sm:$0xf] %v766_v14  ;;  %283 = vst [vmem:[#allocation0 + $0x40] sm:$0xf] %v767_v15 }
   0xc   :  { %128 = vst [vmem:[#allocation0 + $0x138] sm:$0xf] %v736_v16  ;;  %v737_v17 = vld [vmem:[%s1195_s0 + $0x98] sm:$0xf]  ;;  %v738_v18 = vld [vmem:[%s1195_s0 + $0x94] sm:$0xf] }
   0xd   :  { %v739_v19 = vld [vmem:[%s1195_s0 + $0x90] sm:$0xf]  ;;  %133 = vst [vmem:[#allocation0 + $0x130] sm:$0xf] %v737_v17  ;;  %138 = vst [vmem:[#allocation0 + $0x128] sm:$0xf] %v738_v18 }
   0xe   :  { %143 = vst [vmem:[#allocation0 + $0x120] sm:$0xf] %v739_v19  ;;  %v740_v20 = vld [vmem:[%s1195_s0 + $0x8c] sm:$0xf]  ;;  %v741_v21 = vld [vmem:[%s1195_s0 + $0x88] sm:$0xf] }
   0xf   :  { %v742_v22 = vld [vmem:[%s1195_s0 + $0x84] sm:$0xf]  ;;  %148 = vst [vmem:[#allocation0 + $0x118] sm:$0xf] %v740_v20  ;;  %153 = vst [vmem:[#allocation0 + $0x110] sm:$0xf] %v741_v21 }
  0x10   :  { %158 = vst [vmem:[#allocation0 + $0x108] sm:$0xf] %v742_v22  ;;  %v743_v23 = vld [vmem:[%s1195_s0 + $0x80] sm:$0xf]  ;;  %v728_v24 = vld [vmem:[%s1195_s0 + $0xbc] sm:$0xf] }
  0x11   :  { %v729_v25 = vld [vmem:[%s1195_s0 + $0xb8] sm:$0xf]  ;;  %163 = vst [vmem:[#allocation0 + $0x100] sm:$0xf] %v743_v23  ;;  %88 = vst [vmem:[#allocation0 + $0x178] sm:$0xf] %v728_v24 }
  0x12   :  { %v392_v26 = vld [vmem:[#allocation0 + $0x3] ss:$8 sm:$0xf0]   ;;  %93 = vst [vmem:[#allocation0 + $0x170] sm:$0xf] %v729_v25  ;;  %vm571_vm4 = vcmask 261248  }
  0x13   :  { %v730_v27 = vld [vmem:[%s1195_s0 + $0xb4] sm:$0xf]  ;;  %v390_v28 = vld [vmem:[#allocation0 + $0x3] ss:$8 sm:$0xf]  }
  0x14   :  { %98 = vst [vmem:[#allocation0 + $0x168] sm:$0xf] %v730_v27  ;;  %v731_v29 = vld [vmem:[%s1195_s0 + $0xb0] sm:$0xf]  ;;  %v394_v30 = vsel %vm322_vm0, %v392_v26, %v390_v28  ;;  %v732_v31 = vld [vmem:[%s1195_s0 + $0xac] sm:$0xf] }
  0x15   :  { %103 = vst [vmem:[#allocation0 + $0x160] sm:$0xf] %v731_v29  ;;  %v733_v32 = vld [vmem:[%s1195_s0 + $0xa8] sm:$0xf]  ;;  %v734_v33 = vld [vmem:[%s1195_s0 + $0xa4] sm:$0xf]  ;;  %395 = vrot.lane.b32.xlu0 %v394_v30, %s806_s10 }
  0x16   :  { %v413_v34 = vld [vmem:[#allocation0 + $0x43] ss:$8 sm:$0xf0]   ;;  %108 = vst [vmem:[#allocation0 + $0x158] sm:$0xf] %v732_v31 }
  0x17   :  { %113 = vst [vmem:[#allocation0 + $0x150] sm:$0xf] %v733_v32  ;;  %118 = vst [vmem:[#allocation0 + $0x148] sm:$0xf] %v734_v33  ;;  %v735_v35 = vld [vmem:[%s1195_s0 + $0xa0] sm:$0xf] }
  0x18   :  { %v411_v36 = vld [vmem:[#allocation0 + $0x43] ss:$8 sm:$0xf]   ;;  %123 = vst [vmem:[#allocation0 + $0x140] sm:$0xf] %v735_v35 }
  0x19   :  { %v752_v37 = vld [vmem:[%s1195_s0 + $0x5c] sm:$0xf]  ;;  %v415_v38 = vsel %vm322_vm0, %v413_v34, %v411_v36  ;;  %v402_v39 = vld [vmem:[#allocation0 + $0x103] ss:$8 sm:$0xf0]  }
  0x1a   :  { %208 = vst [vmem:[#allocation0 + $0xb8] sm:$0xf] %v752_v37  ;;  %v753_v40 = vld [vmem:[%s1195_s0 + $0x58] sm:$0xf]  ;;  %416 = vrot.lane.b32.xlu1 %v415_v38, %s806_s10  ;;  %v754_v41 = vld [vmem:[%s1195_s0 + $0x54] sm:$0xf] }
  0x1b   :  { %213 = vst [vmem:[#allocation0 + $0xb0] sm:$0xf] %v753_v40  ;;  %v755_v42 = vld [vmem:[%s1195_s0 + $0x50] sm:$0xf]  ;;  %v756_v43 = vld [vmem:[%s1195_s0 + $0x4c] sm:$0xf] }
  0x1c   :  { %v400_v44 = vld [vmem:[#allocation0 + $0x103] ss:$8 sm:$0xf]   ;;  %218 = vst [vmem:[#allocation0 + $0xa8] sm:$0xf] %v754_v41 }
  0x1d   :  { %223 = vst [vmem:[#allocation0 + $0xa0] sm:$0xf] %v755_v42  ;;  %228 = vst [vmem:[#allocation0 + $0x98] sm:$0xf] %v756_v43  ;;  %v757_v45 = vld [vmem:[%s1195_s0 + $0x48] sm:$0xf]  ;;  %v404_v46 = vsel %vm322_vm0, %v402_v39, %v400_v44 }
  0x1e   :  { %233 = vst [vmem:[#allocation0 + $0x90] sm:$0xf] %v757_v45  ;;  %v758_v47 = vld [vmem:[%s1195_s0 + $0x44] sm:$0xf]  ;;  %v759_v48 = vld [vmem:[%s1195_s0 + $0x40] sm:$0xf]  ;;  %405 = vrot.lane.b32.xlu0 %v404_v46, %s806_s10 }
  0x1f   :  { %v720_v49 = vld [vmem:[%s1195_s0 + $0xdc] sm:$0xf]  ;;  %v424_v50 = vld [vmem:[#allocation0 + $0x143] ss:$8 sm:$0xf0]  }
  0x20   :  { %238 = vst [vmem:[#allocation0 + $0x88] sm:$0xf] %v758_v47  ;;  %243 = vst [vmem:[#allocation0 + $0x80] sm:$0xf] %v759_v48  ;;  %v721_v51 = vld [vmem:[%s1195_s0 + $0xd8] sm:$0xf] }
  0x21   :  { %48 = vst [vmem:[#allocation0 + $0x1b8] sm:$0xf] %v720_v49  ;;  %53 = vst [vmem:[#allocation0 + $0x1b0] sm:$0xf] %v721_v51  ;;  %v722_v52 = vld [vmem:[%s1195_s0 + $0xd4] sm:$0xf] }
  0x22   :  { %v723_v53 = vld [vmem:[%s1195_s0 + $0xd0] sm:$0xf]  ;;  %v724_v54 = vld [vmem:[%s1195_s0 + $0xcc] sm:$0xf]  ;;  %58 = vst [vmem:[#allocation0 + $0x1a8] sm:$0xf] %v722_v52 }
  0x23   :  { %v422_v55 = vld [vmem:[#allocation0 + $0x143] ss:$8 sm:$0xf]   ;;  %63 = vst [vmem:[#allocation0 + $0x1a0] sm:$0xf] %v723_v53 }
  0x24   :  { %68 = vst [vmem:[#allocation0 + $0x198] sm:$0xf] %v724_v54  ;;  %v725_v56 = vld [vmem:[%s1195_s0 + $0xc8] sm:$0xf]  ;;  %v426_v57 = vsel %vm322_vm0, %v424_v50, %v422_v55  ;;  %v726_v58 = vld [vmem:[%s1195_s0 + $0xc4] sm:$0xf] }
  0x25   :  { %73 = vst [vmem:[#allocation0 + $0x190] sm:$0xf] %v725_v56  ;;  %v727_v59 = vld [vmem:[%s1195_s0 + $0xc0] sm:$0xf]  ;;  %v744_v60 = vld [vmem:[%s1195_s0 + $0x7c] sm:$0xf]  ;;  %427 = vrot.lane.b32.xlu1 %v426_v57, %s806_s10 }
  0x26   :  { %78 = vst [vmem:[#allocation0 + $0x188] sm:$0xf] %v726_v58  ;;  %83 = vst [vmem:[#allocation0 + $0x180] sm:$0xf] %v727_v59  ;;  %v745_v61 = vld [vmem:[%s1195_s0 + $0x78] sm:$0xf] }
  0x27   :  { %168 = vst [vmem:[#allocation0 + $0xf8] sm:$0xf] %v744_v60  ;;  %v746_v62 = vld [vmem:[%s1195_s0 + $0x74] sm:$0xf]  ;;  %v747_v63 = vld [vmem:[%s1195_s0 + $0x70] sm:$0xf] }
  0x28   :  { %v435_v0 = vld [vmem:[#allocation0 + $0x83] ss:$8 sm:$0xf0]   ;;  %173 = vst [vmem:[#allocation0 + $0xf0] sm:$0xf] %v745_v61 }
  0x29   :  { %178 = vst [vmem:[#allocation0 + $0xe8] sm:$0xf] %v746_v62  ;;  %183 = vst [vmem:[#allocation0 + $0xe0] sm:$0xf] %v747_v63  ;;  %v748_v1 = vld [vmem:[%s1195_s0 + $0x6c] sm:$0xf] }
  0x2a   :  { %188 = vst [vmem:[#allocation0 + $0xd8] sm:$0xf] %v748_v1  ;;  %v749_v2 = vld [vmem:[%s1195_s0 + $0x68] sm:$0xf]  ;;  %v750_v3 = vld [vmem:[%s1195_s0 + $0x64] sm:$0xf] }
  0x2b   :  { %v751_v4 = vld [vmem:[%s1195_s0 + $0x60] sm:$0xf]  ;;  %193 = vst [vmem:[#allocation0 + $0xd0] sm:$0xf] %v749_v2  ;;  %198 = vst [vmem:[#allocation0 + $0xc8] sm:$0xf] %v750_v3 }
  0x2c   :  { %v433_v5 = vld [vmem:[#allocation0 + $0x83] ss:$8 sm:$0xf]   ;;  %203 = vst [vmem:[#allocation0 + $0xc0] sm:$0xf] %v751_v4 }
  0x2d   :  { %v712_v6 = vld [vmem:[%s1195_s0 + $0xfc] sm:$0xf]  ;;  %v437_v7 = vsel %vm322_vm0, %v435_v0, %v433_v5  ;;  %v713_v8 = vld [vmem:[%s1195_s0 + $0xf8] sm:$0xf]  ;;  %v714_v9 = vld [vmem:[%s1195_s0 + $0xf4] sm:$0xf] }
  0x2e   :  { %8 = vst [vmem:[#allocation0 + $0x1f8] sm:$0xf] %v712_v6  ;;  %v715_v10 = vld [vmem:[%s1195_s0 + $0xf0] sm:$0xf]  ;;  %438 = vrot.lane.b32.xlu0 %v437_v7, %s806_s10  ;;  %13 = vst [vmem:[#allocation0 + $0x1f0] sm:$0xf] %v713_v8 }
  0x2f   :  { %v446_v11 = vld [vmem:[#allocation0 + $0x183] ss:$8 sm:$0xf0]   ;;  %18 = vst [vmem:[#allocation0 + $0x1e8] sm:$0xf] %v714_v9 }
  0x30   :  { %23 = vst [vmem:[#allocation0 + $0x1e0] sm:$0xf] %v715_v10  ;;  %v716_v12 = vld [vmem:[%s1195_s0 + $0xec] sm:$0xf]  ;;  %v717_v13 = vld [vmem:[%s1195_s0 + $0xe8] sm:$0xf] }
  0x31   :  { %28 = vst [vmem:[#allocation0 + $0x1d8] sm:$0xf] %v716_v12  ;;  %v718_v14 = vld [vmem:[%s1195_s0 + $0xe4] sm:$0xf]  ;;  %v719_v15 = vld [vmem:[%s1195_s0 + $0xe0] sm:$0xf] }
  0x32   :  { %v444_v16 = vld [vmem:[#allocation0 + $0x183] ss:$8 sm:$0xf]   ;;  %33 = vst [vmem:[#allocation0 + $0x1d0] sm:$0xf] %v717_v13  ;;  %s807_s0 = smov 32  }
  0x33   :  { %38 = vst [vmem:[#allocation0 + $0x1c8] sm:$0xf] %v718_v14  ;;  %43 = vst [vmem:[#allocation0 + $0x1c0] sm:$0xf] %v719_v15  ;;  %v448_v17 = vsel %vm322_vm0, %v446_v11, %v444_v16 }
  0x34   :  { %v457_v18 = vld [vmem:[#allocation0 + $0xc3] ss:$8 sm:$0xf0]   ;;  %449 = vrot.lane.b32.xlu1 %v448_v17, %s806_s10  ;;  %v477_v19 = vld [vmem:[#allocation0 + $0x2] ss:$8 sm:$0xf]  }
  0x35   :  { %v455_v20 = vld [vmem:[#allocation0 + $0xc3] ss:$8 sm:$0xf]   ;;  %v479_v21 = vld [vmem:[#allocation0 + $0x2] ss:$8 sm:$0xf0]  }
  0x36   :  { %v459_v22 = vsel %vm322_vm0, %v457_v18, %v455_v20  ;;  %v487_v24 = vld [vmem:[#allocation0 + $0x102] ss:$8 sm:$0xf]   ;;  %v481_v25 = vsel %vm322_vm0, %v479_v21, %v477_v19  ;;  %v564_v45 = vld [vmem:[#allocation0 + $0x1] ss:$8 sm:$0xf]  }
  0x37   :  { %460 = vrot.lane.b32.xlu0 %v459_v22, %s806_s10  ;;  %v468_v23 = vld [vmem:[#allocation0 + $0x1c3] ss:$8 sm:$0xf0]   ;;  %v489_v26 = vld [vmem:[#allocation0 + $0x102] ss:$8 sm:$0xf0]  }
  0x38   :  { %v498_v27 = vld [vmem:[#allocation0 + $0x42] ss:$8 sm:$0xf]   ;;  %v491_v31 = vsel %vm322_vm0, %v489_v26, %v487_v24  ;;  %v566_v48 = vld [vmem:[#allocation0 + $0x1] ss:$8 sm:$0xf0]  }
  0x39   :  { %v500_v29 = vld [vmem:[#allocation0 + $0x42] ss:$8 sm:$0xf0]   ;;  %v320_v49 = vld [vmem:[#allocation0] ss:$8 sm:$0xf]   ;;  %v568_v63 = vsel %vm322_vm0, %v566_v48, %v564_v45 }
  0x3a   :  { %v466_v28 = vld [vmem:[#allocation0 + $0x1c3] ss:$8 sm:$0xf]   ;;  %v502_v32 = vsel %vm322_vm0, %v500_v29, %v498_v27  ;;  %v509_v33 = vld [vmem:[#allocation0 + $0x142] ss:$8 sm:$0xf]  }
  0x3b   :  { %v470_v30 = vsel %vm322_vm0, %v468_v23, %v466_v28  ;;  %482 = vrot.lane.b32.xlu0 %v481_v25, %s807_s0  ;;  %v511_v34 = vld [vmem:[#allocation0 + $0x142] ss:$8 sm:$0xf0]   ;;  %v321_v50 = vld [vmem:[#allocation0] ss:$8 sm:$0xf0]  }
  0x3c   :  { %471 = vrot.lane.b32.xlu1 %v470_v30, %s806_s10  ;;  %v520_v35 = vld [vmem:[#allocation0 + $0x82] ss:$8 sm:$0xf]   ;;  %v513_v37 = vsel %vm322_vm0, %v511_v34, %v509_v33  ;;  %v327_v51 = vld [vmem:[#allocation0 + $0x40] ss:$8 sm:$0xf]   ;;  %v323_v52 = vsel %vm322_vm0, %v321_v50, %v320_v49 }
  0x3d   :  { %v522_v36 = vld [vmem:[#allocation0 + $0x82] ss:$8 sm:$0xf0]   ;;  %v329_v53 = vld [vmem:[#allocation0 + $0x40] ss:$8 sm:$0xf0]  }
  0x3e   :  { %v524_v38 = vsel %vm322_vm0, %v522_v36, %v520_v35  ;;  %v531_v39 = vld [vmem:[#allocation0 + $0x182] ss:$8 sm:$0xf]   ;;  %v354_v54 = vld [vmem:[#allocation0 + $0x100] ss:$8 sm:$0xf]   ;;  %v331_v59 = vsel %vm322_vm0, %v329_v53, %v327_v51 }
  0x3f   :  { %503 = vrot.lane.b32.xlu0 %v502_v32, %s807_s0  ;;  %v533_v40 = vld [vmem:[#allocation0 + $0x182] ss:$8 sm:$0xf0]   ;;  %v574_v55 = vld [vmem:[#allocation0 + $0x101] ss:$8 sm:$0xf]  }
  0x40   :  { %492 = vrot.lane.b32.xlu1 %v491_v31, %s807_s0  ;;  %v542_v41 = vld [vmem:[#allocation0 + $0xc2] ss:$8 sm:$0xf]   ;;  %v535_v46 = vsel %vm322_vm0, %v533_v40, %v531_v39  ;;  %v576_v56 = vld [vmem:[#allocation0 + $0x101] ss:$8 sm:$0xf0]  }
  0x41   :  { %v544_v42 = vld [vmem:[#allocation0 + $0xc2] ss:$8 sm:$0xf0]   ;;  %v585_v57 = vld [vmem:[#allocation0 + $0x41] ss:$8 sm:$0xf]   ;;  %v578_v13 = vsel %vm322_vm0, %v576_v56, %v574_v55 }
  0x42   :  { %v553_v43 = vld [vmem:[#allocation0 + $0x1c2] ss:$8 sm:$0xf]   ;;  %v546_v47 = vsel %vm322_vm0, %v544_v42, %v542_v41  ;;  %v587_v58 = vld [vmem:[#allocation0 + $0x41] ss:$8 sm:$0xf0]  }
  0x43   :  { %525 = vrot.lane.b32.xlu0 %v524_v38, %s807_s0  ;;  %v555_v44 = vld [vmem:[#allocation0 + $0x1c2] ss:$8 sm:$0xf0]   ;;  %325 = vst.msk [vmem:[%s1196_s1] sm:$0xff] %vm324_vm1, %v323_v52   ;;  %775 = vst.msk [vmem:[%s1196_s1 + $0x8] sm:$0xff] %vm324_vm1, %v331_v59   ;;  %v589_v14 = vsel %vm322_vm0, %v587_v58, %v585_v57 }
  0x44   :  { %514 = vrot.lane.b32.xlu1 %v513_v37, %s807_s0  ;;  %v356_v60 = vld [vmem:[#allocation0 + $0x100] ss:$8 sm:$0xf0]   ;;  %v557_v62 = vsel %vm322_vm0, %v555_v44, %v553_v43  ;;  %v596_v9 = vld [vmem:[#allocation0 + $0x141] ss:$8 sm:$0xf]  }
  0x45   :  { %v363_v61 = vld [vmem:[#allocation0 + $0x140] ss:$8 sm:$0xf]   ;;  %v358_v0 = vsel %vm322_vm0, %v356_v60, %v354_v54  ;;  %v598_v15 = vld [vmem:[#allocation0 + $0x141] ss:$8 sm:$0xf0]  }
  0x46   :  { %v365_v1 = vld [vmem:[#allocation0 + $0x140] ss:$8 sm:$0xf0]   ;;  %778 = vst.msk [vmem:[%s1196_s1 + $0x20] sm:$0xff] %vm324_vm1, %v358_v0   ;;  %v600_v21 = vsel %vm322_vm0, %v598_v15, %v596_v9 }
  0x47   :  { %547 = vrot.lane.b32.xlu0 %v546_v47, %s807_s0  ;;  %v336_v2 = vld [vmem:[#allocation0 + $0x80] ss:$8 sm:$0xf]   ;;  %v367_v3 = vsel %vm322_vm0, %v365_v1, %v363_v61  ;;  %v607_v18 = vld [vmem:[#allocation0 + $0x81] ss:$8 sm:$0xf]  }
  0x48   :  { %536 = vrot.lane.b32.xlu1 %v535_v46, %s807_s0  ;;  %v338_v4 = vld [vmem:[#allocation0 + $0x80] ss:$8 sm:$0xf0]   ;;  %779 = vst.msk [vmem:[%s1196_s1 + $0x28] sm:$0xff] %vm324_vm1, %v367_v3  }
  0x49   :  { %v372_v5 = vld [vmem:[#allocation0 + $0x180] ss:$8 sm:$0xf]   ;;  %v340_v6 = vsel %vm322_vm0, %v338_v4, %v336_v2  ;;  %v609_v19 = vld [vmem:[#allocation0 + $0x81] ss:$8 sm:$0xf0]  }
  0x4a   :  { %v374_v7 = vld [vmem:[#allocation0 + $0x180] ss:$8 sm:$0xf0]   ;;  %776 = vst.msk [vmem:[%s1196_s1 + $0x10] sm:$0xff] %vm324_vm1, %v340_v6   ;;  %v611_v22 = vsel %vm322_vm0, %v609_v19, %v607_v18 }
  0x4b   :  { %v345_v8 = vld [vmem:[#allocation0 + $0xc0] ss:$8 sm:$0xf]   ;;  %569 = vrot.lane.b32.xlu0 %v568_v63, %s808_s28  ;;  %v376_v10 = vsel %vm322_vm0, %v374_v7, %v372_v5  ;;  %v618_v23 = vld [vmem:[#allocation0 + $0x181] ss:$8 sm:$0xf]  }
  0x4c   :  { %558 = vrot.lane.b32.xlu1 %v557_v62, %s807_s0  ;;  %v347_v11 = vld [vmem:[#allocation0 + $0xc0] ss:$8 sm:$0xf0]   ;;  %780 = vst.msk [vmem:[%s1196_s1 + $0x30] sm:$0xff] %vm324_vm1, %v376_v10  }
  0x4d   :  { %v381_v12 = vld [vmem:[#allocation0 + $0x1c0] ss:$8 sm:$0xf]   ;;  %v349_v16 = vsel %vm322_vm0, %v347_v11, %v345_v8  ;;  %v620_v24 = vld [vmem:[#allocation0 + $0x181] ss:$8 sm:$0xf0]  }
  0x4e   :  { %v383_v17 = vld [vmem:[#allocation0 + $0x1c0] ss:$8 sm:$0xf0]   ;;  %777 = vst.msk [vmem:[%s1196_s1 + $0x18] sm:$0xff] %vm324_vm1, %v349_v16   ;;  %v622_v27 = vsel %vm322_vm0, %v620_v24, %v618_v23 }
  0x4f   :  { %v385_v20 = vsel %vm322_vm0, %v383_v17, %v381_v12  ;;  %590 = vrot.lane.b32.xlu0 %v589_v14, %s808_s28  ;;  %v629_v25 = vld [vmem:[#allocation0 + $0xc1] ss:$8 sm:$0xf]  }
  0x50   :  { %781 = vst.msk [vmem:[%s1196_s1 + $0x38] sm:$0xff] %vm324_vm1, %v385_v20   ;;  %579 = vrot.lane.b32.xlu1 %v578_v13, %s808_s28  ;;  %v631_v26 = vld [vmem:[#allocation0 + $0xc1] ss:$8 sm:$0xf0]  }
  0x51   :  { %v633_v28 = vsel %vm322_vm0, %v631_v26, %v629_v25  ;;  %v640_v29 = vld [vmem:[#allocation0 + $0x1c1] ss:$8 sm:$0xf]  }
  0x52   :  { %v642_v30 = vld [vmem:[#allocation0 + $0x1c1] ss:$8 sm:$0xf0]  }
  0x53   :  { %612 = vrot.lane.b32.xlu0 %v611_v22, %s808_s28  ;;  %v644_v31 = vsel %vm322_vm0, %v642_v30, %v640_v29 }
  0x54   :  { %601 = vrot.lane.b32.xlu1 %v600_v21, %s808_s28 }
  0x57   :  { %634 = vrot.lane.b32.xlu0 %v633_v28, %s808_s28 }
  0x58   :  { %623 = vrot.lane.b32.xlu1 %v622_v27, %s808_s28 }
  0x5c   :  { %645 = vrot.lane.b32.xlu1 %v644_v31, %s808_s28 }
  0x87   :  { %v396_v32 = vpop.permute.xlu0 %395  }
  0x88   :  { %398 = vst.msk [vmem:[%s1196_s1] sm:$0xff] %vm397_vm2, %v396_v32  }
  0x8c   :  { %v417_v33 = vpop.permute.xlu1 %416  }
  0x8d   :  { %783 = vst.msk [vmem:[%s1196_s1 + $0x8] sm:$0xff] %vm397_vm2, %v417_v33  }
  0x90   :  { %v406_v34 = vpop.permute.xlu0 %405  }
  0x91   :  { %782 = vst.msk [vmem:[%s1196_s1 + $0x20] sm:$0xff] %vm397_vm2, %v406_v34  }
  0x97   :  { %v428_v35 = vpop.permute.xlu1 %427  }
  0x98   :  { %784 = vst.msk [vmem:[%s1196_s1 + $0x28] sm:$0xff] %vm397_vm2, %v428_v35  }
  0xa0   :  { %v439_v36 = vpop.permute.xlu0 %438  }
  0xa1   :  { %785 = vst.msk [vmem:[%s1196_s1 + $0x10] sm:$0xff] %vm397_vm2, %v439_v36  }
  0xa6   :  { %v450_v37 = vpop.permute.xlu1 %449  }
  0xa7   :  { %786 = vst.msk [vmem:[%s1196_s1 + $0x30] sm:$0xff] %vm397_vm2, %v450_v37  }
  0xa9   :  { %v461_v38 = vpop.permute.xlu0 %460  }
  0xaa   :  { %787 = vst.msk [vmem:[%s1196_s1 + $0x18] sm:$0xff] %vm397_vm2, %v461_v38  }
  0xad   :  { %v483_v40 = vpop.permute.xlu0 %482  }
  0xae   :  { %v472_v39 = vpop.permute.xlu1 %471   ;;  %485 = vst.msk [vmem:[%s1196_s1] sm:$0xff] %vm484_vm3, %v483_v40  }
  0xaf   :  { %788 = vst.msk [vmem:[%s1196_s1 + $0x38] sm:$0xff] %vm397_vm2, %v472_v39  }
  0xb1   :  { %v504_v42 = vpop.permute.xlu0 %503  }
  0xb2   :  { %v493_v41 = vpop.permute.xlu1 %492   ;;  %790 = vst.msk [vmem:[%s1196_s1 + $0x8] sm:$0xff] %vm484_vm3, %v504_v42  }
  0xb3   :  { %789 = vst.msk [vmem:[%s1196_s1 + $0x20] sm:$0xff] %vm484_vm3, %v493_v41  }
  0xb5   :  { %v526_v44 = vpop.permute.xlu0 %525  }
  0xb6   :  { %v515_v43 = vpop.permute.xlu1 %514   ;;  %792 = vst.msk [vmem:[%s1196_s1 + $0x10] sm:$0xff] %vm484_vm3, %v526_v44  }
  0xb7   :  { %791 = vst.msk [vmem:[%s1196_s1 + $0x28] sm:$0xff] %vm484_vm3, %v515_v43  }
  0xb9   :  { %v548_v46 = vpop.permute.xlu0 %547  }
  0xba   :  { %v537_v45 = vpop.permute.xlu1 %536   ;;  %794 = vst.msk [vmem:[%s1196_s1 + $0x18] sm:$0xff] %vm484_vm3, %v548_v46  }
  0xbb   :  { %793 = vst.msk [vmem:[%s1196_s1 + $0x30] sm:$0xff] %vm484_vm3, %v537_v45  }
  0xbd   :  { %v570_v48 = vpop.permute.xlu0 %569  }
  0xbe   :  { %v559_v47 = vpop.permute.xlu1 %558   ;;  %572 = vst.msk [vmem:[%s1196_s1] sm:$0xff] %vm571_vm4, %v570_v48  }
  0xbf   :  { %795 = vst.msk [vmem:[%s1196_s1 + $0x38] sm:$0xff] %vm484_vm3, %v559_v47  }
  0xc1   :  { %v591_v50 = vpop.permute.xlu0 %590  }
  0xc2   :  { %v580_v49 = vpop.permute.xlu1 %579   ;;  %797 = vst.msk [vmem:[%s1196_s1 + $0x8] sm:$0xff] %vm571_vm4, %v591_v50  }
  0xc3   :  { %796 = vst.msk [vmem:[%s1196_s1 + $0x20] sm:$0xff] %vm571_vm4, %v580_v49  }
  0xc5   :  { %v613_v52 = vpop.permute.xlu0 %612  }
  0xc6   :  { %v602_v51 = vpop.permute.xlu1 %601   ;;  %799 = vst.msk [vmem:[%s1196_s1 + $0x10] sm:$0xff] %vm571_vm4, %v613_v52  }
  0xc7   :  { %798 = vst.msk [vmem:[%s1196_s1 + $0x28] sm:$0xff] %vm571_vm4, %v602_v51  }
  0xc9   :  { %v635_v54 = vpop.permute.xlu0 %634  }
  0xca   :  { %v624_v53 = vpop.permute.xlu1 %623   ;;  %801 = vst.msk [vmem:[%s1196_s1 + $0x18] sm:$0xff] %vm571_vm4, %v635_v54  }
  0xcb   :  { %800 = vst.msk [vmem:[%s1196_s1 + $0x30] sm:$0xff] %vm571_vm4, %v624_v53  }
  0xce   :  { %v646_v55 = vpop.permute.xlu1 %645  }
  0xcf   :  { %802 = vst.msk [vmem:[%s1196_s1 + $0x38] sm:$0xff] %vm571_vm4, %v646_v55  }

// kernel: transformer_fwd.1
= control target key start
LH: loop header
LB: loop body
LE: loop exit
PB: predicated region body
PF: predicated region fallthrough
CT: control target
= control target key end

     0   :  { %vm46_vm0 = vcmask 261120   ;;  %vm158_vm1 = vcmask 64512   ;;  %s7413_s23 = smov 112   ;;  %s7414_s24 = smov 120   ;;  %vm296_vm3 = vcmask 523264   ;;  %vm572_vm4 = vcmask 130048   ;;  %s8897_s1 = inlined_call_operand.vmem [shape: f32[1128,128], index: 1, kind: input, shape index: {}]   ;;  %s8898_s0 = inlined_call_operand.vmem [shape: f32[224,128], index: 0, kind: input, shape index: {}]   ;;  %s8899_s2 = inlined_call_operand.vmem [shape: f32[16,128], index: 2, kind: output, shape index: {}]  }
   0x1   :  { %v37_v0 = vld [vmem:[%s8897_s1] sm:$0xff]  ;;  %v38_v1 = vld [vmem:[%s8897_s1 + $0x8] sm:$0xff]  ;;  %v39_v2 = vld [vmem:[%s8897_s1 + $0x10] sm:$0xff]  ;;  %s7415_s25 = smov 104   ;;  %s7416_s26 = smov 96   ;;  %vm575_vm5 = vcmask 195584  }
   0x2   :  { %v6451_v3 = vpack.c.bf16 %v38_v1, %v37_v0  ;;  %v40_v4 = vld [vmem:[%s8897_s1 + $0x18] sm:$0xff]  ;;  %v7451_v5 = vld [vmem:[%s8898_s0] sm:$0xff]  ;;  %v7458_v7 = vld [vmem:[%s8898_s0 + $0x8] sm:$0xff]  ;;  %s7417_s15 = smov 64   ;;  %s7418_s28 = smov 8  }
   0x3   :  { %v6455_v6 = vpack.c.bf16 %v40_v4, %v39_v2  ;;  %5838 = vmatprep.mubr.msk.f32.mxu0 %vm46_vm0, %v7451_v5  ;;  %v5253_v8 = vld [vmem:[%s8897_s1 + $0x20] ss:$0 sm:$0xff]  ;;  %vm7490_vm2 = vmpackc.low %vm158_vm1, %vm158_vm1  ;;  %v7520_v40 = vld [vmem:[%s8898_s0 + $0x28] sm:$0xff]  ;;  %s7419_s29 = smov 16   ;;  %s7420_s30 = smov 24  }
   0x4   :  { %6452 = vmatprep.subr.bf16.mxu0 %v6451_v3  ;;  %v7525_v41 = vld [vmem:[%s8898_s0 + $0x20] sm:$0xff]  ;;  %v7533_v47 = vld [vmem:[%s8898_s0 + $0x30] sm:$0xff]  ;;  %v7539_v50 = vld [vmem:[%s8898_s0 + $0x38] sm:$0xff] }
   0x5   :  { %6454 = vmatpush3.bf16.msra.mxu0 %v6451_v3  ;;  %v7545_v53 = vld [vmem:[%s8898_s0 + $0x40] sm:$0xff]  ;;  %v7552_v57 = vld [vmem:[%s8898_s0 + $0x48] sm:$0xff]  ;;  %v7558_v60 = vld [vmem:[%s8898_s0 + $0x50] sm:$0xff] }
   0x6   :  { %6456 = vmatprep.subr.bf16.mxu0 %v6455_v6  ;;  %v7566_v1 = vld [vmem:[%s8898_s0 + $0x58] sm:$0xff] }
   0x9   :  { %6458 = vmatpush3.bf16.msra.mxu0 %v6455_v6 }
   0xc   :  { %5839 = vmatmul.mubr.msk.f32.vlgmr.msra.gmra.mrb[0].mxu0 %vm46_vm0, %v7458_v7 }
  0xdf   :  { %v5840_v9 = vpop.f32.mrb[0].mxu0 }
  0xe0   :  { %v119_v10 = vpop.f32.mrb[1].mxu0  ;;  %v125_v12 = vadd.f32 %v5840_v9, %v5253_v8 }
  0xe1   :  { %v120_v11 = vadd.f32 %v5253_v8, %v119_v10 }
  0xe3   :  { %134 = vrot.lane.b32.xlu1 %v120_v11, %s7413_s23  ;;  %130 = vrot.lane.b32.xlu0 %v120_v11, %s7414_s24  ;;  %v7472_v13 = vpack.i.bf16 %v125_v12, %v120_v11 }
  0xe4   :  { %5857 = vmatprep.mubr.msk.f32.mxu1 %vm158_vm1, %v120_v11 }
  0xe7   :  { %136 = vrot.lane.b32.xlu1 %v125_v12, %s7413_s23  ;;  %132 = vrot.lane.b32.xlu0 %v125_v12, %s7414_s24 }
  0xeb   :  { %140 = vrot.lane.b32.xlu1 %v125_v12, %s7415_s25  ;;  %138 = vrot.lane.b32.xlu0 %v120_v11, %s7415_s25 }
  0xef   :  { %6916 = vrot.lane.b32.xlu0 %v7472_v13, %s7416_s26 }
 0x155   :  { %v135_v14 = vpop.permute.xlu1 %134  ;;  %v131_v15 = vpop.permute.xlu0 %130 }
 0x159   :  { %v137_v16 = vpop.permute.xlu1 %136  ;;  %v133_v17 = vpop.permute.xlu0 %132 }
 0x15a   :  { %v7476_v18 = vpack.i.bf16 %v137_v16, %v135_v14  ;;  %v7478_v19 = vpack.i.bf16 %v133_v17, %v131_v15 }
 0x15c   :  { %6926 = vrot.lane.b32.xlu0 %v7476_v18, %s7416_s26  ;;  %6921 = vrot.lane.b32.xlu1 %v7478_v19, %s7416_s26 }
 0x15d   :  { %v141_v20 = vpop.permute.xlu1 %140  ;;  %v139_v21 = vpop.permute.xlu0 %138 }
 0x15e   :  { %v7484_v22 = vpack.i.bf16 %v141_v20, %v139_v21 }
 0x160   :  { %6931 = vrot.lane.b32.xlu1 %v7484_v22, %s7416_s26 }
 0x161   :  { %v6917_v23 = vpop.permute.xlu0 %6916 }
 0x162   :  { %v6919_v24 = vunpack.i.h.bf16 %v6917_v23  ;;  %v6918_v25 = vunpack.i.l.bf16 %v6917_v23 }
 0x164   :  { %v6459_v27 = vpack.c.bf16 %v6919_v24, %v6918_v25 }
 0x166   :  { %6461 = vmatprep.subr.msk.bf16.mxu1 %vm7490_vm2, %v6459_v27 }
 0x167   :  { %6464 = vmatpush3.bf16.xpose.msk.msra.mxu1 %vm7490_vm2, %v6459_v27 }
 0x1ce   :  { %v6922_v28 = vpop.permute.xlu1 %6921  ;;  %v6927_v29 = vpop.permute.xlu0 %6926 }
 0x1cf   :  { %v6924_v30 = vunpack.i.h.bf16 %v6922_v28  ;;  %v6923_v31 = vunpack.i.l.bf16 %v6922_v28  ;;  %v6929_v32 = vunpack.i.h.bf16 %v6927_v29  ;;  %v6928_v33 = vunpack.i.l.bf16 %v6927_v29 }
 0x1d1   :  { %v6465_v34 = vpack.c.bf16 %v6924_v30, %v6923_v31  ;;  %v6471_v35 = vpack.c.bf16 %v6929_v32, %v6928_v33 }
 0x1d2   :  { %v6932_v36 = vpop.permute.xlu1 %6931 }
 0x1d3   :  { %6467 = vmatprep.subr.msk.bf16.mxu1 %vm7490_vm2, %v6465_v34  ;;  %v6934_v37 = vunpack.i.h.bf16 %v6932_v36  ;;  %v6933_v38 = vunpack.i.l.bf16 %v6932_v36 }
 0x1d4   :  { %6470 = vmatpush3.bf16.xpose.msk.msra.mxu1 %vm7490_vm2, %v6465_v34 }
 0x1d5   :  { %6473 = vmatprep.subr.msk.bf16.mxu1 %vm7490_vm2, %v6471_v35  ;;  %v6477_v39 = vpack.c.bf16 %v6934_v37, %v6933_v38 }
 0x1dc   :  { %6476 = vmatpush3.bf16.xpose.msk.msra.mxu1 %vm7490_vm2, %v6471_v35 }
 0x1dd   :  { %6479 = vmatprep.subr.msk.bf16.mxu1 %vm7490_vm2, %v6477_v39 }
 0x1e4   :  { %6482 = vmatpush3.bf16.xpose.msk.msra.mxu1 %vm7490_vm2, %v6477_v39 }
 0x1eb   :  { %5858 = vmatmul.mubr.msk.f32.vlgmr.msra.gmra.mrb[0].mxu1 %vm158_vm1, %v125_v12 }
 0x1ec   :  { %5860 = vmatprep.mubr.msk.f32.mxu1 %vm158_vm1, %v131_v15 }
 0x1ef   :  { %5861 = vmatmul.mubr.msk.f32.gmra.mrb[2].mxu1 %vm158_vm1, %v133_v17 }
 0x1f0   :  { %5863 = vmatprep.mubr.msk.f32.mxu1 %vm158_vm1, %v135_v14 }
 0x1f3   :  { %5864 = vmatmul.mubr.msk.f32.gmra.mrb[4].mxu1 %vm158_vm1, %v137_v16 }
 0x1f4   :  { %5866 = vmatprep.mubr.msk.f32.mxu1 %vm158_vm1, %v139_v21 }
 0x1f7   :  { %5867 = vmatmul.mubr.msk.f32.gmra.mrb[6].mxu1 %vm158_vm1, %v141_v20 }
 0x2be   :  { %v5859_v42 = vpop.f32.mrb[0].mxu1 }
 0x2bf   :  { %v263_v43 = vadd.f32 %v5859_v42, %v7520_v40  ;;  %v257_v44 = vpop.f32.mrb[1].mxu1 }
 0x2c0   :  { %v258_v45 = vadd.f32 %v257_v44, %v7525_v41 }
 0x2c1   :  { %v300_v46 = vsel %vm296_vm3, %v263_v43, -inf }
 0x2c2   :  { %v5862_v48 = vpop.f32.mrb[2].mxu1  ;;  %301 = vmax.xlane.f32.xlu1 %v300_v46  ;;  %v297_v49 = vsel %vm296_vm3, %v258_v45, -inf }
 0x2c3   :  { %v267_v51 = vpop.f32.mrb[3].mxu1  ;;  %298 = vmax.xlane.f32.xlu0 %v297_v49  ;;  %v273_v54 = vadd.f32 %v5862_v48, %v7539_v50 }
 0x2c4   :  { %v268_v52 = vadd.f32 %v267_v51, %v7533_v47 }
 0x2c5   :  { %v306_v63 = vsel %vm296_vm3, %v273_v54, -inf }
 0x2c6   :  { %v5865_v55 = vpop.f32.mrb[4].mxu1  ;;  %v303_v56 = vsel %vm296_vm3, %v268_v52, -inf }
 0x2c7   :  { %v277_v58 = vpop.f32.mrb[5].mxu1  ;;  %304 = vmax.xlane.f32.xlu0 %v303_v56  ;;  %v283_v61 = vadd.f32 %v5865_v55, %v7552_v57 }
 0x2c8   :  { %v278_v59 = vadd.f32 %v277_v58, %v7545_v53 }
 0x2c9   :  { %v312_v6 = vsel %vm296_vm3, %v283_v61, -inf }
 0x2ca   :  { %v5868_v62 = vpop.f32.mrb[6].mxu1  ;;  %v309_v0 = vsel %vm296_vm3, %v278_v59, -inf }
 0x2cb   :  { %v287_v2 = vpop.f32.mrb[7].mxu1  ;;  %307 = vmax.xlane.f32.xlu0 %v306_v63  ;;  %310 = vmax.xlane.f32.xlu1 %v309_v0  ;;  %v293_v4 = vadd.f32 %v5868_v62, %v7566_v1 }
 0x2cc   :  { %v288_v3 = vadd.f32 %v287_v2, %v7558_v60 }
 0x2cd   :  { %v318_v9 = vsel %vm296_vm3, %v293_v4, -inf }
 0x2ce   :  { %v315_v8 = vsel %vm296_vm3, %v288_v3, -inf }
 0x2cf   :  { %313 = vmax.xlane.f32.xlu0 %v312_v6  ;;  %316 = vmax.xlane.f32.xlu1 %v315_v8 }
 0x2d3   :  { %319 = vmax.xlane.f32.xlu0 %v318_v9 }
 0x2e0   :  { %6936 = vrot.lane.b32.xlu1 %v7472_v13, %s7417_s15 }
 0x34f   :  { %v302_v10 = vpop.xlane.xlu1 %301 }
 0x350   :  { %v322_v11 = vsub.f32 %v263_v43, %v302_v10  ;;  %v299_v12 = vpop.xlane.xlu0 %298 }
 0x351   :  { %v321_v14 = vsub.f32 %v258_v45, %v299_v12 }
 0x352   :  { %v331_v15 = vmul.f32 1.442695, %v322_v11 }
 0x353   :  { %v329_v16 = vmul.f32 1.442695, %v321_v14 }
 0x354   :  { %7165 = vpow2.f32 %v331_v15  ;;  %v305_v17 = vpop.xlane.xlu0 %304 }
 0x355   :  { %7167 = vpow2.f32 %v329_v16  ;;  %v323_v20 = vsub.f32 %v268_v52, %v305_v17 }
 0x357   :  { %v333_v21 = vmul.f32 1.442695, %v323_v20 }
 0x358   :  { %v308_v23 = vpop.xlane.xlu0 %307  ;;  %v311_v24 = vpop.xlane.xlu1 %310 }
 0x359   :  { %7169 = vpow2.f32 %v333_v21  ;;  %v324_v25 = vsub.f32 %v273_v54, %v308_v23  ;;  %v325_v27 = vsub.f32 %v278_v59, %v311_v24 }
 0x35b   :  { %v335_v28 = vmul.f32 1.442695, %v324_v25  ;;  %v337_v29 = vmul.f32 1.442695, %v325_v27 }
 0x35c   :  { %v314_v30 = vpop.xlane.xlu0 %313  ;;  %v317_v13 = vpop.xlane.xlu1 %316 }
 0x35d   :  { %7171 = vpow2.f32 %v335_v28  ;;  %v326_v31 = vsub.f32 %v283_v61, %v314_v30  ;;  %v327_v35 = vsub.f32 %v288_v3, %v317_v13 }
 0x35e   :  { %v7575_v32 = vpop.eup %7165  ;;  %7173 = vpow2.f32 %v337_v29 }
 0x35f   :  { %v7168_v33 = vpop.eup %7167  ;;  %v339_v34 = vmul.f32 1.442695, %v326_v31  ;;  %v348_v36 = vsel %vm296_vm3, %v7575_v32, 0.0  ;;  %v341_v46 = vmul.f32 1.442695, %v327_v35 }
 0x360   :  { %v320_v37 = vpop.xlane.xlu0 %319  ;;  %349 = vadd.xlane.f32.xlu0 %v348_v36  ;;  %v6937_v38 = vpop.permute.xlu1 %6936  ;;  %v345_v39 = vsel %vm296_vm3, %v7168_v33, 0.0 }
 0x361   :  { %7175 = vpow2.f32 %v339_v34  ;;  %v328_v42 = vsub.f32 %v293_v4, %v320_v37  ;;  %v6939_v43 = vunpack.i.h.bf16 %v6937_v38  ;;  %v6938_v44 = vunpack.i.l.bf16 %v6937_v38  ;;  %346 = vadd.xlane.f32.xlu1 %v345_v39 }
 0x363   :  { %v7580_v45 = vpop.eup %7169  ;;  %v343_v48 = vmul.f32 1.442695, %v328_v42  ;;  %v6483_v49 = vpack.c.bf16 %v6939_v43, %v6938_v44  ;;  %v578_v43 = vld [vmem:[%s8897_s1 + $0x28] sm:$0xff]  ;;  %v579_v44 = vld [vmem:[%s8897_s1 + $0x30] sm:$0xff] }
 0x364   :  { %v351_v51 = vsel %vm296_vm3, %v7580_v45, 0.0 }
 0x365   :  { %7177 = vpow2.f32 %v343_v48  ;;  %352 = vadd.xlane.f32.xlu1 %v351_v51  ;;  %6484 = vmatprep.subr.bf16.mxu0 %v6483_v49  ;;  %v581_v48 = vld [vmem:[%s8897_s1 + $0x40] sm:$0xff] }
 0x366   :  { %6486 = vmatpush3.bf16.msra.mxu0 %v6483_v49  ;;  %7179 = vpow2.f32 %v341_v46  ;;  %v580_v46 = vld [vmem:[%s8897_s1 + $0x38] sm:$0xff] }
 0x367   :  { %v7584_v52 = vpop.eup %7171  ;;  %v6503_v51 = vpack.c.bf16 %v581_v48, %v580_v46  ;;  %v808_v46 = vld [vmem:[%s8897_s1 + $0xb0] sm:$0xff] }
 0x368   :  { %v7586_v54 = vpop.eup %7173  ;;  %v354_v55 = vsel %vm296_vm3, %v7584_v52, 0.0 }
 0x369   :  { %355 = vadd.xlane.f32.xlu0 %v354_v55  ;;  %v357_v56 = vsel %vm296_vm3, %v7586_v54, 0.0 }
 0x36a   :  { %358 = vadd.xlane.f32.xlu1 %v357_v56 }
 0x36b   :  { %v7592_v58 = vpop.eup %7175 }
 0x36c   :  { %v360_v59 = vsel %vm296_vm3, %v7592_v58, 0.0 }
 0x36d   :  { %361 = vadd.xlane.f32.xlu0 %v360_v59 }
 0x36f   :  { %v7596_v61 = vpop.eup %7177 }
 0x370   :  { %v366_v62 = vsel %vm296_vm3, %v7596_v61, 0.0  ;;  %v7180_v63 = vpop.eup %7179 }
 0x371   :  { %367 = vadd.xlane.f32.xlu0 %v366_v62  ;;  %v363_v0 = vsel %vm296_vm3, %v7180_v63, 0.0 }
 0x375   :  { %364 = vadd.xlane.f32.xlu0 %v363_v0 }
 0x37b   :  { %6946 = vrot.lane.b32.xlu1 %v7476_v18, %s7417_s15 }
 0x37f   :  { %6951 = vrot.lane.b32.xlu1 %v7484_v22, %s7417_s15 }
 0x38b   :  { %6941 = vrot.lane.b32.xlu0 %v7478_v19, %s7417_s15 }
 0x3ed   :  { %v350_v3 = vpop.xlane.xlu0 %349 }
 0x3ee   :  { %v347_v2 = vpop.xlane.xlu1 %346 }
 0x3ef   :  { %7181 = vrcp.f32 %v347_v2 }
 0x3f0   :  { %7183 = vrcp.f32 %v350_v3 }
 0x3f2   :  { %v353_v4 = vpop.xlane.xlu1 %352 }
 0x3f3   :  { %7185 = vrcp.f32 %v353_v4 }
 0x3f6   :  { %v356_v6 = vpop.xlane.xlu0 %355 }
 0x3f7   :  { %v359_v11 = vpop.xlane.xlu1 %358  ;;  %7187 = vrcp.f32 %v356_v6 }
 0x3f8   :  { %7189 = vrcp.f32 %v359_v11 }
 0x3f9   :  { %v7182_v8 = vpop.eup %7181 }
 0x3fa   :  { %v362_v9 = vpop.xlane.xlu0 %361  ;;  %v385_v10 = vmul.f32 %v7182_v8, %v7168_v33  ;;  %v7184_v28 = vpop.eup %7183 }
 0x3fb   :  { %v6947_v14 = vpop.permute.xlu1 %6946  ;;  %7191 = vrcp.f32 %v362_v9  ;;  %v386_v30 = vmul.f32 %v7184_v28, %v7575_v32 }
 0x3fc   :  { %5885 = vmatprep.mubr.msk.f32.mxu0 %vm296_vm3, %v385_v10  ;;  %v6949_v16 = vunpack.i.h.bf16 %v6947_v14  ;;  %v6948_v22 = vunpack.i.l.bf16 %v6947_v14  ;;  %v5280_v14 = vld [vmem:[%s8897_s1 + $0x48] ss:$0 sm:$0xff] }
 0x3fd   :  { %v7186_v29 = vpop.eup %7185 }
 0x3fe   :  { %v368_v12 = vpop.xlane.xlu0 %367  ;;  %v6491_v25 = vpack.c.bf16 %v6949_v16, %v6948_v22  ;;  %v387_v31 = vmul.f32 %v7186_v29, %v7580_v45  ;;  %v6499_v45 = vpack.c.bf16 %v579_v44, %v578_v43  ;;  %v806_v43 = vld [vmem:[%s8897_s1 + $0xa0] sm:$0xff] }
 0x3ff   :  { %v6952_v19 = vpop.permute.xlu1 %6951 }
 0x400   :  { %v6954_v23 = vunpack.i.h.bf16 %v6952_v19  ;;  %v6953_v24 = vunpack.i.l.bf16 %v6952_v19 }
 0x401   :  { %v7188_v13 = vpop.eup %7187 }
 0x402   :  { %v365_v18 = vpop.xlane.xlu0 %364  ;;  %v6495_v27 = vpack.c.bf16 %v6954_v23, %v6953_v24  ;;  %v7190_v33 = vpop.eup %7189  ;;  %v388_v34 = vmul.f32 %v7188_v13, %v7584_v52 }
 0x403   :  { %7193 = vrcp.f32 %v365_v18  ;;  %v389_v36 = vmul.f32 %v7190_v33, %v7586_v54  ;;  %v712_v33 = vld [vmem:[%s8897_s1 + $0x68] sm:$0xff] }
 0x404   :  { %7195 = vrcp.f32 %v368_v12 }
 0x405   :  { %v7192_v35 = vpop.eup %7191 }
 0x406   :  { %v6942_v15 = vpop.permute.xlu0 %6941  ;;  %v390_v32 = vmul.f32 %v7192_v35, %v7592_v58 }
 0x407   :  { %v6944_v17 = vunpack.i.h.bf16 %v6942_v15  ;;  %v6943_v20 = vunpack.i.l.bf16 %v6942_v15 }
 0x409   :  { %v6487_v21 = vpack.c.bf16 %v6944_v17, %v6943_v20 }
 0x40b   :  { %6488 = vmatprep.subr.bf16.mxu0 %v6487_v21 }
 0x40c   :  { %6490 = vmatpush3.bf16.msra.mxu0 %v6487_v21 }
 0x40d   :  { %6492 = vmatprep.subr.bf16.mxu0 %v6491_v25  ;;  %v7194_v37 = vpop.eup %7193 }
 0x40e   :  { %v7196_v38 = vpop.eup %7195  ;;  %v391_v39 = vmul.f32 %v7194_v37, %v7180_v63 }
 0x40f   :  { %v392_v42 = vmul.f32 %v7196_v38, %v7596_v61  ;;  %v804_v38 = vld [vmem:[%s8897_s1 + $0x90] sm:$0xff] }
 0x410   :  { %6494 = vmatpush3.bf16.msra.mxu0 %v6491_v25 }
 0x411   :  { %6496 = vmatprep.subr.bf16.mxu0 %v6495_v27 }
 0x414   :  { %6498 = vmatpush3.bf16.msra.mxu0 %v6495_v27 }
 0x415   :  { %6500 = vmatprep.subr.bf16.mxu0 %v6499_v45 }
 0x417   :  { %5886 = vmatmul.mubr.msk.f32.vlgmr.msra.gmra.mrb[2].mxu0 %vm296_vm3, %v386_v30 }
 0x418   :  { %5888 = vmatprep.mubr.msk.f32.mxu0 %vm296_vm3, %v387_v31  ;;  %6502 = vmatpush3.bf16.msra.mxu0 %v6499_v45  ;;  %v807_v45 = vld [vmem:[%s8897_s1 + $0xa8] sm:$0xff] }
 0x419   :  { %6504 = vmatprep.subr.bf16.mxu0 %v6503_v51  ;;  %v6523_v48 = vpack.c.bf16 %v808_v46, %v807_v45 }
 0x41b   :  { %5889 = vmatmul.mubr.msk.f32.gmra.mrb[4].mxu0 %vm296_vm3, %v388_v34  ;;  %v713_v34 = vld [vmem:[%s8897_s1 + $0x70] sm:$0xff] }
 0x41c   :  { %5891 = vmatprep.mubr.msk.f32.mxu0 %vm296_vm3, %v389_v36  ;;  %6506 = vmatpush3.bf16.msra.mxu0 %v6503_v51  ;;  %v714_v36 = vld [vmem:[%s8897_s1 + $0x78] sm:$0xff] }
 0x41d   :  { %v6511_v37 = vpack.c.bf16 %v714_v36, %v713_v34 }
 0x41f   :  { %5892 = vmatmul.mubr.msk.f32.gmra.mrb[6].mxu0 %vm296_vm3, %v390_v32  ;;  %v803_v32 = vld [vmem:[%s8897_s1 + $0x88] sm:$0xff] }
 0x420   :  { %5894 = vmatprep.mubr.msk.f32.mxu0 %vm296_vm3, %v391_v39  ;;  %v805_v39 = vld [vmem:[%s8897_s1 + $0x98] sm:$0xff] }
 0x421   :  { %v6519_v44 = vpack.c.bf16 %v806_v43, %v805_v39 }
 0x423   :  { %5895 = vmatmul.mubr.msk.f32.gmra.mrb[8].mxu0 %vm296_vm3, %v392_v42  ;;  %v6515_v42 = vpack.c.bf16 %v804_v38, %v803_v32  ;;  %v940_v32 = vld [vmem:[%s8897_s1 + $0xe8] sm:$0xff]  ;;  %v941_v38 = vld [vmem:[%s8897_s1 + $0xf0] sm:$0xff] }
 0x425   :  { %6516 = vmatprep.subr.bf16.mxu1 %v6515_v42 }
 0x426   :  { %6518 = vmatpush3.bf16.msra.mxu1 %v6515_v42  ;;  %v942_v42 = vld [vmem:[%s8897_s1 + $0xf8] sm:$0xff] }
 0x427   :  { %6520 = vmatprep.subr.bf16.mxu1 %v6519_v44  ;;  %v6535_v43 = vpack.c.bf16 %v942_v42, %v941_v38 }
 0x42a   :  { %6522 = vmatpush3.bf16.msra.mxu1 %v6519_v44 }
 0x42b   :  { %6524 = vmatprep.subr.bf16.mxu1 %v6523_v48 }
 0x42e   :  { %6526 = vmatpush3.bf16.msra.mxu1 %v6523_v48 }
 0x4ea   :  { %v5887_v49 = vpop.f32.mrb[2].mxu0 }
 0x4eb   :  { %v507_v52 = vpop.f32.mrb[3].mxu0 }
 0x4ee   :  { %v5890_v54 = vpop.f32.mrb[4].mxu0 }
 0x4ef   :  { %550 = vrot.lane.b32.xlu1 %v5890_v54, %s7418_s28  ;;  %v517_v55 = vpop.f32.mrb[5].mxu0 }
 0x4f2   :  { %v5893_v56 = vpop.f32.mrb[6].mxu0 }
 0x4f3   :  { %548 = vrot.lane.b32.xlu1 %v517_v55, %s7418_s28  ;;  %v527_v58 = vpop.f32.mrb[7].mxu0 }
 0x4f4   :  { %556 = vrot.lane.b32.xlu0 %v527_v58, %s7419_s29 }
 0x4f6   :  { %v5896_v59 = vpop.f32.mrb[8].mxu0 }
 0x4f7   :  { %558 = vrot.lane.b32.xlu1 %v5893_v56, %s7419_s29  ;;  %v537_v61 = vpop.f32.mrb[9].mxu0 }
 0x4f8   :  { %564 = vrot.lane.b32.xlu0 %v537_v61, %s7420_s30 }
 0x4fb   :  { %566 = vrot.lane.b32.xlu1 %v5896_v59, %s7420_s30  ;;  %v5283_v59 = vld [vmem:[%s8897_s1 + $0x50] ss:$0 sm:$0xff] }
 0x561   :  { %v551_v62 = vpop.permute.xlu1 %550 }
 0x562   :  { %v571_v9 = vsel %vm158_vm1, %v5887_v49, %v551_v62  ;;  %v5284_v62 = vld [vmem:[%s8897_s1 + $0x58] ss:$0 sm:$0xff] }
 0x565   :  { %v549_v63 = vpop.permute.xlu1 %548 }
 0x566   :  { %v557_v0 = vpop.permute.xlu0 %556  ;;  %v570_v2 = vsel %vm158_vm1, %v507_v52, %v549_v63 }
 0x567   :  { %v573_v4 = vsel %vm572_vm4, %v570_v2, %v557_v0 }
 0x569   :  { %v559_v3 = vpop.permute.xlu1 %558 }
 0x56a   :  { %v565_v6 = vpop.permute.xlu0 %564  ;;  %v574_v10 = vsel %vm572_vm4, %v571_v9, %v559_v3  ;;  %v810_v9 = vld [vmem:[%s8897_s1 + $0xc0] sm:$0xff] }
 0x56b   :  { %v576_v8 = vsel %vm575_vm5, %v573_v4, %v565_v6 }
 0x56c   :  { %5905 = vmatprep.mubr.msk.f32.mxu0 %vm46_vm0, %v576_v8  ;;  %v809_v8 = vld [vmem:[%s8897_s1 + $0xb8] sm:$0xff] }
 0x56d   :  { %v567_v11 = vpop.permute.xlu1 %566 }
 0x56e   :  { %v577_v12 = vsel %vm575_vm5, %v574_v10, %v567_v11  ;;  %v6527_v10 = vpack.c.bf16 %v810_v9, %v809_v8  ;;  %v5285_v11 = vld [vmem:[%s8897_s1 + $0x80] ss:$0 sm:$0xff] }
 0x56f   :  { %5906 = vmatmul.mubr.msk.f32.vlgmr.msra.gmra.mrb[10].mxu0 %vm46_vm0, %v577_v12 }
 0x570   :  { %6528 = vmatprep.subr.bf16.mxu1 %v6527_v10 }
 0x571   :  { %6530 = vmatpush3.bf16.msra.mxu1 %v6527_v10 }
 0x642   :  { %v5907_v18 = vpop.f32.mrb[10].mxu0 }
 0x643   :  { %v665_v15 = vadd.f32 %v5907_v18, %v5280_v14  ;;  %v659_v16 = vpop.f32.mrb[11].mxu0 }
 0x644   :  { %v660_v22 = vadd.f32 %v5280_v14, %v659_v16 }
 0x645   :  { %v669_v17 = vadd.f32 %v665_v15, %v7458_v7 }
 0x646   :  { %v668_v20 = vadd.f32 %v660_v22, %v7451_v5  ;;  %v711_v5 = vld [vmem:[%s8897_s1 + $0x60] sm:$0xff] }
 0x647   :  { %v675_v19 = vsel %vm46_vm0, %v669_v17, 0.0  ;;  %v6507_v35 = vpack.c.bf16 %v712_v33, %v711_v5 }
 0x648   :  { %676 = vadd.xlane.f32.xlu1 %v675_v19  ;;  %v672_v21 = vsel %vm46_vm0, %v668_v20, 0.0 }
 0x649   :  { %673 = vadd.xlane.f32.xlu0 %v672_v21  ;;  %6508 = vmatprep.subr.bf16.mxu0 %v6507_v35 }
 0x64a   :  { %6510 = vmatpush3.bf16.msra.mxu0 %v6507_v35 }
 0x64b   :  { %6512 = vmatprep.subr.bf16.mxu0 %v6511_v37 }
 0x64e   :  { %6514 = vmatpush3.bf16.msra.mxu0 %v6511_v37  ;;  %v939_v37 = vld [vmem:[%s8897_s1 + $0xe0] sm:$0xff] }
 0x64f   :  { %v6531_v39 = vpack.c.bf16 %v940_v32, %v939_v37 }
 0x651   :  { %6532 = vmatprep.subr.bf16.mxu0 %v6531_v39 }
 0x6d5   :  { %v677_v23 = vpop.xlane.xlu1 %676 }
 0x6d6   :  { %v680_v24 = vmul.f32 0.03125, %v677_v23  ;;  %v674_v25 = vpop.xlane.xlu0 %673 }
 0x6d7   :  { %v679_v27 = vmul.f32 0.03125, %v674_v25 }
 0x6d8   :  { %v682_v28 = vsub.f32 %v669_v17, %v680_v24  ;;  %v5288_v17 = vld [vmem:[%s8897_s1 + $0xc8] ss:$0 sm:$0xff] }
 0x6d9   :  { %v681_v29 = vsub.f32 %v668_v20, %v679_v27 }
 0x6da   :  { %v684_v31 = vmul.f32 %v682_v28, %v682_v28 }
 0x6db   :  { %v683_v30 = vmul.f32 %v681_v29, %v681_v29 }
 0x6dc   :  { %v688_v7 = vsel %vm46_vm0, %v684_v31, 0.0 }
 0x6dd   :  { %v685_v13 = vsel %vm46_vm0, %v683_v30, 0.0 }
 0x6de   :  { %686 = vadd.xlane.f32.xlu0 %v685_v13 }
 0x6e2   :  { %689 = vadd.xlane.f32.xlu0 %v688_v7 }
 0x76b   :  { %v687_v49 = vpop.xlane.xlu0 %686 }
 0x76c   :  { %v691_v51 = vmul.f32 0.03125, %v687_v49 }
 0x76e   :  { %v693_v52 = vadd.f32 1e-05, %v691_v51 }
 0x76f   :  { %v690_v54 = vpop.xlane.xlu0 %689 }
 0x770   :  { %7197 = vrsqrt.f32 %v693_v52  ;;  %v692_v55 = vmul.f32 0.03125, %v690_v54  ;;  %v5291_v54 = vld [vmem:[%s8897_s1 + $0xd0] ss:$0 sm:$0xff] }
 0x772   :  { %v694_v56 = vadd.f32 1e-05, %v692_v55 }
 0x774   :  { %7199 = vrsqrt.f32 %v694_v56 }
 0x77a   :  { %v7198_v58 = vpop.eup %7197 }
 0x77b   :  { %v697_v61 = vmul.f32 %v7198_v58, %v681_v29 }
 0x77d   :  { %v703_v63 = vmul.f32 %v5283_v59, %v697_v61 }
 0x77e   :  { %v7200_v0 = vpop.eup %7199 }
 0x77f   :  { %v698_v2 = vmul.f32 %v7200_v0, %v682_v28  ;;  %v709_v3 = vadd.f32 %v5284_v62, %v703_v63 }
 0x781   :  { %v704_v4 = vmul.f32 %v5283_v59, %v698_v2  ;;  %5916 = vmatprep.mubr.msk.f32.mxu0 %vm46_vm0, %v709_v3  ;;  %v5292_v59 = vld [vmem:[%s8897_s1 + $0xd8] ss:$0 sm:$0xff]  ;;  %v5293_v2 = vld [vmem:[%s8897_s1 + $0x100] ss:$0 sm:$0xff] }
 0x783   :  { %v710_v6 = vadd.f32 %v5284_v62, %v704_v4 }
 0x785   :  { %5917 = vmatmul.mubr.msk.f32.vlgmr.msra.gmra.mrb[12].mxu0 %vm46_vm0, %v710_v6 }
 0x786   :  { %6534 = vmatpush3.bf16.msra.mxu0 %v6531_v39 }
 0x787   :  { %6536 = vmatprep.subr.bf16.mxu0 %v6535_v43 }
 0x78a   :  { %6538 = vmatpush3.bf16.msra.mxu0 %v6535_v43 }
 0x858   :  { %v5918_v12 = vpop.f32.mrb[12].mxu0 }
 0x859   :  { %v798_v14 = vadd.f32 %v5918_v12, %v5285_v11  ;;  %v792_v18 = vpop.f32.mrb[13].mxu0 }
 0x85a   :  { %v793_v15 = vadd.f32 %v5285_v11, %v792_v18 }
 0x85b   :  { %v802_v22 = vmax.f32 %v798_v14, 0.0 }
 0x85c   :  { %v801_v16 = vmax.f32 %v793_v15, 0.0 }
 0x85e   :  { %5935 = vmatprep.mubr.msk.f32.mxu1 %vm296_vm3, %v801_v16 }
 0x85f   :  { %5936 = vmatmul.mubr.msk.f32.vlgmr.msra.gmra.mrb[8].mxu1 %vm296_vm3, %v802_v22 }
 0x932   :  { %v5937_v20 = vpop.f32.mrb[8].mxu1 }
 0x933   :  { %v894_v19 = vadd.f32 %v5937_v20, %v5288_v17  ;;  %v888_v21 = vpop.f32.mrb[9].mxu1 }
 0x934   :  { %v889_v23 = vadd.f32 %v5288_v17, %v888_v21 }
 0x935   :  { %v898_v24 = vadd.f32 %v894_v19, %v710_v6 }
 0x936   :  { %v897_v25 = vadd.f32 %v889_v23, %v709_v3 }
 0x937   :  { %v904_v27 = vsel %vm46_vm0, %v898_v24, 0.0 }
 0x938   :  { %905 = vadd.xlane.f32.xlu0 %v904_v27  ;;  %v901_v28 = vsel %vm46_vm0, %v897_v25, 0.0 }
 0x939   :  { %902 = vadd.xlane.f32.xlu1 %v901_v28 }
 0x9c5   :  { %v906_v29 = vpop.xlane.xlu0 %905 }
 0x9c6   :  { %v908_v30 = vmul.f32 0.03125, %v906_v29  ;;  %v903_v13 = vpop.xlane.xlu1 %902 }
 0x9c7   :  { %v907_v31 = vmul.f32 0.03125, %v903_v13 }
 0x9c8   :  { %v910_v7 = vsub.f32 %v898_v24, %v908_v30 }
 0x9c9   :  { %v909_v5 = vsub.f32 %v897_v25, %v907_v31 }
 0x9ca   :  { %v912_v33 = vmul.f32 %v910_v7, %v910_v7 }
 0x9cb   :  { %v911_v34 = vmul.f32 %v909_v5, %v909_v5 }
 0x9cc   :  { %v916_v35 = vsel %vm46_vm0, %v912_v33, 0.0 }
 0x9cd   :  { %917 = vadd.xlane.f32.xlu0 %v916_v35  ;;  %v913_v36 = vsel %vm46_vm0, %v911_v34, 0.0 }
 0x9ce   :  { %914 = vadd.xlane.f32.xlu1 %v913_v36 }
 0xa5a   :  { %v918_v44 = vpop.xlane.xlu0 %917 }
 0xa5b   :  { %v920_v45 = vmul.f32 0.03125, %v918_v44  ;;  %v915_v46 = vpop.xlane.xlu1 %914 }
 0xa5c   :  { %v919_v48 = vmul.f32 0.03125, %v915_v46 }
 0xa5d   :  { %v922_v49 = vadd.f32 1e-05, %v920_v45 }
 0xa5e   :  { %v921_v51 = vadd.f32 1e-05, %v919_v48 }
 0xa5f   :  { %7201 = vrsqrt.f32 %v922_v49 }
 0xa60   :  { %7203 = vrsqrt.f32 %v921_v51 }
 0xa69   :  { %v7202_v52 = vpop.eup %7201 }
 0xa6a   :  { %v7204_v55 = vpop.eup %7203  ;;  %v926_v56 = vmul.f32 %v7202_v52, %v910_v7 }
 0xa6b   :  { %v925_v58 = vmul.f32 %v7204_v55, %v909_v5 }
 0xa6c   :  { %v932_v61 = vmul.f32 %v5291_v54, %v926_v56 }
 0xa6d   :  { %v931_v62 = vmul.f32 %v5291_v54, %v925_v58 }
 0xa6e   :  { %v7732_v0 = vadd.f32 %v5292_v59, %v932_v61 }
 0xa6f   :  { %v7730_v63 = vadd.f32 %v5292_v59, %v931_v62 }
 0xa71   :  { %5946 = vmatprep.mubr.msk.f32.mxu0 %vm46_vm0, %v7730_v63 }
 0xa72   :  { %5947 = vmatmul.mubr.msk.f32.vlgmr.msra.gmra.mrb[14].mxu0 %vm46_vm0, %v7732_v0 }
 0xb45   :  { %v5948_v3 = vpop.f32.mrb[14].mxu0 }
 0xb46   :  { %v1026_v4 = vadd.f32 %v5948_v3, %v5293_v2  ;;  %v1020_v6 = vpop.f32.mrb[15].mxu0 }
 0xb47   :  { %v1021_v8 = vadd.f32 %v5293_v2, %v1020_v6 }
 0xb48   :  { %1033 = vrot.lane.b32.xlu0 %v1026_v4, %s7414_s24 }
 0xb49   :  { %1031 = vrot.lane.b32.xlu1 %v1021_v8, %s7414_s24  ;;  %5965 = vmatprep.mubr.msk.f32.mxu1 %vm158_vm1, %v1021_v8  ;;  %v7746_v9 = vpack.i.bf16 %v1026_v4, %v1021_v8 }
 0xb4c   :  { %1039 = vrot.lane.b32.xlu0 %v1021_v8, %s7415_s25 }
 0xb4d   :  { %1035 = vrot.lane.b32.xlu1 %v1021_v8, %s7413_s23 }
 0xb50   :  { %6956 = vrot.lane.b32.xlu0 %v7746_v9, %s7416_s26 }
 0xb51   :  { %1037 = vrot.lane.b32.xlu1 %v1026_v4, %s7413_s23 }
 0xb55   :  { %1041 = vrot.lane.b32.xlu1 %v1026_v4, %s7415_s25 }
 0xbba   :  { %v1034_v10 = vpop.permute.xlu0 %1033 }
 0xbbb   :  { %v1032_v11 = vpop.permute.xlu1 %1031 }
 0xbbc   :  { %v7752_v12 = vpack.i.bf16 %v1034_v10, %v1032_v11 }
 0xbbe   :  { %v1040_v14 = vpop.permute.xlu0 %1039  ;;  %6961 = vrot.lane.b32.xlu1 %v7752_v12, %s7416_s26 }
 0xbbf   :  { %v1036_v18 = vpop.permute.xlu1 %1035 }
 0xbc2   :  { %v6957_v15 = vpop.permute.xlu0 %6956 }
 0xbc3   :  { %v6959_v16 = vunpack.i.h.bf16 %v6957_v15  ;;  %v6958_v22 = vunpack.i.l.bf16 %v6957_v15  ;;  %v1038_v17 = vpop.permute.xlu1 %1037 }
 0xbc4   :  { %v7756_v20 = vpack.i.bf16 %v1038_v17, %v1036_v18 }
 0xbc5   :  { %v6539_v19 = vpack.c.bf16 %v6959_v16, %v6958_v22 }
 0xbc6   :  { %6966 = vrot.lane.b32.xlu0 %v7756_v20, %s7416_s26 }
 0xbc7   :  { %6541 = vmatprep.subr.msk.bf16.mxu1 %vm7490_vm2, %v6539_v19  ;;  %v1042_v21 = vpop.permute.xlu1 %1041 }
 0xbc8   :  { %6544 = vmatpush3.bf16.xpose.msk.msra.mxu1 %vm7490_vm2, %v6539_v19  ;;  %v7764_v23 = vpack.i.bf16 %v1042_v21, %v1040_v14 }
 0xbca   :  { %6971 = vrot.lane.b32.xlu1 %v7764_v23, %s7416_s26 }
 0xc30   :  { %v6962_v24 = vpop.permute.xlu1 %6961 }
 0xc31   :  { %v6964_v25 = vunpack.i.h.bf16 %v6962_v24  ;;  %v6963_v27 = vunpack.i.l.bf16 %v6962_v24 }
 0xc33   :  { %v6545_v28 = vpack.c.bf16 %v6964_v25, %v6963_v27 }
 0xc35   :  { %6547 = vmatprep.subr.msk.bf16.mxu1 %vm7490_vm2, %v6545_v28 }
 0xc36   :  { %6550 = vmatpush3.bf16.xpose.msk.msra.mxu1 %vm7490_vm2, %v6545_v28 }
 0xc38   :  { %v6967_v29 = vpop.permute.xlu0 %6966 }
 0xc39   :  { %v6969_v30 = vunpack.i.h.bf16 %v6967_v29  ;;  %v6968_v13 = vunpack.i.l.bf16 %v6967_v29 }
 0xc3b   :  { %v6551_v31 = vpack.c.bf16 %v6969_v30, %v6968_v13 }
 0xc3c   :  { %v6972_v7 = vpop.permute.xlu1 %6971 }
 0xc3d   :  { %v6974_v5 = vunpack.i.h.bf16 %v6972_v7  ;;  %v6973_v33 = vunpack.i.l.bf16 %v6972_v7  ;;  %6553 = vmatprep.subr.msk.bf16.mxu1 %vm7490_vm2, %v6551_v31 }
 0xc3e   :  { %6556 = vmatpush3.bf16.xpose.msk.msra.mxu1 %vm7490_vm2, %v6551_v31 }
 0xc3f   :  { %v6557_v34 = vpack.c.bf16 %v6974_v5, %v6973_v33 }
 0xc41   :  { %6559 = vmatprep.subr.msk.bf16.mxu1 %vm7490_vm2, %v6557_v34 }
 0xc46   :  { %6562 = vmatpush3.bf16.xpose.msk.msra.mxu1 %vm7490_vm2, %v6557_v34 }
 0xc4d   :  { %5966 = vmatmul.mubr.msk.f32.vlgmr.msra.gmra.mrb[10].mxu1 %vm158_vm1, %v1026_v4 }
 0xc4e   :  { %5968 = vmatprep.mubr.msk.f32.mxu1 %vm158_vm1, %v1032_v11 }
 0xc51   :  { %5969 = vmatmul.mubr.msk.f32.gmra.mrb[12].mxu1 %vm158_vm1, %v1034_v10 }
 0xc52   :  { %5971 = vmatprep.mubr.msk.f32.mxu1 %vm158_vm1, %v1036_v18 }
 0xc55   :  { %5972 = vmatmul.mubr.msk.f32.gmra.mrb[14].mxu1 %vm158_vm1, %v1038_v17 }
 0xc56   :  { %5974 = vmatprep.mubr.msk.f32.mxu1 %vm158_vm1, %v1040_v14 }
 0xc59   :  { %5975 = vmatmul.mubr.msk.f32.gmra.mrb[16].mxu1 %vm158_vm1, %v1042_v21 }
 0xd20   :  { %v5967_v35 = vpop.f32.mrb[10].mxu1 }
 0xd21   :  { %v1163_v36 = vadd.f32 %v5967_v35, %v7520_v40  ;;  %v1157_v37 = vpop.f32.mrb[11].mxu1 }
 0xd22   :  { %v1158_v32 = vadd.f32 %v1157_v37, %v7525_v41 }
 0xd23   :  { %v1199_v38 = vsel %vm296_vm3, %v1163_v36, -inf }
 0xd24   :  { %1200 = vmax.xlane.f32.xlu1 %v1199_v38  ;;  %v5970_v39 = vpop.f32.mrb[12].mxu1  ;;  %v1196_v42 = vsel %vm296_vm3, %v1158_v32, -inf }
 0xd25   :  { %v1167_v43 = vpop.f32.mrb[13].mxu1  ;;  %1197 = vmax.xlane.f32.xlu0 %v1196_v42  ;;  %v1173_v45 = vadd.f32 %v5970_v39, %v7539_v50 }
 0xd26   :  { %v1168_v44 = vadd.f32 %v1167_v43, %v7533_v47 }
 0xd27   :  { %v1205_v54 = vsel %vm296_vm3, %v1173_v45, -inf }
 0xd28   :  { %v5973_v46 = vpop.f32.mrb[14].mxu1  ;;  %v1202_v48 = vsel %vm296_vm3, %v1168_v44, -inf }
 0xd29   :  { %v1177_v49 = vpop.f32.mrb[15].mxu1  ;;  %1203 = vmax.xlane.f32.xlu0 %v1202_v48  ;;  %v1183_v41 = vadd.f32 %v5973_v46, %v7552_v57 }
 0xd2a   :  { %v1178_v40 = vadd.f32 %v1177_v49, %v7545_v53 }
 0xd2b   :  { %v1211_v58 = vsel %vm296_vm3, %v1183_v41, -inf }
 0xd2c   :  { %v5976_v51 = vpop.f32.mrb[16].mxu1  ;;  %v1208_v52 = vsel %vm296_vm3, %v1178_v40, -inf }
 0xd2d   :  { %v1187_v55 = vpop.f32.mrb[17].mxu1  ;;  %1209 = vmax.xlane.f32.xlu1 %v1208_v52  ;;  %1206 = vmax.xlane.f32.xlu0 %v1205_v54  ;;  %v1193_v50 = vadd.f32 %v5976_v51, %v7566_v1 }
 0xd2e   :  { %v1188_v47 = vadd.f32 %v1187_v55, %v7558_v60 }
 0xd2f   :  { %v1217_v53 = vsel %vm296_vm3, %v1193_v50, -inf }
 0xd30   :  { %v1214_v56 = vsel %vm296_vm3, %v1188_v47, -inf }
 0xd31   :  { %1215 = vmax.xlane.f32.xlu1 %v1214_v56  ;;  %1212 = vmax.xlane.f32.xlu0 %v1211_v58 }
 0xd35   :  { %1218 = vmax.xlane.f32.xlu0 %v1217_v53 }
 0xd42   :  { %6976 = vrot.lane.b32.xlu1 %v7746_v9, %s7417_s15 }
 0xdb1   :  { %v1201_v57 = vpop.xlane.xlu1 %1200 }
 0xdb2   :  { %v1221_v59 = vsub.f32 %v1163_v36, %v1201_v57  ;;  %v1198_v61 = vpop.xlane.xlu0 %1197 }
 0xdb3   :  { %v1220_v62 = vsub.f32 %v1158_v32, %v1198_v61 }
 0xdb4   :  { %v1230_v2 = vmul.f32 1.442695, %v1221_v59 }
 0xdb5   :  { %v1228_v60 = vmul.f32 1.442695, %v1220_v62 }
 0xdb6   :  { %7205 = vpow2.f32 %v1230_v2  ;;  %v1204_v1 = vpop.xlane.xlu0 %1203 }
 0xdb7   :  { %7207 = vpow2.f32 %v1228_v60  ;;  %v1222_v3 = vsub.f32 %v1168_v44, %v1204_v1 }
 0xdb9   :  { %v1232_v4 = vmul.f32 1.442695, %v1222_v3 }
 0xdba   :  { %v1210_v6 = vpop.xlane.xlu1 %1209  ;;  %v1207_v8 = vpop.xlane.xlu0 %1206 }
 0xdbb   :  { %7209 = vpow2.f32 %v1232_v4  ;;  %v1224_v10 = vsub.f32 %v1178_v40, %v1210_v6  ;;  %v1223_v11 = vsub.f32 %v1173_v45, %v1207_v8 }
 0xdbd   :  { %v1236_v14 = vmul.f32 1.442695, %v1224_v10  ;;  %v1234_v18 = vmul.f32 1.442695, %v1223_v11 }
 0xdbe   :  { %v1216_v15 = vpop.xlane.xlu1 %1215  ;;  %v1213_v9 = vpop.xlane.xlu0 %1212 }
 0xdbf   :  { %7211 = vpow2.f32 %v1236_v14  ;;  %v1225_v16 = vsub.f32 %v1183_v41, %v1213_v9  ;;  %v1226_v24 = vsub.f32 %v1188_v47, %v1216_v15 }
 0xdc0   :  { %v7805_v22 = vpop.eup %7205  ;;  %7213 = vpow2.f32 %v1234_v18 }
 0xdc1   :  { %v7208_v17 = vpop.eup %7207  ;;  %v1238_v19 = vmul.f32 1.442695, %v1225_v16  ;;  %v1247_v21 = vsel %vm296_vm3, %v7805_v22, 0.0  ;;  %v1240_v33 = vmul.f32 1.442695, %v1226_v24  ;;  %v1477_v24 = vld [vmem:[%s8897_s1 + $0x118] sm:$0xff] }
 0xdc2   :  { %v6977_v25 = vpop.permute.xlu1 %6976  ;;  %1248 = vadd.xlane.f32.xlu0 %v1247_v21  ;;  %v1219_v27 = vpop.xlane.xlu0 %1218  ;;  %v1244_v28 = vsel %vm296_vm3, %v7208_v17, 0.0 }
 0xdc3   :  { %v6979_v29 = vunpack.i.h.bf16 %v6977_v25  ;;  %v6978_v30 = vunpack.i.l.bf16 %v6977_v25  ;;  %v1227_v13 = vsub.f32 %v1193_v50, %v1219_v27  ;;  %1245 = vadd.xlane.f32.xlu1 %v1244_v28  ;;  %7215 = vpow2.f32 %v1238_v19  ;;  %v1476_v19 = vld [vmem:[%s8897_s1 + $0x110] sm:$0xff]  ;;  %v1478_v25 = vld [vmem:[%s8897_s1 + $0x120] sm:$0xff] }
 0xdc4   :  { %v6583_v27 = vpack.c.bf16 %v1478_v25, %v1477_v24 }
 0xdc5   :  { %v7810_v31 = vpop.eup %7209  ;;  %v1242_v7 = vmul.f32 1.442695, %v1227_v13  ;;  %v6563_v5 = vpack.c.bf16 %v6979_v29, %v6978_v30 }
 0xdc6   :  { %v1250_v34 = vsel %vm296_vm3, %v7810_v31, 0.0 }
 0xdc7   :  { %7217 = vpow2.f32 %v1242_v7  ;;  %6564 = vmatprep.subr.bf16.mxu0 %v6563_v5  ;;  %1251 = vadd.xlane.f32.xlu1 %v1250_v34 }
 0xdc8   :  { %6566 = vmatpush3.bf16.msra.mxu0 %v6563_v5  ;;  %7219 = vpow2.f32 %v1240_v33 }
 0xdc9   :  { %v7814_v35 = vpop.eup %7211 }
 0xdca   :  { %v7816_v36 = vpop.eup %7213  ;;  %v1256_v37 = vsel %vm296_vm3, %v7814_v35, 0.0 }
 0xdcb   :  { %1257 = vadd.xlane.f32.xlu1 %v1256_v37  ;;  %v1253_v32 = vsel %vm296_vm3, %v7816_v36, 0.0 }
 0xdcc   :  { %1254 = vadd.xlane.f32.xlu0 %v1253_v32 }
 0xdcd   :  { %v7822_v38 = vpop.eup %7215 }
 0xdce   :  { %v1259_v39 = vsel %vm296_vm3, %v7822_v38, 0.0 }
 0xdd0   :  { %1260 = vadd.xlane.f32.xlu0 %v1259_v39 }
 0xdd1   :  { %v7826_v42 = vpop.eup %7217 }
 0xdd2   :  { %v1265_v43 = vsel %vm296_vm3, %v7826_v42, 0.0  ;;  %v7220_v44 = vpop.eup %7219 }
 0xdd3   :  { %v1262_v45 = vsel %vm296_vm3, %v7220_v44, 0.0 }
 0xdd4   :  { %1266 = vadd.xlane.f32.xlu0 %v1265_v43 }
 0xdd8   :  { %1263 = vadd.xlane.f32.xlu0 %v1262_v45 }
 0xddc   :  { %6986 = vrot.lane.b32.xlu1 %v7756_v20, %s7417_s15 }
 0xde0   :  { %6991 = vrot.lane.b32.xlu1 %v7764_v23, %s7417_s15 }
 0xdee   :  { %6981 = vrot.lane.b32.xlu0 %v7752_v12, %s7417_s15 }
 0xe4f   :  { %v1249_v48 = vpop.xlane.xlu0 %1248 }
 0xe50   :  { %v1246_v46 = vpop.xlane.xlu1 %1245 }
 0xe51   :  { %7221 = vrcp.f32 %v1246_v46 }
 0xe52   :  { %7223 = vrcp.f32 %v1249_v48  ;;  %v5320_v48 = vld [vmem:[%s8897_s1 + $0x128] ss:$0 sm:$0xff] }
 0xe54   :  { %v1252_v49 = vpop.xlane.xlu1 %1251 }
 0xe55   :  { %7225 = vrcp.f32 %v1252_v49 }
 0xe58   :  { %v1258_v54 = vpop.xlane.xlu1 %1257 }
 0xe59   :  { %v1255_v40 = vpop.xlane.xlu0 %1254 }
 0xe5a   :  { %7227 = vrcp.f32 %v1255_v40 }
 0xe5b   :  { %v7222_v41 = vpop.eup %7221  ;;  %7229 = vrcp.f32 %v1258_v54 }
 0xe5c   :  { %v1284_v51 = vmul.f32 %v7222_v41, %v7208_v17  ;;  %v6987_v47 = vpop.permute.xlu1 %6986  ;;  %v7224_v60 = vpop.eup %7223  ;;  %v1475_v17 = vld [vmem:[%s8897_s1 + $0x108] sm:$0xff] }
 0xe5d   :  { %v1261_v52 = vpop.xlane.xlu0 %1260  ;;  %v6989_v56 = vunpack.i.h.bf16 %v6987_v47  ;;  %v6988_v23 = vunpack.i.l.bf16 %v6987_v47  ;;  %v1285_v3 = vmul.f32 %v7224_v60, %v7805_v22  ;;  %v6579_v21 = vpack.c.bf16 %v1476_v19, %v1475_v17  ;;  %v1610_v60 = vld [vmem:[%s8897_s1 + $0x158] sm:$0xff] }
 0xe5e   :  { %5993 = vmatprep.mubr.msk.f32.mxu0 %vm296_vm3, %v1284_v51  ;;  %7231 = vrcp.f32 %v1261_v52 }
 0xe5f   :  { %v6571_v62 = vpack.c.bf16 %v6989_v56, %v6988_v23  ;;  %v7226_v1 = vpop.eup %7225 }
 0xe60   :  { %v6992_v12 = vpop.permute.xlu1 %6991  ;;  %v1286_v6 = vmul.f32 %v7226_v1, %v7810_v31 }
 0xe61   :  { %v1267_v55 = vpop.xlane.xlu0 %1266  ;;  %v6994_v59 = vunpack.i.h.bf16 %v6992_v12  ;;  %v6993_v61 = vunpack.i.l.bf16 %v6992_v12 }
 0xe63   :  { %v6575_v2 = vpack.c.bf16 %v6994_v59, %v6993_v61  ;;  %v1608_v61 = vld [vmem:[%s8897_s1 + $0x148] sm:$0xff] }
 0xe64   :  { %v7228_v4 = vpop.eup %7227 }
 0xe65   :  { %v1264_v20 = vpop.xlane.xlu0 %1263  ;;  %v7230_v8 = vpop.eup %7229  ;;  %v1287_v10 = vmul.f32 %v7228_v4, %v7816_v36  ;;  %v1838_v4 = vld [vmem:[%s8897_s1 + $0x1c8] sm:$0xff] }
 0xe66   :  { %7233 = vrcp.f32 %v1264_v20  ;;  %v1288_v14 = vmul.f32 %v7230_v8, %v7814_v35  ;;  %v1699_v8 = vld [vmem:[%s8897_s1 + $0x168] sm:$0xff] }
 0xe67   :  { %7235 = vrcp.f32 %v1267_v55 }
 0xe68   :  { %v7232_v11 = vpop.eup %7231 }
 0xe69   :  { %v6982_v50 = vpop.permute.xlu0 %6981  ;;  %v1289_v15 = vmul.f32 %v7232_v11, %v7822_v38  ;;  %v1701_v11 = vld [vmem:[%s8897_s1 + $0x178] sm:$0xff] }
 0xe6a   :  { %v6984_v58 = vunpack.i.h.bf16 %v6982_v50  ;;  %v6983_v53 = vunpack.i.l.bf16 %v6982_v50 }
 0xe6c   :  { %v6567_v57 = vpack.c.bf16 %v6984_v58, %v6983_v53 }
 0xe6e   :  { %6568 = vmatprep.subr.bf16.mxu0 %v6567_v57 }
 0xe6f   :  { %6570 = vmatpush3.bf16.msra.mxu0 %v6567_v57 }
 0xe70   :  { %6572 = vmatprep.subr.bf16.mxu0 %v6571_v62  ;;  %v7234_v18 = vpop.eup %7233 }
 0xe71   :  { %v7236_v9 = vpop.eup %7235  ;;  %v1290_v16 = vmul.f32 %v7234_v18, %v7220_v44  ;;  %v1702_v18 = vld [vmem:[%s8897_s1 + $0x180] sm:$0xff] }
 0xe72   :  { %v1291_v22 = vmul.f32 %v7236_v9, %v7826_v42  ;;  %v1703_v9 = vld [vmem:[%s8897_s1 + $0x188] sm:$0xff] }
 0xe73   :  { %6574 = vmatpush3.bf16.msra.mxu0 %v6571_v62  ;;  %v1609_v62 = vld [vmem:[%s8897_s1 + $0x150] sm:$0xff] }
 0xe74   :  { %6576 = vmatprep.subr.bf16.mxu0 %v6575_v2  ;;  %v6591_v1 = vpack.c.bf16 %v1610_v60, %v1609_v62 }
 0xe77   :  { %6578 = vmatpush3.bf16.msra.mxu0 %v6575_v2 }
 0xe78   :  { %6580 = vmatprep.subr.bf16.mxu0 %v6579_v21 }
 0xe7a   :  { %5994 = vmatmul.mubr.msk.f32.vlgmr.msra.gmra.mrb[16].mxu0 %vm296_vm3, %v1285_v3  ;;  %v1837_v3 = vld [vmem:[%s8897_s1 + $0x1c0] sm:$0xff] }
 0xe7b   :  { %5996 = vmatprep.mubr.msk.f32.mxu0 %vm296_vm3, %v1286_v6  ;;  %6582 = vmatpush3.bf16.msra.mxu0 %v6579_v21  ;;  %v6611_v6 = vpack.c.bf16 %v1838_v4, %v1837_v3 }
 0xe7c   :  { %6584 = vmatprep.subr.bf16.mxu0 %v6583_v27 }
 0xe7e   :  { %5997 = vmatmul.mubr.msk.f32.gmra.mrb[18].mxu0 %vm296_vm3, %v1287_v10  ;;  %v1700_v10 = vld [vmem:[%s8897_s1 + $0x170] sm:$0xff] }
 0xe7f   :  { %5999 = vmatprep.mubr.msk.f32.mxu0 %vm296_vm3, %v1288_v14  ;;  %6586 = vmatpush3.bf16.msra.mxu0 %v6583_v27  ;;  %v6595_v14 = vpack.c.bf16 %v1700_v10, %v1699_v8 }
 0xe81   :  { %6596 = vmatprep.subr.bf16.mxu1 %v6595_v14 }
 0xe82   :  { %6000 = vmatmul.mubr.msk.f32.gmra.mrb[20].mxu0 %vm296_vm3, %v1289_v15  ;;  %v6599_v15 = vpack.c.bf16 %v1702_v18, %v1701_v11  ;;  %6598 = vmatpush3.bf16.msra.mxu1 %v6595_v14 }
 0xe83   :  { %6002 = vmatprep.mubr.msk.f32.mxu0 %vm296_vm3, %v1290_v16  ;;  %v1704_v16 = vld [vmem:[%s8897_s1 + $0x190] sm:$0xff] }
 0xe84   :  { %6600 = vmatprep.subr.bf16.mxu1 %v6599_v15 }
 0xe86   :  { %6003 = vmatmul.mubr.msk.f32.gmra.mrb[22].mxu0 %vm296_vm3, %v1291_v22  ;;  %v6603_v22 = vpack.c.bf16 %v1704_v16, %v1703_v9  ;;  %6602 = vmatpush3.bf16.msra.mxu1 %v6599_v15 }
 0xe88   :  { %6604 = vmatprep.subr.bf16.mxu1 %v6603_v22 }
 0xe8a   :  { %6606 = vmatpush3.bf16.msra.mxu1 %v6603_v22 }
 0xf4d   :  { %v5995_v28 = vpop.f32.mrb[16].mxu0 }
 0xf4e   :  { %v1406_v29 = vpop.f32.mrb[17].mxu0 }
 0xf51   :  { %v5998_v30 = vpop.f32.mrb[18].mxu0 }
 0xf52   :  { %1449 = vrot.lane.b32.xlu1 %v5998_v30, %s7418_s28  ;;  %v1416_v13 = vpop.f32.mrb[19].mxu0 }
 0xf55   :  { %v6001_v31 = vpop.f32.mrb[20].mxu0 }
 0xf56   :  { %1447 = vrot.lane.b32.xlu1 %v1416_v13, %s7418_s28  ;;  %v1426_v7 = vpop.f32.mrb[21].mxu0  ;;  %v5324_v13 = vld [vmem:[%s8897_s1 + $0x138] ss:$0 sm:$0xff] }
 0xf57   :  { %1455 = vrot.lane.b32.xlu0 %v1426_v7, %s7419_s29 }
 0xf59   :  { %v6004_v5 = vpop.f32.mrb[22].mxu0 }
 0xf5a   :  { %1457 = vrot.lane.b32.xlu1 %v6001_v31, %s7419_s29  ;;  %v1436_v33 = vpop.f32.mrb[23].mxu0 }
 0xf5b   :  { %1463 = vrot.lane.b32.xlu0 %v1436_v33, %s7420_s30 }
 0xf5e   :  { %1465 = vrot.lane.b32.xlu1 %v6004_v5, %s7420_s30 }
 0xfc4   :  { %v1450_v34 = vpop.permute.xlu1 %1449 }
 0xfc5   :  { %v1470_v43 = vsel %vm158_vm1, %v5995_v28, %v1450_v34  ;;  %v1839_v34 = vld [vmem:[%s8897_s1 + $0x1d0] sm:$0xff] }
 0xfc8   :  { %v1448_v35 = vpop.permute.xlu1 %1447 }
 0xfc9   :  { %v1456_v36 = vpop.permute.xlu0 %1455  ;;  %v1469_v37 = vsel %vm158_vm1, %v1406_v29, %v1448_v35  ;;  %v5323_v29 = vld [vmem:[%s8897_s1 + $0x130] ss:$0 sm:$0xff]  ;;  %v1840_v35 = vld [vmem:[%s8897_s1 + $0x1d8] sm:$0xff] }
 0xfca   :  { %v1471_v38 = vsel %vm572_vm4, %v1469_v37, %v1456_v36 }
 0xfcc   :  { %v1458_v32 = vpop.permute.xlu1 %1457 }
 0xfcd   :  { %v1464_v39 = vpop.permute.xlu0 %1463  ;;  %v1472_v44 = vsel %vm572_vm4, %v1470_v43, %v1458_v32  ;;  %v6615_v32 = vpack.c.bf16 %v1840_v35, %v1839_v34  ;;  %v1706_v43 = vld [vmem:[%s8897_s1 + $0x1a0] sm:$0xff] }
 0xfce   :  { %v1473_v42 = vsel %vm575_vm5, %v1471_v38, %v1464_v39  ;;  %v7943_v38 = vld [vmem:[%s8898_s0 + $0x10] sm:$0xff]  ;;  %v7952_v39 = vld [vmem:[%s8898_s0 + $0x18] sm:$0xff]  ;;  %v31_v35 = vld [vmem:[%s8898_s0 + $0xc0] sm:$0xff] }
 0xfcf   :  { %6013 = vmatprep.mubr.msk.f32.mxu0 %vm46_vm0, %v1473_v42  ;;  %v1705_v42 = vld [vmem:[%s8897_s1 + $0x198] sm:$0xff] }
 0xfd0   :  { %v1466_v45 = vpop.permute.xlu1 %1465 }
 0xfd1   :  { %v1474_v46 = vsel %vm575_vm5, %v1472_v44, %v1466_v45  ;;  %v6607_v44 = vpack.c.bf16 %v1706_v43, %v1705_v42  ;;  %v5325_v45 = vld [vmem:[%s8897_s1 + $0x160] ss:$0 sm:$0xff]  ;;  %v32_v43 = vld [vmem:[%s8898_s0 + $0xc8] sm:$0xff] }
 0xfd2   :  { %6014 = vmatmul.mubr.msk.f32.vlgmr.msra.gmra.mrb[24].mxu0 %vm46_vm0, %v1474_v46 }
 0xfd3   :  { %6608 = vmatprep.subr.bf16.mxu1 %v6607_v44 }
 0xfd4   :  { %6610 = vmatpush3.bf16.msra.mxu1 %v6607_v44 }
0x10a5   :  { %v6015_v49 = vpop.f32.mrb[24].mxu0 }
0x10a6   :  { %v1562_v40 = vadd.f32 %v6015_v49, %v5320_v48  ;;  %v1556_v41 = vpop.f32.mrb[25].mxu0 }
0x10a7   :  { %v1557_v51 = vadd.f32 %v5320_v48, %v1556_v41 }
0x10a8   :  { %v1566_v52 = vadd.f32 %v1562_v40, %v7732_v0 }
0x10a9   :  { %v1565_v54 = vadd.f32 %v1557_v51, %v7730_v63  ;;  %v1607_v63 = vld [vmem:[%s8897_s1 + $0x140] sm:$0xff] }
0x10aa   :  { %v1572_v55 = vsel %vm46_vm0, %v1566_v52, 0.0  ;;  %v6587_v2 = vpack.c.bf16 %v1608_v61, %v1607_v63 }
0x10ab   :  { %1573 = vadd.xlane.f32.xlu1 %v1572_v55  ;;  %v1569_v47 = vsel %vm46_vm0, %v1565_v54, 0.0 }
0x10ac   :  { %1570 = vadd.xlane.f32.xlu0 %v1569_v47  ;;  %6588 = vmatprep.subr.bf16.mxu0 %v6587_v2 }
0x10ad   :  { %6590 = vmatpush3.bf16.msra.mxu0 %v6587_v2 }
0x10ae   :  { %6592 = vmatprep.subr.bf16.mxu0 %v6591_v1 }
0x10b1   :  { %6594 = vmatpush3.bf16.msra.mxu0 %v6591_v1 }
0x10b2   :  { %6612 = vmatprep.subr.bf16.mxu0 %v6611_v6 }
0x1138   :  { %v1574_v20 = vpop.xlane.xlu1 %1573 }
0x1139   :  { %v1576_v50 = vmul.f32 0.03125, %v1574_v20  ;;  %v1571_v56 = vpop.xlane.xlu0 %1570 }
0x113a   :  { %v1575_v23 = vmul.f32 0.03125, %v1571_v56 }
0x113b   :  { %v1578_v58 = vsub.f32 %v1566_v52, %v1576_v50  ;;  %v5333_v52 = vld [vmem:[%s8897_s1 + $0x1e0] ss:$0 sm:$0xff] }
0x113c   :  { %v1577_v53 = vsub.f32 %v1565_v54, %v1575_v23 }
0x113d   :  { %v1580_v59 = vmul.f32 %v1578_v58, %v1578_v58 }
0x113e   :  { %v1579_v12 = vmul.f32 %v1577_v53, %v1577_v53 }
0x113f   :  { %v1584_v0 = vsel %vm46_vm0, %v1580_v59, 0.0 }
0x1140   :  { %v1581_v57 = vsel %vm46_vm0, %v1579_v12, 0.0 }
0x1141   :  { %1582 = vadd.xlane.f32.xlu0 %v1581_v57 }
0x1145   :  { %1585 = vadd.xlane.f32.xlu0 %v1584_v0 }
0x11ce   :  { %v1583_v17 = vpop.xlane.xlu0 %1582 }
0x11cf   :  { %v1587_v19 = vmul.f32 0.03125, %v1583_v17 }
0x11d1   :  { %v1589_v21 = vadd.f32 1e-05, %v1587_v19  ;;  %v28_v19 = vld [vmem:[%s8898_s0 + $0xa8] sm:$0xff] }
0x11d2   :  { %v1586_v24 = vpop.xlane.xlu0 %1585 }
0x11d3   :  { %7237 = vrsqrt.f32 %v1589_v21  ;;  %v1588_v25 = vmul.f32 0.03125, %v1586_v24  ;;  %v27_v21 = vld [vmem:[%s8898_s0 + $0xa0] sm:$0xff] }
0x11d5   :  { %v1590_v27 = vadd.f32 1e-05, %v1588_v25 }
0x11d7   :  { %7239 = vrsqrt.f32 %v1590_v27 }
0x11dd   :  { %v7238_v28 = vpop.eup %7237 }
0x11de   :  { %v1593_v30 = vmul.f32 %v7238_v28, %v1577_v53 }
0x11e0   :  { %v1599_v31 = vmul.f32 %v5323_v29, %v1593_v30  ;;  %v29_v30 = vld [vmem:[%s8898_s0 + $0xb0] sm:$0xff] }
0x11e1   :  { %v7240_v7 = vpop.eup %7239 }
0x11e2   :  { %v1594_v5 = vmul.f32 %v7240_v7, %v1578_v58  ;;  %v7928_v33 = vadd.f32 %v5324_v13, %v1599_v31  ;;  %v30_v7 = vld [vmem:[%s8898_s0 + $0xb8] sm:$0xff] }
0x11e4   :  { %v1600_v36 = vmul.f32 %v5323_v29, %v1594_v5  ;;  %6024 = vmatprep.mubr.msk.f32.mxu0 %vm46_vm0, %v7928_v33 }
0x11e6   :  { %v7938_v37 = vadd.f32 %v5324_v13, %v1600_v36 }
0x11e8   :  { %6025 = vmatmul.mubr.msk.f32.vlgmr.msra.gmra.mrb[26].mxu0 %vm46_vm0, %v7938_v37 }
0x11e9   :  { %6614 = vmatpush3.bf16.msra.mxu0 %v6611_v6  ;;  %6054 = vmatprep.mubr.msk.f32.mxu0 %vm46_vm0, %v7943_v38 }
0x11ea   :  { %6616 = vmatprep.subr.bf16.mxu0 %v6615_v32 }
0x11ed   :  { %6618 = vmatpush3.bf16.msra.mxu0 %v6615_v32 }
0x11f0   :  { %6055 = vmatmul.mubr.msk.f32.vlgmr.msra.gmra.mrb[28].mxu0 %vm46_vm0, %v7952_v39 }
0x12bb   :  { %v6026_v46 = vpop.f32.mrb[26].mxu0 }
0x12bc   :  { %v1694_v48 = vadd.f32 %v6026_v46, %v5325_v45  ;;  %v1688_v49 = vpop.f32.mrb[27].mxu0  ;;  %v33_v46 = vld [vmem:[%s8898_s0 + $0xd0] sm:$0xff] }
0x12bd   :  { %v1689_v40 = vadd.f32 %v5325_v45, %v1688_v49 }
0x12be   :  { %v1698_v51 = vmax.f32 %v1694_v48, 0.0 }
0x12bf   :  { %v1697_v41 = vmax.f32 %v1689_v40, 0.0 }
0x12c1   :  { %6043 = vmatprep.mubr.msk.f32.mxu1 %vm296_vm3, %v1697_v41 }
0x12c2   :  { %6044 = vmatmul.mubr.msk.f32.vlgmr.msra.gmra.mrb[18].mxu1 %vm296_vm3, %v1698_v51  ;;  %v34_v51 = vld [vmem:[%s8898_s0 + $0xd8] sm:$0xff] }
0x12c3   :  { %v6056_v54 = vpop.f32.mrb[28].mxu0 }
0x12c4   :  { %v1924_v55 = vadd.f32 %v6056_v54, %v5333_v52  ;;  %v1918_v47 = vpop.f32.mrb[29].mxu0 }
0x12c5   :  { %v1919_v20 = vadd.f32 %v5333_v52, %v1918_v47 }
0x12c6   :  { %1931 = vrot.lane.b32.xlu0 %v1924_v55, %s7414_s24 }
0x12c7   :  { %1929 = vrot.lane.b32.xlu1 %v1919_v20, %s7414_s24  ;;  %6073 = vmatprep.mubr.msk.f32.mxu1 %vm158_vm1, %v1919_v20  ;;  %v7975_v50 = vpack.i.bf16 %v1924_v55, %v1919_v20 }
0x12ca   :  { %1937 = vrot.lane.b32.xlu0 %v1919_v20, %s7415_s25 }
0x12cb   :  { %1933 = vrot.lane.b32.xlu1 %v1919_v20, %s7413_s23 }
0x12ce   :  { %6996 = vrot.lane.b32.xlu0 %v7975_v50, %s7416_s26 }
0x12cf   :  { %1935 = vrot.lane.b32.xlu1 %v1924_v55, %s7413_s23 }
0x12d3   :  { %1939 = vrot.lane.b32.xlu1 %v1924_v55, %s7415_s25 }
0x1338   :  { %v1932_v56 = vpop.permute.xlu0 %1931 }
0x1339   :  { %v1930_v23 = vpop.permute.xlu1 %1929 }
0x133a   :  { %v7981_v58 = vpack.i.bf16 %v1932_v56, %v1930_v23 }
0x133c   :  { %v1938_v53 = vpop.permute.xlu0 %1937  ;;  %7001 = vrot.lane.b32.xlu1 %v7981_v58, %s7416_s26 }
0x133d   :  { %v1934_v12 = vpop.permute.xlu1 %1933 }
0x1340   :  { %v6997_v57 = vpop.permute.xlu0 %6996 }
0x1341   :  { %v6999_v59 = vunpack.i.h.bf16 %v6997_v57  ;;  %v6998_v0 = vunpack.i.l.bf16 %v6997_v57  ;;  %v1936_v63 = vpop.permute.xlu1 %1935 }
0x1342   :  { %v7985_v61 = vpack.i.bf16 %v1936_v63, %v1934_v12 }
0x1343   :  { %v6619_v62 = vpack.c.bf16 %v6999_v59, %v6998_v0 }
0x1344   :  { %7006 = vrot.lane.b32.xlu0 %v7985_v61, %s7416_s26 }
0x1345   :  { %6621 = vmatprep.subr.msk.bf16.mxu1 %vm7490_vm2, %v6619_v62  ;;  %v1940_v2 = vpop.permute.xlu1 %1939 }
0x1346   :  { %6624 = vmatpush3.bf16.xpose.msk.msra.mxu1 %vm7490_vm2, %v6619_v62  ;;  %v7993_v60 = vpack.i.bf16 %v1940_v2, %v1938_v53 }
0x1348   :  { %7011 = vrot.lane.b32.xlu1 %v7993_v60, %s7416_s26 }
0x1395   :  { %v7997_v1 = vpop.f32.mrb[18].mxu1 }
0x1396   :  { %v7999_v3 = vpop.f32.mrb[19].mxu1 }
0x13ae   :  { %v7002_v4 = vpop.permute.xlu1 %7001 }
0x13af   :  { %v7004_v6 = vunpack.i.h.bf16 %v7002_v4  ;;  %v7003_v8 = vunpack.i.l.bf16 %v7002_v4 }
0x13b1   :  { %v6625_v10 = vpack.c.bf16 %v7004_v6, %v7003_v8 }
0x13b3   :  { %6627 = vmatprep.subr.msk.bf16.mxu1 %vm7490_vm2, %v6625_v10 }
0x13b4   :  { %6630 = vmatpush3.bf16.xpose.msk.msra.mxu1 %vm7490_vm2, %v6625_v10 }
0x13b6   :  { %v7007_v11 = vpop.permute.xlu0 %7006 }
0x13b7   :  { %v7009_v14 = vunpack.i.h.bf16 %v7007_v11  ;;  %v7008_v18 = vunpack.i.l.bf16 %v7007_v11 }
0x13b9   :  { %v6631_v15 = vpack.c.bf16 %v7009_v14, %v7008_v18 }
0x13ba   :  { %v7012_v9 = vpop.permute.xlu1 %7011 }
0x13bb   :  { %v7014_v16 = vunpack.i.h.bf16 %v7012_v9  ;;  %v7013_v22 = vunpack.i.l.bf16 %v7012_v9  ;;  %6633 = vmatprep.subr.msk.bf16.mxu1 %vm7490_vm2, %v6631_v15 }
0x13bc   :  { %6636 = vmatpush3.bf16.xpose.msk.msra.mxu1 %vm7490_vm2, %v6631_v15 }
0x13bd   :  { %v6637_v17 = vpack.c.bf16 %v7014_v16, %v7013_v22 }
0x13bf   :  { %6639 = vmatprep.subr.msk.bf16.mxu1 %vm7490_vm2, %v6637_v17 }
0x13c4   :  { %6642 = vmatpush3.bf16.xpose.msk.msra.mxu1 %vm7490_vm2, %v6637_v17 }
0x13cb   :  { %6074 = vmatmul.mubr.msk.f32.vlgmr.msra.gmra.mrb[20].mxu1 %vm158_vm1, %v1924_v55 }
0x13cc   :  { %6076 = vmatprep.mubr.msk.f32.mxu1 %vm158_vm1, %v1930_v23 }
0x13cf   :  { %6077 = vmatmul.mubr.msk.f32.gmra.mrb[22].mxu1 %vm158_vm1, %v1932_v56 }
0x13d0   :  { %6079 = vmatprep.mubr.msk.f32.mxu1 %vm158_vm1, %v1934_v12 }
0x13d3   :  { %6080 = vmatmul.mubr.msk.f32.gmra.mrb[24].mxu1 %vm158_vm1, %v1936_v63 }
0x13d4   :  { %6082 = vmatprep.mubr.msk.f32.mxu1 %vm158_vm1, %v1938_v53 }
0x13d7   :  { %6083 = vmatmul.mubr.msk.f32.gmra.mrb[26].mxu1 %vm158_vm1, %v1940_v2 }
0x149e   :  { %v6075_v24 = vpop.f32.mrb[20].mxu1 }
0x149f   :  { %v2061_v25 = vadd.f32 %v6075_v24, %v28_v19  ;;  %v2055_v27 = vpop.f32.mrb[21].mxu1 }
0x14a0   :  { %v2056_v28 = vadd.f32 %v2055_v27, %v27_v21 }
0x14a1   :  { %v2097_v29 = vsel %vm296_vm3, %v2061_v25, -inf }
0x14a2   :  { %2098 = vmax.xlane.f32.xlu1 %v2097_v29  ;;  %v6078_v13 = vpop.f32.mrb[22].mxu1  ;;  %v2094_v31 = vsel %vm296_vm3, %v2056_v28, -inf }
0x14a3   :  { %v2065_v5 = vpop.f32.mrb[23].mxu1  ;;  %2095 = vmax.xlane.f32.xlu0 %v2094_v31  ;;  %v2071_v36 = vadd.f32 %v6078_v13, %v30_v7 }
0x14a4   :  { %v2066_v34 = vadd.f32 %v2065_v5, %v29_v30 }
0x14a5   :  { %v2103_v41 = vsel %vm296_vm3, %v2071_v36, -inf }
0x14a6   :  { %v6081_v32 = vpop.f32.mrb[24].mxu1  ;;  %v2100_v42 = vsel %vm296_vm3, %v2066_v34, -inf }
0x14a7   :  { %v2075_v44 = vpop.f32.mrb[25].mxu1  ;;  %2101 = vmax.xlane.f32.xlu0 %v2100_v42  ;;  %v2081_v48 = vadd.f32 %v6081_v32, %v32_v43 }
0x14a8   :  { %v2076_v45 = vadd.f32 %v2075_v44, %v31_v35 }
0x14a9   :  { %v2109_v20 = vsel %vm296_vm3, %v2081_v48, -inf }
0x14aa   :  { %v6084_v49 = vpop.f32.mrb[26].mxu1  ;;  %v2106_v40 = vsel %vm296_vm3, %v2076_v45, -inf }
0x14ab   :  { %v2085_v52 = vpop.f32.mrb[27].mxu1  ;;  %2107 = vmax.xlane.f32.xlu1 %v2106_v40  ;;  %2104 = vmax.xlane.f32.xlu0 %v2103_v41  ;;  %v2091_v55 = vadd.f32 %v6084_v49, %v34_v51 }
0x14ac   :  { %v2086_v54 = vadd.f32 %v2085_v52, %v33_v46 }
0x14ad   :  { %v2115_v56 = vsel %vm296_vm3, %v2091_v55, -inf }
0x14ae   :  { %v2112_v47 = vsel %vm296_vm3, %v2086_v54, -inf }
0x14af   :  { %2113 = vmax.xlane.f32.xlu1 %v2112_v47  ;;  %2110 = vmax.xlane.f32.xlu0 %v2109_v20 }
0x14b3   :  { %2116 = vmax.xlane.f32.xlu0 %v2115_v56 }
0x14c0   :  { %7016 = vrot.lane.b32.xlu1 %v7975_v50, %s7417_s15 }
0x152f   :  { %v2099_v23 = vpop.xlane.xlu1 %2098 }
0x1530   :  { %v2119_v53 = vsub.f32 %v2061_v25, %v2099_v23  ;;  %v2096_v12 = vpop.xlane.xlu0 %2095 }
0x1531   :  { %v2118_v57 = vsub.f32 %v2056_v28, %v2096_v12 }
0x1532   :  { %v2128_v59 = vmul.f32 1.442695, %v2119_v53 }
0x1533   :  { %v2126_v0 = vmul.f32 1.442695, %v2118_v57 }
0x1534   :  { %7241 = vpow2.f32 %v2128_v59  ;;  %v2102_v63 = vpop.xlane.xlu0 %2101 }
0x1535   :  { %7243 = vpow2.f32 %v2126_v0  ;;  %v2120_v62 = vsub.f32 %v2066_v34, %v2102_v63 }
0x1537   :  { %v2130_v2 = vmul.f32 1.442695, %v2120_v62 }
0x1538   :  { %v2108_v4 = vpop.xlane.xlu1 %2107  ;;  %v2105_v6 = vpop.xlane.xlu0 %2104 }
0x1539   :  { %7245 = vpow2.f32 %v2130_v2  ;;  %v2122_v8 = vsub.f32 %v2076_v45, %v2108_v4  ;;  %v2121_v10 = vsub.f32 %v2071_v36, %v2105_v6 }
0x153b   :  { %v2134_v11 = vmul.f32 1.442695, %v2122_v8  ;;  %v2132_v14 = vmul.f32 1.442695, %v2121_v10 }
0x153c   :  { %v2114_v18 = vpop.xlane.xlu1 %2113  ;;  %v2111_v50 = vpop.xlane.xlu0 %2110 }
0x153d   :  { %7247 = vpow2.f32 %v2134_v11  ;;  %v2123_v15 = vsub.f32 %v2081_v48, %v2111_v50  ;;  %v2124_v19 = vsub.f32 %v2086_v54, %v2114_v18 }
0x153e   :  { %v8054_v9 = vpop.eup %7241  ;;  %7249 = vpow2.f32 %v2132_v14 }
0x153f   :  { %v7244_v16 = vpop.eup %7243  ;;  %v2136_v22 = vmul.f32 1.442695, %v2123_v15  ;;  %v2145_v17 = vsel %vm296_vm3, %v8054_v9, 0.0  ;;  %v2138_v7 = vmul.f32 1.442695, %v2124_v19 }
0x1540   :  { %v7017_v21 = vpop.permute.xlu1 %7016  ;;  %2146 = vadd.xlane.f32.xlu0 %v2145_v17  ;;  %v2117_v24 = vpop.xlane.xlu0 %2116  ;;  %v2142_v25 = vsel %vm296_vm3, %v7244_v16, 0.0 }
0x1541   :  { %v7019_v27 = vunpack.i.h.bf16 %v7017_v21  ;;  %v7018_v28 = vunpack.i.l.bf16 %v7017_v21  ;;  %v2125_v29 = vsub.f32 %v2091_v55, %v2117_v24  ;;  %2143 = vadd.xlane.f32.xlu1 %v2142_v25  ;;  %7251 = vpow2.f32 %v2136_v22  ;;  %v2373_v21 = vld [vmem:[%s8897_s1 + $0x1e8] sm:$0xff]  ;;  %v2374_v24 = vld [vmem:[%s8897_s1 + $0x1f0] sm:$0xff] }
0x1542   :  { %v6659_v25 = vpack.c.bf16 %v2374_v24, %v2373_v21 }
0x1543   :  { %v8059_v30 = vpop.eup %7245  ;;  %v2140_v13 = vmul.f32 1.442695, %v2125_v29  ;;  %v6643_v31 = vpack.c.bf16 %v7019_v27, %v7018_v28  ;;  %v2375_v27 = vld [vmem:[%s8897_s1 + $0x1f8] sm:$0xff]  ;;  %v2376_v28 = vld [vmem:[%s8897_s1 + $0x200] sm:$0xff] }
0x1544   :  { %v2148_v5 = vsel %vm296_vm3, %v8059_v30, 0.0  ;;  %v6663_v29 = vpack.c.bf16 %v2376_v28, %v2375_v27 }
0x1545   :  { %7253 = vpow2.f32 %v2140_v13  ;;  %6644 = vmatprep.subr.bf16.mxu0 %v6643_v31  ;;  %2149 = vadd.xlane.f32.xlu1 %v2148_v5 }
0x1546   :  { %6646 = vmatpush3.bf16.msra.mxu0 %v6643_v31  ;;  %7255 = vpow2.f32 %v2138_v7 }
0x1547   :  { %v8063_v34 = vpop.eup %7247 }
0x1548   :  { %v8065_v35 = vpop.eup %7249  ;;  %v2154_v36 = vsel %vm296_vm3, %v8063_v34, 0.0 }
0x1549   :  { %2155 = vadd.xlane.f32.xlu1 %v2154_v36  ;;  %v2151_v32 = vsel %vm296_vm3, %v8065_v35, 0.0 }
0x154a   :  { %2152 = vadd.xlane.f32.xlu0 %v2151_v32  ;;  %v5328_v32 = vld [vmem:[%s8897_s1 + $0x1a8] ss:$0 sm:$0xff] }
0x154b   :  { %v8071_v42 = vpop.eup %7251 }
0x154c   :  { %v2157_v43 = vsel %vm296_vm3, %v8071_v42, 0.0 }
0x154e   :  { %2158 = vadd.xlane.f32.xlu0 %v2157_v43 }
0x154f   :  { %v8075_v44 = vpop.eup %7253 }
0x1550   :  { %v2163_v45 = vsel %vm296_vm3, %v8075_v44, 0.0  ;;  %v7256_v46 = vpop.eup %7255 }
0x1551   :  { %v2160_v48 = vsel %vm296_vm3, %v7256_v46, 0.0 }
0x1552   :  { %2164 = vadd.xlane.f32.xlu0 %v2163_v45 }
0x1556   :  { %2161 = vadd.xlane.f32.xlu0 %v2160_v48 }
0x155a   :  { %7026 = vrot.lane.b32.xlu1 %v7985_v61, %s7417_s15 }
0x155e   :  { %7031 = vrot.lane.b32.xlu1 %v7993_v60, %s7417_s15 }
0x156c   :  { %7021 = vrot.lane.b32.xlu0 %v7981_v58, %s7417_s15 }
0x15cd   :  { %v2147_v40 = vpop.xlane.xlu0 %2146 }
0x15ce   :  { %v2144_v49 = vpop.xlane.xlu1 %2143 }
0x15cf   :  { %7257 = vrcp.f32 %v2144_v49 }
0x15d0   :  { %7259 = vrcp.f32 %v2147_v40 }
0x15d2   :  { %v2150_v41 = vpop.xlane.xlu1 %2149 }
0x15d3   :  { %7261 = vrcp.f32 %v2150_v41 }
0x15d6   :  { %v2156_v47 = vpop.xlane.xlu1 %2155 }
0x15d7   :  { %v2153_v51 = vpop.xlane.xlu0 %2152 }
0x15d8   :  { %7263 = vrcp.f32 %v2153_v51 }
0x15d9   :  { %v7258_v52 = vpop.eup %7257  ;;  %7265 = vrcp.f32 %v2156_v47 }
0x15da   :  { %v2182_v54 = vmul.f32 %v7258_v52, %v7244_v16  ;;  %v7027_v56 = vpop.permute.xlu1 %7026  ;;  %v7260_v4 = vpop.eup %7259 }
0x15db   :  { %v2159_v55 = vpop.xlane.xlu0 %2158  ;;  %v7029_v53 = vunpack.i.h.bf16 %v7027_v56  ;;  %v7028_v60 = vunpack.i.l.bf16 %v7027_v56  ;;  %v2183_v8 = vmul.f32 %v7260_v4, %v8054_v9 }
0x15dc   :  { %6101 = vmatprep.mubr.msk.f32.mxu0 %vm296_vm3, %v2182_v54  ;;  %7267 = vrcp.f32 %v2159_v55 }
0x15dd   :  { %v6651_v62 = vpack.c.bf16 %v7029_v53, %v7028_v60  ;;  %v7262_v6 = vpop.eup %7261 }
0x15de   :  { %v7032_v58 = vpop.permute.xlu1 %7031  ;;  %v2184_v11 = vmul.f32 %v7262_v6, %v8059_v30 }
0x15df   :  { %v2165_v20 = vpop.xlane.xlu0 %2164  ;;  %v7034_v0 = vunpack.i.h.bf16 %v7032_v58  ;;  %v7033_v63 = vunpack.i.l.bf16 %v7032_v58 }
0x15e1   :  { %v6655_v2 = vpack.c.bf16 %v7034_v0, %v7033_v63 }
0x15e2   :  { %v7264_v10 = vpop.eup %7263 }
0x15e3   :  { %v2162_v61 = vpop.xlane.xlu0 %2161  ;;  %v7266_v14 = vpop.eup %7265  ;;  %v2185_v18 = vmul.f32 %v7264_v10, %v8065_v35 }
0x15e4   :  { %7269 = vrcp.f32 %v2162_v61  ;;  %v2186_v15 = vmul.f32 %v7266_v14, %v8063_v34 }
0x15e5   :  { %7271 = vrcp.f32 %v2165_v20 }
0x15e6   :  { %v7268_v50 = vpop.eup %7267 }
0x15e7   :  { %v7022_v23 = vpop.permute.xlu0 %7021  ;;  %v2187_v9 = vmul.f32 %v7268_v50, %v8071_v42  ;;  %v1785_v42 = vadd.f32 %v5328_v32, %v7999_v3 }
0x15e8   :  { %v7024_v12 = vunpack.i.h.bf16 %v7022_v23  ;;  %v7023_v57 = vunpack.i.l.bf16 %v7022_v23 }
0x15e9   :  { %v1793_v43 = vadd.f32 %v1785_v42, %v7928_v33  ;;  %v2507_v42 = vld [vmem:[%s8897_s1 + $0x230] sm:$0xff] }
0x15ea   :  { %v6647_v59 = vpack.c.bf16 %v7024_v12, %v7023_v57 }
0x15eb   :  { %v1797_v45 = vsel %vm46_vm0, %v1793_v43, 0.0 }
0x15ec   :  { %6648 = vmatprep.subr.bf16.mxu0 %v6647_v59 }
0x15ed   :  { %6650 = vmatpush3.bf16.msra.mxu0 %v6647_v59  ;;  %v5360_v59 = vld [vmem:[%s8897_s1 + $0x208] ss:$0 sm:$0xff] }
0x15ee   :  { %6652 = vmatprep.subr.bf16.mxu0 %v6651_v62  ;;  %v7270_v16 = vpop.eup %7269 }
0x15ef   :  { %v7272_v22 = vpop.eup %7271  ;;  %v2188_v17 = vmul.f32 %v7270_v16, %v7256_v46 }
0x15f0   :  { %v2189_v19 = vmul.f32 %v7272_v22, %v8075_v44  ;;  %v1790_v44 = vadd.f32 %v7997_v1, %v5328_v32 }
0x15f1   :  { %6654 = vmatpush3.bf16.msra.mxu0 %v6651_v62 }
0x15f2   :  { %6656 = vmatprep.subr.bf16.mxu0 %v6655_v2  ;;  %v1794_v46 = vadd.f32 %v1790_v44, %v7938_v37 }
0x15f4   :  { %v1800_v48 = vsel %vm46_vm0, %v1794_v46, 0.0 }
0x15f5   :  { %6658 = vmatpush3.bf16.msra.mxu0 %v6655_v2 }
0x15f6   :  { %6660 = vmatprep.subr.bf16.mxu0 %v6659_v25 }
0x15f8   :  { %6102 = vmatmul.mubr.msk.f32.vlgmr.msra.gmra.mrb[30].mxu0 %vm296_vm3, %v2183_v8 }
0x15f9   :  { %6104 = vmatprep.mubr.msk.f32.mxu0 %vm296_vm3, %v2184_v11  ;;  %6662 = vmatpush3.bf16.msra.mxu0 %v6659_v25 }
0x15fa   :  { %6664 = vmatprep.subr.bf16.mxu0 %v6663_v29 }
0x15fc   :  { %6105 = vmatmul.mubr.msk.f32.gmra.mrb[32].mxu0 %vm296_vm3, %v2185_v18  ;;  %v8145_v18 = vld [vmem:[%s8897_s1 + $0x1b0] ss:$0 sm:$0xff] }
0x15fd   :  { %6107 = vmatprep.mubr.msk.f32.mxu0 %vm296_vm3, %v2186_v15  ;;  %6666 = vmatpush3.bf16.msra.mxu0 %v6663_v29  ;;  %v8150_v15 = vld [vmem:[%s8897_s1 + $0x1b8] ss:$0 sm:$0xff] }
0x1600   :  { %6108 = vmatmul.mubr.msk.f32.gmra.mrb[34].mxu0 %vm296_vm3, %v2187_v9 }
0x1601   :  { %6110 = vmatprep.mubr.msk.f32.mxu0 %vm296_vm3, %v2188_v17  ;;  %v2505_v17 = vld [vmem:[%s8897_s1 + $0x220] sm:$0xff] }
0x1604   :  { %6111 = vmatmul.mubr.msk.f32.gmra.mrb[36].mxu0 %vm296_vm3, %v2189_v19  ;;  %v2506_v19 = vld [vmem:[%s8897_s1 + $0x228] sm:$0xff] }
0x1605   :  { %v7035_v21 = vpack.i.bf16 %v2506_v19, %v2505_v17 }
0x16cb   :  { %v6103_v30 = vpop.f32.mrb[30].mxu0 }
0x16cc   :  { %v2304_v13 = vpop.f32.mrb[31].mxu0 }
0x16cf   :  { %v6106_v31 = vpop.f32.mrb[32].mxu0 }
0x16d0   :  { %2347 = vrot.lane.b32.xlu1 %v6106_v31, %s7418_s28  ;;  %v2314_v7 = vpop.f32.mrb[33].mxu0 }
0x16d3   :  { %v6109_v5 = vpop.f32.mrb[34].mxu0 }
0x16d4   :  { %2345 = vrot.lane.b32.xlu1 %v2314_v7, %s7418_s28  ;;  %v2324_v34 = vpop.f32.mrb[35].mxu0 }
0x16d5   :  { %2353 = vrot.lane.b32.xlu0 %v2324_v34, %s7419_s29 }
0x16d7   :  { %v6112_v35 = vpop.f32.mrb[36].mxu0 }
0x16d8   :  { %2355 = vrot.lane.b32.xlu1 %v6109_v5, %s7419_s29  ;;  %v2334_v36 = vpop.f32.mrb[37].mxu0 }
0x16d9   :  { %2361 = vrot.lane.b32.xlu0 %v2334_v36, %s7420_s30 }
0x16dc   :  { %2363 = vrot.lane.b32.xlu1 %v6112_v35, %s7420_s30 }
0x16f8   :  { %1798 = vadd.xlane.f32.xlu0 %v1797_v45  ;;  %v6667_v45 = vpack.c.bf16 %v2506_v19, %v2505_v17 }
0x16fa   :  { %6668 = vmatprep.subr.bf16.mxu0 %v6667_v45 }
0x1700   :  { %1801 = vadd.xlane.f32.xlu1 %v1800_v48  ;;  %v5365_v48 = vld [vmem:[%s8897_s1 + $0x240] ss:$0 sm:$0xff] }
0x1742   :  { %v2348_v49 = vpop.permute.xlu1 %2347 }
0x1743   :  { %v2368_v1 = vsel %vm158_vm1, %v6103_v30, %v2348_v49 }
0x1746   :  { %v2346_v40 = vpop.permute.xlu1 %2345 }
0x1747   :  { %v2354_v41 = vpop.permute.xlu0 %2353  ;;  %v2367_v51 = vsel %vm158_vm1, %v2304_v13, %v2346_v40 }
0x1748   :  { %v2369_v3 = vsel %vm572_vm4, %v2367_v51, %v2354_v41 }
0x174a   :  { %v2356_v52 = vpop.permute.xlu1 %2355 }
0x174b   :  { %v2362_v54 = vpop.permute.xlu0 %2361  ;;  %v2370_v37 = vsel %vm572_vm4, %v2368_v1, %v2356_v52 }
0x174c   :  { %v2371_v33 = vsel %vm575_vm5, %v2369_v3, %v2362_v54 }
0x174d   :  { %6121 = vmatprep.mubr.msk.f32.mxu0 %vm46_vm0, %v2371_v33 }
0x174e   :  { %v2364_v55 = vpop.permute.xlu1 %2363 }
0x174f   :  { %v2372_v47 = vsel %vm575_vm5, %v2370_v37, %v2364_v55 }
0x1750   :  { %6122 = vmatmul.mubr.msk.f32.vlgmr.msra.gmra.mrb[38].mxu0 %vm46_vm0, %v2372_v47 }
0x1751   :  { %6670 = vmatpush3.bf16.msra.mxu0 %v6667_v45 }
0x1785   :  { %v1799_v20 = vpop.xlane.xlu0 %1798 }
0x1786   :  { %v1803_v56 = vmul.f32 0.03125, %v1799_v20 }
0x1788   :  { %v1805_v61 = vsub.f32 %v1793_v43, %v1803_v56  ;;  %v2508_v43 = vld [vmem:[%s8897_s1 + $0x238] sm:$0xff] }
0x1789   :  { %v7040_v44 = vpack.i.bf16 %v2508_v43, %v2507_v42 }
0x178a   :  { %v1807_v23 = vmul.f32 %v1805_v61, %v1805_v61 }
0x178c   :  { %v1809_v53 = vsel %vm46_vm0, %v1807_v23, 0.0 }
0x178d   :  { %1810 = vadd.xlane.f32.xlu1 %v1809_v53  ;;  %v1802_v60 = vpop.xlane.xlu1 %1801 }
0x178e   :  { %v1804_v62 = vmul.f32 0.03125, %v1802_v60 }
0x1790   :  { %v1806_v10 = vsub.f32 %v1794_v46, %v1804_v62  ;;  %v6671_v46 = vpack.c.bf16 %v2508_v43, %v2507_v42  ;;  %v20_v42 = vld [vmem:[%s8898_s0 + $0x68] sm:$0xff]  ;;  %v19_v43 = vld [vmem:[%s8898_s0 + $0x60] sm:$0xff] }
0x1792   :  { %v1808_v9 = vmul.f32 %v1806_v10, %v1806_v10  ;;  %6672 = vmatprep.subr.bf16.mxu0 %v6671_v46 }
0x1793   :  { %6674 = vmatpush3.bf16.msra.mxu0 %v6671_v46 }
0x1794   :  { %v1812_v22 = vsel %vm46_vm0, %v1808_v9, 0.0 }
0x179e   :  { %7036 = vrot.lane.b32.xlu1 %v7035_v21, %s7416_s26 }
0x17a2   :  { %2612 = vrot.lane.b32.xlu1 %v5365_v48, %s7416_s26 }
0x181a   :  { %v1811_v12 = vpop.xlane.xlu1 %1810 }
0x181b   :  { %v1815_v57 = vmul.f32 0.03125, %v1811_v12 }
0x181d   :  { %v1817_v58 = vadd.f32 1e-05, %v1815_v57  ;;  %v5363_v57 = vld [vmem:[%s8897_s1 + $0x210] ss:$0 sm:$0xff] }
0x181e   :  { %v7037_v34 = vpop.permute.xlu1 %7036 }
0x181f   :  { %7273 = vrsqrt.f32 %v1817_v58  ;;  %v7039_v35 = vunpack.i.h.bf16 %v7037_v34  ;;  %v7038_v36 = vunpack.i.l.bf16 %v7037_v34 }
0x1821   :  { %v6675_v32 = vpack.c.bf16 %v7039_v35, %v7038_v36 }
0x1823   :  { %v6123_v0 = vpop.f32.mrb[38].mxu0  ;;  %6676 = vmatprep.subr.bf16.mxu1 %v6675_v32 }
0x1824   :  { %v2454_v63 = vpop.f32.mrb[39].mxu0  ;;  %v2460_v2 = vadd.f32 %v6123_v0, %v5360_v59  ;;  %6678 = vmatpush3.bf16.msra.mxu1 %v6675_v32 }
0x1825   :  { %v2455_v4 = vadd.f32 %v5360_v59, %v2454_v63  ;;  %v5364_v63 = vld [vmem:[%s8897_s1 + $0x218] ss:$0 sm:$0xff] }
0x1826   :  { %v2464_v11 = vadd.f32 %v2460_v2, %v7952_v39 }
0x1827   :  { %v2463_v6 = vadd.f32 %v2455_v4, %v7943_v38 }
0x1828   :  { %v2470_v16 = vsel %vm46_vm0, %v2464_v11, 0.0 }
0x1829   :  { %v7274_v8 = vpop.eup %7273  ;;  %v2467_v14 = vsel %vm46_vm0, %v2463_v6, 0.0 }
0x182a   :  { %2468 = vadd.xlane.f32.xlu0 %v2467_v14  ;;  %v1821_v50 = vmul.f32 %v7274_v8, %v1805_v61 }
0x182c   :  { %v1827_v38 = vmul.f32 %v8145_v18, %v1821_v50 }
0x182e   :  { %2471 = vadd.xlane.f32.xlu0 %v2470_v16  ;;  %v8155_v39 = vadd.f32 %v8150_v15, %v1827_v38 }
0x1830   :  { %6143 = vmatprep.mubr.msk.f32.mxu1 %vm46_vm0, %v8155_v39 }
0x1832   :  { %1813 = vadd.xlane.f32.xlu0 %v1812_v22 }
0x18b7   :  { %v2469_v24 = vpop.xlane.xlu0 %2468 }
0x18b8   :  { %v2473_v25 = vmul.f32 0.03125, %v2469_v24 }
0x18ba   :  { %v2475_v29 = vsub.f32 %v2463_v6, %v2473_v25  ;;  %v2613_v6 = vpop.permute.xlu1 %2612 }
0x18bb   :  { %v2472_v27 = vpop.xlane.xlu0 %2471 }
0x18bc   :  { %v2474_v28 = vmul.f32 0.03125, %v2472_v27  ;;  %v2477_v7 = vmul.f32 %v2475_v29, %v2475_v29 }
0x18be   :  { %v2476_v30 = vsub.f32 %v2464_v11, %v2474_v28  ;;  %v2479_v5 = vsel %vm46_vm0, %v2477_v7, 0.0 }
0x18bf   :  { %v1814_v49 = vpop.xlane.xlu0 %1813 }
0x18c0   :  { %v2478_v13 = vmul.f32 %v2476_v30, %v2476_v30  ;;  %v1816_v40 = vmul.f32 0.03125, %v1814_v49 }
0x18c2   :  { %v2482_v31 = vsel %vm46_vm0, %v2478_v13, 0.0  ;;  %v1818_v41 = vadd.f32 1e-05, %v1816_v40  ;;  %v21_v40 = vld [vmem:[%s8898_s0 + $0x70] sm:$0xff] }
0x18c3   :  { %2483 = vadd.xlane.f32.xlu0 %v2482_v31 }
0x18c4   :  { %7275 = vrsqrt.f32 %v1818_v41 }
0x18c7   :  { %2480 = vadd.xlane.f32.xlu0 %v2479_v5 }
0x18ce   :  { %v7276_v54 = vpop.eup %7275 }
0x18cf   :  { %v1822_v37 = vmul.f32 %v7276_v54, %v1806_v10 }
0x18d1   :  { %v1828_v61 = vmul.f32 %v8145_v18, %v1822_v37 }
0x18d3   :  { %v8182_v60 = vadd.f32 %v8150_v15, %v1828_v61  ;;  %v25_v61 = vld [vmem:[%s8898_s0 + $0x90] sm:$0xff] }
0x18dd   :  { %7041 = vrot.lane.b32.xlu0 %v7040_v44, %s7416_s26 }
0x1950   :  { %v2484_v51 = vpop.xlane.xlu0 %2483 }
0x1951   :  { %v2486_v52 = vmul.f32 0.03125, %v2484_v51 }
0x1953   :  { %v2488_v3 = vadd.f32 1e-05, %v2486_v52  ;;  %v22_v52 = vld [vmem:[%s8898_s0 + $0x78] sm:$0xff] }
0x1954   :  { %v2481_v33 = vpop.xlane.xlu0 %2480 }
0x1955   :  { %7277 = vrsqrt.f32 %v2488_v3  ;;  %v2485_v1 = vmul.f32 0.03125, %v2481_v33  ;;  %v23_v33 = vld [vmem:[%s8898_s0 + $0x80] sm:$0xff] }
0x1957   :  { %v2487_v55 = vadd.f32 1e-05, %v2485_v1 }
0x1958   :  { %v7042_v47 = vpop.permute.xlu0 %7041 }
0x1959   :  { %7279 = vrsqrt.f32 %v2487_v55  ;;  %v7044_v20 = vunpack.i.h.bf16 %v7042_v47  ;;  %v7043_v56 = vunpack.i.l.bf16 %v7042_v47  ;;  %v24_v47 = vld [vmem:[%s8898_s0 + $0x88] sm:$0xff] }
0x195b   :  { %v6679_v23 = vpack.c.bf16 %v7044_v20, %v7043_v56 }
0x195d   :  { %6680 = vmatprep.subr.bf16.mxu1 %v6679_v23 }
0x195e   :  { %6682 = vmatpush3.bf16.msra.mxu1 %v6679_v23 }
0x195f   :  { %v7278_v53 = vpop.eup %7277 }
0x1960   :  { %v2492_v12 = vmul.f32 %v7278_v53, %v2476_v30 }
0x1961   :  { %6144 = vmatmul.mubr.msk.f32.vlgmr.msra.gmra.mrb[28].mxu1 %vm46_vm0, %v8182_v60 }
0x1962   :  { %v2498_v0 = vmul.f32 %v5363_v57, %v2492_v12 }
0x1963   :  { %v7280_v58 = vpop.eup %7279 }
0x1964   :  { %v2491_v59 = vmul.f32 %v7280_v58, %v2475_v29  ;;  %v8194_v4 = vadd.f32 %v5364_v63, %v2498_v0  ;;  %v26_v58 = vld [vmem:[%s8898_s0 + $0x98] sm:$0xff] }
0x1966   :  { %v2497_v62 = vmul.f32 %v5363_v57, %v2491_v59 }
0x1968   :  { %v8192_v2 = vadd.f32 %v5364_v63, %v2497_v62 }
0x196a   :  { %6132 = vmatprep.mubr.msk.f32.mxu0 %vm46_vm0, %v8192_v2 }
0x196b   :  { %6133 = vmatmul.mubr.msk.f32.vlgmr.msra.gmra.mrb[40].mxu0 %vm46_vm0, %v8194_v4 }
0x1a34   :  { %v6145_v8 = vpop.f32.mrb[28].mxu1 }
0x1a35   :  { %v2693_v10 = vadd.f32 %v6145_v8, %v2613_v6  ;;  %v2687_v11 = vpop.f32.mrb[29].mxu1 }
0x1a36   :  { %v2688_v14 = vadd.f32 %v2687_v11, %v2613_v6 }
0x1a38   :  { %v8200_v18 = vpack.i.bf16 %v2693_v10, %v2688_v14  ;;  %v6683_v50 = vpack.c.bf16 %v2693_v10, %v2688_v14 }
0x1a3a   :  { %7046 = vrot.lane.b32.xlu1 %v8200_v18, %s7414_s24  ;;  %6685 = vmatprep.subr.msk.bf16.mxu0 %vm7490_vm2, %v6683_v50 }
0x1a3b   :  { %6688 = vmatpush3.bf16.xpose.msk.msra.mxu0 %vm7490_vm2, %v6683_v50 }
0x1a3e   :  { %v6134_v15 = vpop.f32.mrb[40].mxu0  ;;  %7051 = vrot.lane.b32.xlu1 %v8200_v18, %s7413_s23 }
0x1a3f   :  { %v2586_v38 = vpop.f32.mrb[41].mxu0  ;;  %v2592_v9 = vadd.f32 %v6134_v15, %v5365_v48 }
0x1a40   :  { %v2587_v16 = vadd.f32 %v5365_v48, %v2586_v38 }
0x1a42   :  { %2698 = vrot.lane.b32.xlu0 %v2587_v16, %s7414_s24  ;;  %6162 = vmatprep.mubr.msk.f32.mxu0 %vm158_vm1, %v2587_v16 }
0x1a43   :  { %7056 = vrot.lane.b32.xlu1 %v8200_v18, %s7415_s25 }
0x1a46   :  { %2702 = vrot.lane.b32.xlu0 %v2587_v16, %s7413_s23 }
0x1a47   :  { %2700 = vrot.lane.b32.xlu1 %v2592_v9, %s7414_s24 }
0x1a4a   :  { %2706 = vrot.lane.b32.xlu0 %v2587_v16, %s7415_s25 }
0x1a4b   :  { %2704 = vrot.lane.b32.xlu1 %v2592_v9, %s7413_s23 }
0x1a4f   :  { %2708 = vrot.lane.b32.xlu1 %v2592_v9, %s7415_s25 }
0x1aac   :  { %v8219_v22 = vpop.permute.xlu1 %7046 }
0x1aad   :  { %v7049_v17 = vunpack.i.h.bf16 %v8219_v22  ;;  %v7048_v19 = vunpack.i.l.bf16 %v8219_v22 }
0x1aaf   :  { %v6689_v21 = vpack.c.bf16 %v7049_v17, %v7048_v19 }
0x1ab0   :  { %v8223_v24 = vpop.permute.xlu1 %7051 }
0x1ab1   :  { %v7054_v25 = vunpack.i.h.bf16 %v8223_v24  ;;  %v7053_v27 = vunpack.i.l.bf16 %v8223_v24  ;;  %6691 = vmatprep.subr.msk.bf16.mxu0 %vm7490_vm2, %v6689_v21 }
0x1ab2   :  { %6694 = vmatpush3.bf16.xpose.msk.msra.mxu0 %vm7490_vm2, %v6689_v21 }
0x1ab3   :  { %v6695_v28 = vpack.c.bf16 %v7054_v25, %v7053_v27 }
0x1ab4   :  { %v2699_v7 = vpop.permute.xlu0 %2698 }
0x1ab5   :  { %v8231_v29 = vpop.permute.xlu1 %7056  ;;  %6697 = vmatprep.subr.msk.bf16.mxu0 %vm7490_vm2, %v6695_v28 }
0x1ab6   :  { %v7059_v30 = vunpack.i.h.bf16 %v8231_v29  ;;  %v7058_v13 = vunpack.i.l.bf16 %v8231_v29 }
0x1ab8   :  { %v6701_v31 = vpack.c.bf16 %v7059_v30, %v7058_v13  ;;  %v2703_v34 = vpop.permute.xlu0 %2702 }
0x1ab9   :  { %v2701_v5 = vpop.permute.xlu1 %2700 }
0x1aba   :  { %6700 = vmatpush3.bf16.xpose.msk.msra.mxu0 %vm7490_vm2, %v6695_v28 }
0x1abb   :  { %6703 = vmatprep.subr.msk.bf16.mxu0 %vm7490_vm2, %v6701_v31 }
0x1abc   :  { %v2707_v36 = vpop.permute.xlu0 %2706 }
0x1abd   :  { %v2705_v35 = vpop.permute.xlu1 %2704 }
0x1ac1   :  { %v2709_v32 = vpop.permute.xlu1 %2708 }
0x1ac2   :  { %6706 = vmatpush3.bf16.xpose.msk.msra.mxu0 %vm7490_vm2, %v6701_v31 }
0x1ac9   :  { %6163 = vmatmul.mubr.msk.f32.vlgmr.msra.gmra.mrb[42].mxu0 %vm158_vm1, %v2592_v9 }
0x1aca   :  { %6165 = vmatprep.mubr.msk.f32.mxu0 %vm158_vm1, %v2699_v7 }
0x1acd   :  { %6166 = vmatmul.mubr.msk.f32.gmra.mrb[44].mxu0 %vm158_vm1, %v2701_v5 }
0x1ace   :  { %6168 = vmatprep.mubr.msk.f32.mxu0 %vm158_vm1, %v2703_v34 }
0x1ad1   :  { %6169 = vmatmul.mubr.msk.f32.gmra.mrb[46].mxu0 %vm158_vm1, %v2705_v35 }
0x1ad2   :  { %6171 = vmatprep.mubr.msk.f32.mxu0 %vm158_vm1, %v2707_v36 }
0x1ad5   :  { %6172 = vmatmul.mubr.msk.f32.gmra.mrb[48].mxu0 %vm158_vm1, %v2709_v32 }
0x1b9c   :  { %v6164_v44 = vpop.f32.mrb[42].mxu0 }
0x1b9d   :  { %v2828_v45 = vadd.f32 %v6164_v44, %v20_v42  ;;  %v2822_v46 = vpop.f32.mrb[43].mxu0 }
0x1b9e   :  { %v2823_v48 = vadd.f32 %v2822_v46, %v19_v43 }
0x1b9f   :  { %v2864_v49 = vsel %vm296_vm3, %v2828_v45, -inf }
0x1ba0   :  { %2865 = vmax.xlane.f32.xlu1 %v2864_v49  ;;  %v6167_v41 = vpop.f32.mrb[44].mxu0  ;;  %v2861_v51 = vsel %vm296_vm3, %v2823_v48, -inf }
0x1ba1   :  { %v2832_v3 = vpop.f32.mrb[45].mxu0  ;;  %2862 = vmax.xlane.f32.xlu0 %v2861_v51  ;;  %v2838_v1 = vadd.f32 %v6167_v41, %v22_v52 }
0x1ba2   :  { %v2833_v54 = vadd.f32 %v2832_v3, %v21_v40 }
0x1ba3   :  { %v2870_v57 = vsel %vm296_vm3, %v2838_v1, -inf }
0x1ba4   :  { %v6170_v37 = vpop.f32.mrb[46].mxu0  ;;  %v2867_v55 = vsel %vm296_vm3, %v2833_v54, -inf }
0x1ba5   :  { %v2842_v20 = vpop.f32.mrb[47].mxu0  ;;  %2868 = vmax.xlane.f32.xlu0 %v2867_v55  ;;  %v2848_v23 = vadd.f32 %v6170_v37, %v24_v47 }
0x1ba6   :  { %v2843_v56 = vadd.f32 %v2842_v20, %v23_v33 }
0x1ba7   :  { %v2876_v6 = vsel %vm296_vm3, %v2848_v23, -inf }
0x1ba8   :  { %v6173_v53 = vpop.f32.mrb[48].mxu0  ;;  %v2873_v12 = vsel %vm296_vm3, %v2843_v56, -inf }
0x1ba9   :  { %v2852_v59 = vpop.f32.mrb[49].mxu0  ;;  %2874 = vmax.xlane.f32.xlu1 %v2873_v12  ;;  %2871 = vmax.xlane.f32.xlu0 %v2870_v57  ;;  %v2858_v63 = vadd.f32 %v6173_v53, %v26_v58 }
0x1baa   :  { %v2853_v0 = vadd.f32 %v2852_v59, %v25_v61 }
0x1bab   :  { %v2882_v8 = vsel %vm296_vm3, %v2858_v63, -inf }
0x1bac   :  { %v2879_v62 = vsel %vm296_vm3, %v2853_v0, -inf }
0x1bad   :  { %2880 = vmax.xlane.f32.xlu1 %v2879_v62  ;;  %2877 = vmax.xlane.f32.xlu0 %v2876_v6 }
0x1bb1   :  { %2883 = vmax.xlane.f32.xlu0 %v2882_v8 }
0x1bbe   :  { %7061 = vrot.lane.b32.xlu1 %v8200_v18, %s7416_s26 }
0x1c2d   :  { %v2866_v10 = vpop.xlane.xlu1 %2865 }
0x1c2e   :  { %v2886_v11 = vsub.f32 %v2828_v45, %v2866_v10  ;;  %v2863_v14 = vpop.xlane.xlu0 %2862 }
0x1c2f   :  { %v2885_v50 = vsub.f32 %v2823_v48, %v2863_v14 }
0x1c30   :  { %v2895_v15 = vmul.f32 1.442695, %v2886_v11 }
0x1c31   :  { %v2893_v38 = vmul.f32 1.442695, %v2885_v50 }
0x1c32   :  { %7281 = vpow2.f32 %v2895_v15  ;;  %v2869_v16 = vpop.xlane.xlu0 %2868 }
0x1c33   :  { %7283 = vpow2.f32 %v2893_v38  ;;  %v2887_v9 = vsub.f32 %v2833_v54, %v2869_v16 }
0x1c35   :  { %v2897_v17 = vmul.f32 1.442695, %v2887_v9 }
0x1c36   :  { %v2875_v19 = vpop.xlane.xlu1 %2874  ;;  %v2872_v21 = vpop.xlane.xlu0 %2871 }
0x1c37   :  { %7285 = vpow2.f32 %v2897_v17  ;;  %v2889_v25 = vsub.f32 %v2843_v56, %v2875_v19  ;;  %v2888_v27 = vsub.f32 %v2838_v1, %v2872_v21 }
0x1c39   :  { %v2901_v28 = vmul.f32 1.442695, %v2889_v25  ;;  %v2899_v30 = vmul.f32 1.442695, %v2888_v27 }
0x1c3a   :  { %v2881_v13 = vpop.xlane.xlu1 %2880  ;;  %v2878_v18 = vpop.xlane.xlu0 %2877 }
0x1c3b   :  { %7287 = vpow2.f32 %v2901_v28  ;;  %v2890_v31 = vsub.f32 %v2848_v23, %v2878_v18  ;;  %v2891_v36 = vsub.f32 %v2853_v0, %v2881_v13 }
0x1c3c   :  { %v8284_v7 = vpop.eup %7281  ;;  %7289 = vpow2.f32 %v2899_v30 }
0x1c3d   :  { %v7284_v5 = vpop.eup %7283  ;;  %v2903_v34 = vmul.f32 1.442695, %v2890_v31  ;;  %v2912_v35 = vsel %vm296_vm3, %v8284_v7, 0.0  ;;  %v2905_v41 = vmul.f32 1.442695, %v2891_v36  ;;  %v3141_v36 = vld [vmem:[%s8897_s1 + $0x250] sm:$0xff] }
0x1c3e   :  { %v7062_v32 = vpop.permute.xlu1 %7061  ;;  %2913 = vadd.xlane.f32.xlu0 %v2912_v35  ;;  %v2884_v42 = vpop.xlane.xlu0 %2883  ;;  %v2909_v43 = vsel %vm296_vm3, %v7284_v5, 0.0  ;;  %v3140_v35 = vld [vmem:[%s8897_s1 + $0x248] sm:$0xff] }
0x1c3f   :  { %v7064_v44 = vunpack.i.h.bf16 %v7062_v32  ;;  %v7063_v45 = vunpack.i.l.bf16 %v7062_v32  ;;  %v2892_v46 = vsub.f32 %v2858_v63, %v2884_v42  ;;  %2910 = vadd.xlane.f32.xlu1 %v2909_v43  ;;  %7291 = vpow2.f32 %v2903_v34  ;;  %v3142_v42 = vld [vmem:[%s8897_s1 + $0x258] sm:$0xff]  ;;  %v3143_v43 = vld [vmem:[%s8897_s1 + $0x260] sm:$0xff] }
0x1c40   :  { %v6723_v32 = vpack.c.bf16 %v3141_v36, %v3140_v35 }
0x1c41   :  { %v8289_v48 = vpop.eup %7285  ;;  %v2907_v49 = vmul.f32 1.442695, %v2892_v46  ;;  %v6707_v40 = vpack.c.bf16 %v7064_v44, %v7063_v45  ;;  %v6727_v44 = vpack.c.bf16 %v3143_v43, %v3142_v42 }
0x1c42   :  { %v2915_v51 = vsel %vm296_vm3, %v8289_v48, 0.0 }
0x1c43   :  { %7293 = vpow2.f32 %v2907_v49  ;;  %6708 = vmatprep.subr.bf16.mxu1 %v6707_v40  ;;  %2916 = vadd.xlane.f32.xlu1 %v2915_v51 }
0x1c44   :  { %6710 = vmatpush3.bf16.msra.mxu1 %v6707_v40  ;;  %7295 = vpow2.f32 %v2905_v41 }
0x1c45   :  { %v8293_v52 = vpop.eup %7287 }
0x1c46   :  { %v8295_v3 = vpop.eup %7289  ;;  %v2921_v54 = vsel %vm296_vm3, %v8293_v52, 0.0 }
0x1c47   :  { %2922 = vadd.xlane.f32.xlu1 %v2921_v54  ;;  %v2918_v33 = vsel %vm296_vm3, %v8295_v3, 0.0 }
0x1c48   :  { %2919 = vadd.xlane.f32.xlu0 %v2918_v33 }
0x1c49   :  { %v8301_v1 = vpop.eup %7291 }
0x1c4a   :  { %v2924_v37 = vsel %vm296_vm3, %v8301_v1, 0.0 }
0x1c4c   :  { %2925 = vadd.xlane.f32.xlu0 %v2924_v37 }
0x1c4d   :  { %v8305_v55 = vpop.eup %7293 }
0x1c4e   :  { %v2930_v47 = vsel %vm296_vm3, %v8305_v55, 0.0  ;;  %v7296_v20 = vpop.eup %7295 }
0x1c4f   :  { %v2927_v56 = vsel %vm296_vm3, %v7296_v20, 0.0 }
0x1c50   :  { %2931 = vadd.xlane.f32.xlu0 %v2930_v47 }
0x1c54   :  { %2928 = vadd.xlane.f32.xlu0 %v2927_v56 }
0x1c58   :  { %7071 = vrot.lane.b32.xlu1 %v8223_v24, %s7416_s26 }
0x1c5c   :  { %7076 = vrot.lane.b32.xlu1 %v8231_v29, %s7416_s26 }
0x1c6a   :  { %7066 = vrot.lane.b32.xlu0 %v8219_v22, %s7416_s26 }
0x1ccb   :  { %v2914_v23 = vpop.xlane.xlu0 %2913 }
0x1ccc   :  { %v2911_v61 = vpop.xlane.xlu1 %2910 }
0x1ccd   :  { %7297 = vrcp.f32 %v2911_v61 }
0x1cce   :  { %7299 = vrcp.f32 %v2914_v23 }
0x1cd0   :  { %v2917_v53 = vpop.xlane.xlu1 %2916 }
0x1cd1   :  { %7301 = vrcp.f32 %v2917_v53 }
0x1cd4   :  { %v2923_v0 = vpop.xlane.xlu1 %2922 }
0x1cd5   :  { %v2920_v12 = vpop.xlane.xlu0 %2919 }
0x1cd6   :  { %7303 = vrcp.f32 %v2920_v12  ;;  %v5394_v12 = vld [vmem:[%s8897_s1 + $0x268] ss:$0 sm:$0xff] }
0x1cd7   :  { %v7298_v57 = vpop.eup %7297  ;;  %7305 = vrcp.f32 %v2923_v0 }
0x1cd8   :  { %v2949_v58 = vmul.f32 %v7298_v57, %v7284_v5  ;;  %v7072_v62 = vpop.permute.xlu1 %7071  ;;  %v7300_v9 = vpop.eup %7299 }
0x1cd9   :  { %v2926_v59 = vpop.xlane.xlu0 %2925  ;;  %v7074_v8 = vunpack.i.h.bf16 %v7072_v62  ;;  %v7073_v29 = vunpack.i.l.bf16 %v7072_v62  ;;  %v2950_v19 = vmul.f32 %v7300_v9, %v8284_v7 }
0x1cda   :  { %6190 = vmatprep.mubr.msk.f32.mxu1 %vm296_vm3, %v2949_v58  ;;  %7307 = vrcp.f32 %v2926_v59 }
0x1cdb   :  { %v6715_v38 = vpack.c.bf16 %v7074_v8, %v7073_v29  ;;  %v7302_v17 = vpop.eup %7301 }
0x1cdc   :  { %v7077_v22 = vpop.permute.xlu1 %7076  ;;  %v2951_v25 = vmul.f32 %v7302_v17, %v8289_v48  ;;  %v3274_v17 = vld [vmem:[%s8897_s1 + $0x290] sm:$0xff] }
0x1cdd   :  { %v2932_v63 = vpop.xlane.xlu0 %2931  ;;  %v7079_v50 = vunpack.i.h.bf16 %v7077_v22  ;;  %v7078_v15 = vunpack.i.l.bf16 %v7077_v22 }
0x1cdf   :  { %v6719_v16 = vpack.c.bf16 %v7079_v50, %v7078_v15 }
0x1ce0   :  { %v7304_v21 = vpop.eup %7303 }
0x1ce1   :  { %v2929_v24 = vpop.xlane.xlu0 %2928  ;;  %v7306_v27 = vpop.eup %7305  ;;  %v2952_v28 = vmul.f32 %v7304_v21, %v8295_v3 }
0x1ce2   :  { %7309 = vrcp.f32 %v2929_v24  ;;  %v2953_v13 = vmul.f32 %v7306_v27, %v8293_v52  ;;  %v3365_v27 = vld [vmem:[%s8897_s1 + $0x2b0] sm:$0xff] }
0x1ce3   :  { %7311 = vrcp.f32 %v2932_v63 }
0x1ce4   :  { %v7308_v30 = vpop.eup %7307 }
0x1ce5   :  { %v7067_v6 = vpop.permute.xlu0 %7066  ;;  %v2954_v31 = vmul.f32 %v7308_v30, %v8301_v1 }
0x1ce6   :  { %v7069_v10 = vunpack.i.h.bf16 %v7067_v6  ;;  %v7068_v11 = vunpack.i.l.bf16 %v7067_v6 }
0x1ce8   :  { %v6711_v14 = vpack.c.bf16 %v7069_v10, %v7068_v11 }
0x1cea   :  { %6712 = vmatprep.subr.bf16.mxu1 %v6711_v14 }
0x1ceb   :  { %6714 = vmatpush3.bf16.msra.mxu1 %v6711_v14 }
0x1cec   :  { %6716 = vmatprep.subr.bf16.mxu1 %v6715_v38  ;;  %v7310_v18 = vpop.eup %7309 }
0x1ced   :  { %v7312_v7 = vpop.eup %7311  ;;  %v2955_v5 = vmul.f32 %v7310_v18, %v7296_v20 }
0x1cee   :  { %v2956_v34 = vmul.f32 %v7312_v7, %v8305_v55  ;;  %v3369_v7 = vld [vmem:[%s8897_s1 + $0x2d0] sm:$0xff] }
0x1cef   :  { %6718 = vmatpush3.bf16.msra.mxu1 %v6715_v38 }
0x1cf0   :  { %6720 = vmatprep.subr.bf16.mxu1 %v6719_v16 }
0x1cf3   :  { %6722 = vmatpush3.bf16.msra.mxu1 %v6719_v16  ;;  %v3273_v16 = vld [vmem:[%s8897_s1 + $0x288] sm:$0xff] }
0x1cf4   :  { %6724 = vmatprep.subr.bf16.mxu1 %v6723_v32 }
0x1cf6   :  { %6191 = vmatmul.mubr.msk.f32.vlgmr.msra.gmra.mrb[30].mxu1 %vm296_vm3, %v2950_v19  ;;  %v3275_v19 = vld [vmem:[%s8897_s1 + $0x298] sm:$0xff] }
0x1cf7   :  { %6193 = vmatprep.mubr.msk.f32.mxu1 %vm296_vm3, %v2951_v25  ;;  %6726 = vmatpush3.bf16.msra.mxu1 %v6723_v32  ;;  %v6735_v21 = vpack.c.bf16 %v3275_v19, %v3274_v17  ;;  %v3364_v25 = vld [vmem:[%s8897_s1 + $0x2a8] sm:$0xff]  ;;  %v3503_v17 = vld [vmem:[%s8897_s1 + $0x318] sm:$0xff] }
0x1cf8   :  { %6728 = vmatprep.subr.bf16.mxu1 %v6727_v44  ;;  %v6739_v30 = vpack.c.bf16 %v3365_v27, %v3364_v25 }
0x1cfa   :  { %6194 = vmatmul.mubr.msk.f32.gmra.mrb[32].mxu1 %vm296_vm3, %v2952_v28  ;;  %v3366_v28 = vld [vmem:[%s8897_s1 + $0x2b8] sm:$0xff]  ;;  %6740 = vmatprep.subr.bf16.mxu0 %v6739_v30 }
0x1cfb   :  { %6196 = vmatprep.mubr.msk.f32.mxu1 %vm296_vm3, %v2953_v13  ;;  %6730 = vmatpush3.bf16.msra.mxu1 %v6727_v44  ;;  %v3367_v13 = vld [vmem:[%s8897_s1 + $0x2c0] sm:$0xff] }
0x1cfc   :  { %v6743_v18 = vpack.c.bf16 %v3367_v13, %v3366_v28  ;;  %6742 = vmatpush3.bf16.msra.mxu0 %v6739_v30 }
0x1cfe   :  { %6197 = vmatmul.mubr.msk.f32.gmra.mrb[34].mxu1 %vm296_vm3, %v2954_v31  ;;  %v3368_v31 = vld [vmem:[%s8897_s1 + $0x2c8] sm:$0xff]  ;;  %6744 = vmatprep.subr.bf16.mxu0 %v6743_v18 }
0x1cff   :  { %6199 = vmatprep.mubr.msk.f32.mxu1 %vm296_vm3, %v2955_v5  ;;  %v6747_v5 = vpack.c.bf16 %v3369_v7, %v3368_v31  ;;  %v5405_v31 = vld [vmem:[%s8897_s1 + $0x2f0] ss:$0 sm:$0xff] }
0x1d00   :  { %6746 = vmatpush3.bf16.msra.mxu0 %v6743_v18 }
0x1d01   :  { %6748 = vmatprep.subr.bf16.mxu0 %v6747_v5 }
0x1d02   :  { %6200 = vmatmul.mubr.msk.f32.gmra.mrb[36].mxu1 %vm296_vm3, %v2956_v34 }
0x1d04   :  { %6750 = vmatpush3.bf16.msra.mxu0 %v6747_v5 }
0x1dc9   :  { %v6192_v45 = vpop.f32.mrb[30].mxu1 }
0x1dca   :  { %v3071_v46 = vpop.f32.mrb[31].mxu1 }
0x1dcd   :  { %v6195_v48 = vpop.f32.mrb[32].mxu1 }
0x1dce   :  { %3114 = vrot.lane.b32.xlu1 %v6195_v48, %s7418_s28  ;;  %v3081_v49 = vpop.f32.mrb[33].mxu1  ;;  %v5398_v48 = vld [vmem:[%s8897_s1 + $0x278] ss:$0 sm:$0xff] }
0x1dd1   :  { %v6198_v40 = vpop.f32.mrb[34].mxu1 }
0x1dd2   :  { %3112 = vrot.lane.b32.xlu1 %v3081_v49, %s7418_s28  ;;  %v3091_v41 = vpop.f32.mrb[35].mxu1 }
0x1dd3   :  { %3120 = vrot.lane.b32.xlu0 %v3091_v41, %s7419_s29 }
0x1dd5   :  { %v6201_v51 = vpop.f32.mrb[36].mxu1 }
0x1dd6   :  { %3122 = vrot.lane.b32.xlu1 %v6198_v40, %s7419_s29  ;;  %v3101_v52 = vpop.f32.mrb[37].mxu1 }
0x1dd7   :  { %3128 = vrot.lane.b32.xlu0 %v3101_v52, %s7420_s30 }
0x1dda   :  { %3130 = vrot.lane.b32.xlu1 %v6201_v51, %s7420_s30 }
0x1e40   :  { %v3115_v3 = vpop.permute.xlu1 %3114 }
0x1e41   :  { %v3135_v56 = vsel %vm158_vm1, %v6192_v45, %v3115_v3  ;;  %v5397_v45 = vld [vmem:[%s8897_s1 + $0x270] ss:$0 sm:$0xff] }
0x1e44   :  { %v3113_v54 = vpop.permute.xlu1 %3112 }
0x1e45   :  { %v3121_v33 = vpop.permute.xlu0 %3120  ;;  %v3134_v1 = vsel %vm158_vm1, %v3071_v46, %v3113_v54  ;;  %v3370_v54 = vld [vmem:[%s8897_s1 + $0x2d8] sm:$0xff] }
0x1e46   :  { %v3136_v55 = vsel %vm572_vm4, %v3134_v1, %v3121_v33  ;;  %v3371_v33 = vld [vmem:[%s8897_s1 + $0x2e0] sm:$0xff] }
0x1e47   :  { %v6751_v1 = vpack.c.bf16 %v3371_v33, %v3370_v54 }
0x1e48   :  { %v3123_v37 = vpop.permute.xlu1 %3122 }
0x1e49   :  { %v3129_v47 = vpop.permute.xlu0 %3128  ;;  %v3137_v61 = vsel %vm572_vm4, %v3135_v56, %v3123_v37  ;;  %6752 = vmatprep.subr.bf16.mxu0 %v6751_v1  ;;  %v5399_v37 = vld [vmem:[%s8897_s1 + $0x2a0] ss:$0 sm:$0xff] }
0x1e4a   :  { %v3138_v20 = vsel %vm575_vm5, %v3136_v55, %v3129_v47  ;;  %6754 = vmatpush3.bf16.msra.mxu0 %v6751_v1 }
0x1e4b   :  { %6210 = vmatprep.mubr.msk.f32.mxu1 %vm46_vm0, %v3138_v20 }
0x1e4c   :  { %v3131_v23 = vpop.permute.xlu1 %3130 }
0x1e4d   :  { %v3139_v53 = vsel %vm575_vm5, %v3137_v61, %v3131_v23 }
0x1e4e   :  { %6211 = vmatmul.mubr.msk.f32.vlgmr.msra.gmra.mrb[38].mxu1 %vm46_vm0, %v3139_v53  ;;  %v5402_v53 = vld [vmem:[%s8897_s1 + $0x2e8] ss:$0 sm:$0xff] }
0x1f21   :  { %v6212_v57 = vpop.f32.mrb[38].mxu1 }
0x1f22   :  { %v3227_v58 = vadd.f32 %v6212_v57, %v5394_v12  ;;  %v3221_v59 = vpop.f32.mrb[39].mxu1 }
0x1f23   :  { %v3222_v0 = vadd.f32 %v5394_v12, %v3221_v59 }
0x1f24   :  { %v3231_v63 = vadd.f32 %v3227_v58, %v8194_v4 }
0x1f25   :  { %v3230_v62 = vadd.f32 %v3222_v0, %v8192_v2  ;;  %v3272_v2 = vld [vmem:[%s8897_s1 + $0x280] sm:$0xff] }
0x1f26   :  { %v3237_v24 = vsel %vm46_vm0, %v3231_v63, 0.0  ;;  %v6731_v9 = vpack.c.bf16 %v3273_v16, %v3272_v2  ;;  %v3501_v2 = vld [vmem:[%s8897_s1 + $0x308] sm:$0xff] }
0x1f27   :  { %3238 = vadd.xlane.f32.xlu1 %v3237_v24  ;;  %v3234_v6 = vsel %vm46_vm0, %v3230_v62, 0.0 }
0x1f28   :  { %3235 = vadd.xlane.f32.xlu0 %v3234_v6  ;;  %6732 = vmatprep.subr.bf16.mxu1 %v6731_v9 }
0x1f29   :  { %6734 = vmatpush3.bf16.msra.mxu1 %v6731_v9  ;;  %v3502_v9 = vld [vmem:[%s8897_s1 + $0x310] sm:$0xff] }
0x1f2a   :  { %6736 = vmatprep.subr.bf16.mxu1 %v6735_v21  ;;  %v6759_v19 = vpack.c.bf16 %v3503_v17, %v3502_v9  ;;  %v7400_v9 = vld [vmem:[%s8898_s0 + $0xb8] sm:$0xff] }
0x1f2d   :  { %6738 = vmatpush3.bf16.msra.mxu1 %v6735_v21 }
0x1fb4   :  { %v3239_v8 = vpop.xlane.xlu1 %3238 }
0x1fb5   :  { %v3241_v29 = vmul.f32 0.03125, %v3239_v8  ;;  %v3236_v10 = vpop.xlane.xlu0 %3235 }
0x1fb6   :  { %v3240_v11 = vmul.f32 0.03125, %v3236_v10 }
0x1fb7   :  { %v3243_v22 = vsub.f32 %v3231_v63, %v3241_v29 }
0x1fb8   :  { %v3242_v14 = vsub.f32 %v3230_v62, %v3240_v11 }
0x1fb9   :  { %v3245_v38 = vmul.f32 %v3243_v22, %v3243_v22 }
0x1fba   :  { %v3244_v50 = vmul.f32 %v3242_v14, %v3242_v14 }
0x1fbb   :  { %v3249_v4 = vsel %vm46_vm0, %v3245_v38, 0.0 }
0x1fbc   :  { %v3246_v15 = vsel %vm46_vm0, %v3244_v50, 0.0 }
0x1fbd   :  { %3247 = vadd.xlane.f32.xlu0 %v3246_v15 }
0x1fc1   :  { %3250 = vadd.xlane.f32.xlu0 %v3249_v4  ;;  %v3500_v4 = vld [vmem:[%s8897_s1 + $0x300] sm:$0xff] }
0x1fc2   :  { %v6755_v16 = vpack.c.bf16 %v3501_v2, %v3500_v4 }
0x1fc4   :  { %6756 = vmatprep.subr.bf16.mxu1 %v6755_v16 }
0x204a   :  { %v3248_v34 = vpop.xlane.xlu0 %3247 }
0x204b   :  { %v3252_v35 = vmul.f32 0.03125, %v3248_v34 }
0x204d   :  { %v3254_v36 = vadd.f32 1e-05, %v3252_v35  ;;  %v5406_v35 = vld [vmem:[%s8897_s1 + $0x2f8] ss:$0 sm:$0xff] }
0x204e   :  { %v3251_v32 = vpop.xlane.xlu0 %3250 }
0x204f   :  { %7313 = vrsqrt.f32 %v3254_v36  ;;  %v3253_v42 = vmul.f32 0.03125, %v3251_v32 }
0x2051   :  { %v3255_v43 = vadd.f32 1e-05, %v3253_v42 }
0x2053   :  { %7315 = vrsqrt.f32 %v3255_v43 }
0x2059   :  { %v7314_v44 = vpop.eup %7313 }
0x205a   :  { %v3258_v46 = vmul.f32 %v7314_v44, %v3242_v14  ;;  %v5407_v44 = vld [vmem:[%s8897_s1 + $0x320] ss:$0 sm:$0xff] }
0x205c   :  { %v3264_v49 = vmul.f32 %v5397_v45, %v3258_v46 }
0x205d   :  { %v7316_v40 = vpop.eup %7315 }
0x205e   :  { %v3259_v41 = vmul.f32 %v7316_v40, %v3243_v22  ;;  %v3270_v51 = vadd.f32 %v5398_v48, %v3264_v49 }
0x2060   :  { %v3265_v52 = vmul.f32 %v5397_v45, %v3259_v41  ;;  %6221 = vmatprep.mubr.msk.f32.mxu1 %vm46_vm0, %v3270_v51 }
0x2062   :  { %v3271_v3 = vadd.f32 %v5398_v48, %v3265_v52 }
0x2064   :  { %6222 = vmatmul.mubr.msk.f32.vlgmr.msra.gmra.mrb[40].mxu1 %vm46_vm0, %v3271_v3 }
0x2065   :  { %6758 = vmatpush3.bf16.msra.mxu1 %v6755_v16 }
0x2066   :  { %6760 = vmatprep.subr.bf16.mxu1 %v6759_v19 }
0x2069   :  { %6762 = vmatpush3.bf16.msra.mxu1 %v6759_v19 }
0x2137   :  { %v6223_v55 = vpop.f32.mrb[40].mxu1 }
0x2138   :  { %v3359_v47 = vadd.f32 %v6223_v55, %v5399_v37  ;;  %v3353_v20 = vpop.f32.mrb[41].mxu1 }
0x2139   :  { %v3354_v56 = vadd.f32 %v5399_v37, %v3353_v20 }
0x213a   :  { %v3363_v23 = vmax.f32 %v3359_v47, 0.0 }
0x213b   :  { %v3362_v61 = vmax.f32 %v3354_v56, 0.0 }
0x213d   :  { %6240 = vmatprep.mubr.msk.f32.mxu0 %vm296_vm3, %v3362_v61 }
0x213e   :  { %6241 = vmatmul.mubr.msk.f32.vlgmr.msra.gmra.mrb[50].mxu0 %vm296_vm3, %v3363_v23 }
0x2211   :  { %v6242_v12 = vpop.f32.mrb[50].mxu0 }
0x2212   :  { %v3455_v57 = vadd.f32 %v6242_v12, %v5402_v53  ;;  %v3449_v58 = vpop.f32.mrb[51].mxu0 }
0x2213   :  { %v3450_v59 = vadd.f32 %v5402_v53, %v3449_v58 }
0x2214   :  { %v3459_v0 = vadd.f32 %v3455_v57, %v3271_v3 }
0x2215   :  { %v3458_v63 = vadd.f32 %v3450_v59, %v3270_v51 }
0x2216   :  { %v3465_v62 = vsel %vm46_vm0, %v3459_v0, 0.0 }
0x2217   :  { %3466 = vadd.xlane.f32.xlu0 %v3465_v62  ;;  %v3462_v24 = vsel %vm46_vm0, %v3458_v63, 0.0 }
0x2218   :  { %3463 = vadd.xlane.f32.xlu1 %v3462_v24 }
0x22a4   :  { %v3467_v6 = vpop.xlane.xlu0 %3466 }
0x22a5   :  { %v3469_v8 = vmul.f32 0.03125, %v3467_v6  ;;  %v3464_v29 = vpop.xlane.xlu1 %3463 }
0x22a6   :  { %v3468_v10 = vmul.f32 0.03125, %v3464_v29 }
0x22a7   :  { %v3471_v11 = vsub.f32 %v3459_v0, %v3469_v8 }
0x22a8   :  { %v3470_v22 = vsub.f32 %v3458_v63, %v3468_v10  ;;  %v7397_v10 = vld [vmem:[%s8898_s0 + $0xa8] sm:$0xff] }
0x22a9   :  { %v3473_v14 = vmul.f32 %v3471_v11, %v3471_v11 }
0x22aa   :  { %v3472_v50 = vmul.f32 %v3470_v22, %v3470_v22 }
0x22ab   :  { %v3477_v15 = vsel %vm46_vm0, %v3473_v14, 0.0  ;;  %v7398_v14 = vld [vmem:[%s8898_s0 + $0xa0] sm:$0xff] }
0x22ac   :  { %3478 = vadd.xlane.f32.xlu0 %v3477_v15  ;;  %v3474_v38 = vsel %vm46_vm0, %v3472_v50, 0.0 }
0x22ad   :  { %3475 = vadd.xlane.f32.xlu1 %v3474_v38 }
0x2339   :  { %v3479_v21 = vpop.xlane.xlu0 %3478 }
0x233a   :  { %v3481_v25 = vmul.f32 0.03125, %v3479_v21  ;;  %v3476_v27 = vpop.xlane.xlu1 %3475 }
0x233b   :  { %v3480_v28 = vmul.f32 0.03125, %v3476_v27  ;;  %v7401_v27 = vld [vmem:[%s8898_s0 + $0xc0] sm:$0xff] }
0x233c   :  { %v3483_v30 = vadd.f32 1e-05, %v3481_v25 }
0x233d   :  { %v3482_v13 = vadd.f32 1e-05, %v3480_v28 }
0x233e   :  { %7317 = vrsqrt.f32 %v3483_v30  ;;  %v7402_v30 = vld [vmem:[%s8898_s0 + $0xc8] sm:$0xff] }
0x233f   :  { %7319 = vrsqrt.f32 %v3482_v13 }
0x2348   :  { %v7318_v18 = vpop.eup %7317 }
0x2349   :  { %v7320_v7 = vpop.eup %7319  ;;  %v3487_v5 = vmul.f32 %v7318_v18, %v3471_v11 }
0x234a   :  { %v3486_v34 = vmul.f32 %v7320_v7, %v3470_v22 }
0x234b   :  { %v3493_v36 = vmul.f32 %v5405_v31, %v3487_v5 }
0x234c   :  { %v3492_v32 = vmul.f32 %v5405_v31, %v3486_v34  ;;  %v7403_v34 = vld [vmem:[%s8898_s0 + $0xd0] sm:$0xff] }
0x234d   :  { %v8441_v43 = vadd.f32 %v5406_v35, %v3493_v36  ;;  %v7404_v36 = vld [vmem:[%s8898_s0 + $0xd8] sm:$0xff] }
0x234e   :  { %v8439_v42 = vadd.f32 %v5406_v35, %v3492_v32 }
0x2350   :  { %6251 = vmatprep.mubr.msk.f32.mxu1 %vm46_vm0, %v8439_v42 }
0x2351   :  { %6252 = vmatmul.mubr.msk.f32.vlgmr.msra.gmra.mrb[42].mxu1 %vm46_vm0, %v8441_v43 }
0x2424   :  { %v6253_v45 = vpop.f32.mrb[42].mxu1 }
0x2425   :  { %v3587_v46 = vadd.f32 %v6253_v45, %v5407_v44  ;;  %v3581_v48 = vpop.f32.mrb[43].mxu1 }
0x2426   :  { %v3582_v49 = vadd.f32 %v5407_v44, %v3581_v48 }
0x2427   :  { %3594 = vrot.lane.b32.xlu0 %v3587_v46, %s7414_s24 }
0x2428   :  { %3592 = vrot.lane.b32.xlu1 %v3582_v49, %s7414_s24  ;;  %6270 = vmatprep.mubr.msk.f32.mxu0 %vm158_vm1, %v3582_v49  ;;  %v8455_v40 = vpack.i.bf16 %v3587_v46, %v3582_v49 }
0x242b   :  { %3600 = vrot.lane.b32.xlu0 %v3582_v49, %s7415_s25 }
0x242c   :  { %3596 = vrot.lane.b32.xlu1 %v3582_v49, %s7413_s23 }
0x242f   :  { %7081 = vrot.lane.b32.xlu0 %v8455_v40, %s7416_s26 }
0x2430   :  { %3598 = vrot.lane.b32.xlu1 %v3587_v46, %s7413_s23 }
0x2434   :  { %3602 = vrot.lane.b32.xlu1 %v3587_v46, %s7415_s25 }
0x2499   :  { %v3595_v41 = vpop.permute.xlu0 %3594 }
0x249a   :  { %v3593_v51 = vpop.permute.xlu1 %3592 }
0x249b   :  { %v8461_v52 = vpack.i.bf16 %v3595_v41, %v3593_v51 }
0x249d   :  { %v3601_v3 = vpop.permute.xlu0 %3600  ;;  %7086 = vrot.lane.b32.xlu1 %v8461_v52, %s7416_s26 }
0x249e   :  { %v3597_v54 = vpop.permute.xlu1 %3596 }
0x24a1   :  { %v7082_v33 = vpop.permute.xlu0 %7081 }
0x24a2   :  { %v7084_v1 = vunpack.i.h.bf16 %v7082_v33  ;;  %v7083_v37 = vunpack.i.l.bf16 %v7082_v33  ;;  %v3599_v55 = vpop.permute.xlu1 %3598 }
0x24a3   :  { %v8465_v47 = vpack.i.bf16 %v3599_v55, %v3597_v54 }
0x24a4   :  { %v6763_v20 = vpack.c.bf16 %v7084_v1, %v7083_v37 }
0x24a5   :  { %7091 = vrot.lane.b32.xlu0 %v8465_v47, %s7416_s26 }
0x24a6   :  { %6765 = vmatprep.subr.msk.bf16.mxu0 %vm7490_vm2, %v6763_v20  ;;  %v3603_v56 = vpop.permute.xlu1 %3602 }
0x24a7   :  { %v8471_v61 = vpack.i.bf16 %v3603_v56, %v3601_v3  ;;  %6768 = vmatpush3.bf16.xpose.msk.msra.mxu0 %vm7490_vm2, %v6763_v20 }
0x24a9   :  { %7096 = vrot.lane.b32.xlu1 %v8471_v61, %s7416_s26 }
0x250f   :  { %v7087_v23 = vpop.permute.xlu1 %7086 }
0x2510   :  { %v7089_v53 = vunpack.i.h.bf16 %v7087_v23  ;;  %v7088_v12 = vunpack.i.l.bf16 %v7087_v23 }
0x2512   :  { %v6769_v57 = vpack.c.bf16 %v7089_v53, %v7088_v12 }
0x2514   :  { %6771 = vmatprep.subr.msk.bf16.mxu0 %vm7490_vm2, %v6769_v57 }
0x2515   :  { %6774 = vmatpush3.bf16.xpose.msk.msra.mxu0 %vm7490_vm2, %v6769_v57 }
0x2517   :  { %v7092_v58 = vpop.permute.xlu0 %7091 }
0x2518   :  { %v7094_v59 = vunpack.i.h.bf16 %v7092_v58  ;;  %v7093_v0 = vunpack.i.l.bf16 %v7092_v58 }
0x251a   :  { %v6775_v63 = vpack.c.bf16 %v7094_v59, %v7093_v0 }
0x251b   :  { %v7097_v62 = vpop.permute.xlu1 %7096 }
0x251c   :  { %v7099_v24 = vunpack.i.h.bf16 %v7097_v62  ;;  %v7098_v6 = vunpack.i.l.bf16 %v7097_v62  ;;  %6777 = vmatprep.subr.msk.bf16.mxu0 %vm7490_vm2, %v6775_v63 }
0x251d   :  { %6780 = vmatpush3.bf16.xpose.msk.msra.mxu0 %vm7490_vm2, %v6775_v63 }
0x251e   :  { %v6781_v8 = vpack.c.bf16 %v7099_v24, %v7098_v6 }
0x2520   :  { %6783 = vmatprep.subr.msk.bf16.mxu0 %vm7490_vm2, %v6781_v8 }
0x2525   :  { %6786 = vmatpush3.bf16.xpose.msk.msra.mxu0 %vm7490_vm2, %v6781_v8 }
0x252c   :  { %6271 = vmatmul.mubr.msk.f32.vlgmr.msra.gmra.mrb[52].mxu0 %vm158_vm1, %v3587_v46 }
0x252d   :  { %6273 = vmatprep.mubr.msk.f32.mxu0 %vm158_vm1, %v3593_v51 }
0x2530   :  { %6274 = vmatmul.mubr.msk.f32.gmra.mrb[54].mxu0 %vm158_vm1, %v3595_v41 }
0x2531   :  { %6276 = vmatprep.mubr.msk.f32.mxu0 %vm158_vm1, %v3597_v54 }
0x2534   :  { %6277 = vmatmul.mubr.msk.f32.gmra.mrb[56].mxu0 %vm158_vm1, %v3599_v55 }
0x2535   :  { %6279 = vmatprep.mubr.msk.f32.mxu0 %vm158_vm1, %v3601_v3 }
0x2538   :  { %6280 = vmatmul.mubr.msk.f32.gmra.mrb[58].mxu0 %vm158_vm1, %v3603_v56 }
0x2539   :  { %6340 = vmatprep.mubr.msk.f32.mxu0 %vm46_vm0, %v8155_v39  ;;  %v7399_v39 = vld [vmem:[%s8898_s0 + $0xb0] sm:$0xff] }
0x25ff   :  { %v6272_v29 = vpop.f32.mrb[52].mxu0 }
0x2600   :  { %v3724_v11 = vadd.f32 %v7397_v10, %v6272_v29  ;;  %v3718_v22 = vpop.f32.mrb[53].mxu0 }
0x2601   :  { %v3719_v50 = vadd.f32 %v7398_v14, %v3718_v22 }
0x2602   :  { %v3760_v15 = vsel %vm296_vm3, %v3724_v11, -inf }
0x2603   :  { %3761 = vmax.xlane.f32.xlu1 %v3760_v15  ;;  %v6275_v38 = vpop.f32.mrb[54].mxu0  ;;  %v3757_v4 = vsel %vm296_vm3, %v3719_v50, -inf }
0x2604   :  { %v3728_v2 = vpop.f32.mrb[55].mxu0  ;;  %3758 = vmax.xlane.f32.xlu0 %v3757_v4  ;;  %v3734_v17 = vadd.f32 %v7400_v9, %v6275_v38 }
0x2605   :  { %v3729_v16 = vadd.f32 %v7399_v39, %v3728_v2 }
0x2606   :  { %v3766_v7 = vsel %vm296_vm3, %v3734_v17, -inf }
0x2607   :  { %v6278_v19 = vpop.f32.mrb[56].mxu0  ;;  %v3763_v21 = vsel %vm296_vm3, %v3729_v16, -inf }
0x2608   :  { %v3738_v25 = vpop.f32.mrb[57].mxu0  ;;  %3764 = vmax.xlane.f32.xlu0 %v3763_v21  ;;  %v3744_v13 = vadd.f32 %v7402_v30, %v6278_v19 }
0x2609   :  { %v3739_v28 = vadd.f32 %v7401_v27, %v3738_v25 }
0x260a   :  { %v3772_v45 = vsel %vm296_vm3, %v3744_v13, -inf }
0x260b   :  { %v6281_v18 = vpop.f32.mrb[58].mxu0  ;;  %v3769_v31 = vsel %vm296_vm3, %v3739_v28, -inf }
0x260c   :  { %v3748_v5 = vpop.f32.mrb[59].mxu0  ;;  %3770 = vmax.xlane.f32.xlu1 %v3769_v31  ;;  %3767 = vmax.xlane.f32.xlu0 %v3766_v7  ;;  %v3754_v32 = vadd.f32 %v7404_v36, %v6281_v18 }
0x260d   :  { %v3749_v35 = vadd.f32 %v7403_v34, %v3748_v5 }
0x260e   :  { %v3778_v46 = vsel %vm296_vm3, %v3754_v32, -inf }
0x260f   :  { %v3775_v44 = vsel %vm296_vm3, %v3749_v35, -inf }
0x2610   :  { %3776 = vmax.xlane.f32.xlu1 %v3775_v44  ;;  %3773 = vmax.xlane.f32.xlu0 %v3772_v45 }
0x2614   :  { %3779 = vmax.xlane.f32.xlu0 %v3778_v46 }
0x2621   :  { %7101 = vrot.lane.b32.xlu1 %v8455_v40, %s7417_s15 }
0x2690   :  { %v3762_v48 = vpop.xlane.xlu1 %3761 }
0x2691   :  { %v3782_v49 = vsub.f32 %v3724_v11, %v3762_v48  ;;  %v3759_v41 = vpop.xlane.xlu0 %3758 }
0x2692   :  { %v3781_v51 = vsub.f32 %v3719_v50, %v3759_v41 }
0x2693   :  { %v3791_v3 = vmul.f32 1.442695, %v3782_v49 }
0x2694   :  { %v3789_v54 = vmul.f32 1.442695, %v3781_v51 }
0x2695   :  { %7321 = vpow2.f32 %v3791_v3  ;;  %v3765_v33 = vpop.xlane.xlu0 %3764 }
0x2696   :  { %7323 = vpow2.f32 %v3789_v54  ;;  %v3783_v1 = vsub.f32 %v3729_v16, %v3765_v33 }
0x2698   :  { %v3793_v37 = vmul.f32 1.442695, %v3783_v1 }
0x2699   :  { %v3771_v55 = vpop.xlane.xlu1 %3770  ;;  %v3768_v20 = vpop.xlane.xlu0 %3767 }
0x269a   :  { %7325 = vpow2.f32 %v3793_v37  ;;  %v3785_v56 = vsub.f32 %v3739_v28, %v3771_v55  ;;  %v3784_v23 = vsub.f32 %v3734_v17, %v3768_v20 }
0x269c   :  { %v3797_v53 = vmul.f32 1.442695, %v3785_v56  ;;  %v3795_v12 = vmul.f32 1.442695, %v3784_v23 }
0x269d   :  { %v3777_v57 = vpop.xlane.xlu1 %3776  ;;  %v3774_v40 = vpop.xlane.xlu0 %3773 }
0x269e   :  { %7327 = vpow2.f32 %v3797_v53  ;;  %v3786_v58 = vsub.f32 %v3744_v13, %v3774_v40  ;;  %v3787_v24 = vsub.f32 %v3749_v35, %v3777_v57 }
0x269f   :  { %v8532_v59 = vpop.eup %7321  ;;  %7329 = vpow2.f32 %v3795_v12 }
0x26a0   :  { %v7324_v0 = vpop.eup %7323  ;;  %v3799_v63 = vmul.f32 1.442695, %v3786_v58  ;;  %v3808_v62 = vsel %vm296_vm3, %v8532_v59, 0.0  ;;  %v3801_v38 = vmul.f32 1.442695, %v3787_v24 }
0x26a1   :  { %v7102_v6 = vpop.permute.xlu1 %7101  ;;  %3809 = vadd.xlane.f32.xlu0 %v3808_v62  ;;  %v3780_v8 = vpop.xlane.xlu0 %3779  ;;  %v3805_v29 = vsel %vm296_vm3, %v7324_v0, 0.0  ;;  %v4037_v62 = vld [vmem:[%s8897_s1 + $0x330] sm:$0xff] }
0x26a2   :  { %v7104_v10 = vunpack.i.h.bf16 %v7102_v6  ;;  %v7103_v11 = vunpack.i.l.bf16 %v7102_v6  ;;  %v3788_v22 = vsub.f32 %v3754_v32, %v3780_v8  ;;  %3806 = vadd.xlane.f32.xlu1 %v3805_v29  ;;  %7331 = vpow2.f32 %v3799_v63  ;;  %v4036_v63 = vld [vmem:[%s8897_s1 + $0x328] sm:$0xff]  ;;  %v4038_v6 = vld [vmem:[%s8897_s1 + $0x338] sm:$0xff]  ;;  %v4039_v8 = vld [vmem:[%s8897_s1 + $0x340] sm:$0xff] }
0x26a3   :  { %v6803_v24 = vpack.c.bf16 %v4037_v62, %v4036_v63  ;;  %v6807_v29 = vpack.c.bf16 %v4039_v8, %v4038_v6 }
0x26a4   :  { %v8537_v14 = vpop.eup %7325  ;;  %v6787_v50 = vpack.c.bf16 %v7104_v10, %v7103_v11  ;;  %v3803_v15 = vmul.f32 1.442695, %v3788_v22 }
0x26a5   :  { %v3811_v4 = vsel %vm296_vm3, %v8537_v14, 0.0 }
0x26a6   :  { %7333 = vpow2.f32 %v3803_v15  ;;  %6788 = vmatprep.subr.bf16.mxu1 %v6787_v50  ;;  %3812 = vadd.xlane.f32.xlu1 %v3811_v4 }
0x26a7   :  { %6790 = vmatpush3.bf16.msra.mxu1 %v6787_v50  ;;  %7335 = vpow2.f32 %v3801_v38 }
0x26a8   :  { %v8541_v2 = vpop.eup %7327 }
0x26a9   :  { %v8543_v39 = vpop.eup %7329  ;;  %v3817_v16 = vsel %vm296_vm3, %v8541_v2, 0.0 }
0x26aa   :  { %3818 = vadd.xlane.f32.xlu1 %v3817_v16  ;;  %v3814_v9 = vsel %vm296_vm3, %v8543_v39, 0.0 }
0x26ab   :  { %3815 = vadd.xlane.f32.xlu0 %v3814_v9 }
0x26ac   :  { %v8549_v17 = vpop.eup %7331 }
0x26ad   :  { %v3820_v19 = vsel %vm296_vm3, %v8549_v17, 0.0 }
0x26af   :  { %3821 = vadd.xlane.f32.xlu0 %v3820_v19 }
0x26b0   :  { %v8553_v21 = vpop.eup %7333 }
0x26b1   :  { %v3826_v25 = vsel %vm296_vm3, %v8553_v21, 0.0  ;;  %v7336_v27 = vpop.eup %7335 }
0x26b2   :  { %v3823_v28 = vsel %vm296_vm3, %v7336_v27, 0.0 }
0x26b3   :  { %3827 = vadd.xlane.f32.xlu0 %v3826_v25 }
0x26b7   :  { %3824 = vadd.xlane.f32.xlu0 %v3823_v28 }
0x26bb   :  { %7111 = vrot.lane.b32.xlu1 %v8465_v47, %s7417_s15 }
0x26bf   :  { %7116 = vrot.lane.b32.xlu1 %v8471_v61, %s7417_s15 }
0x26cd   :  { %7106 = vrot.lane.b32.xlu0 %v8461_v52, %s7417_s15 }
0x272e   :  { %v3810_v13 = vpop.xlane.xlu0 %3809 }
0x272f   :  { %v3807_v30 = vpop.xlane.xlu1 %3806 }
0x2730   :  { %7337 = vrcp.f32 %v3807_v30 }
0x2731   :  { %7339 = vrcp.f32 %v3810_v13 }
0x2733   :  { %v3813_v18 = vpop.xlane.xlu1 %3812 }
0x2734   :  { %7341 = vrcp.f32 %v3813_v18  ;;  %v5434_v18 = vld [vmem:[%s8897_s1 + $0x348] ss:$0 sm:$0xff] }
0x2737   :  { %v3819_v35 = vpop.xlane.xlu1 %3818 }
0x2738   :  { %v3816_v31 = vpop.xlane.xlu0 %3815 }
0x2739   :  { %7343 = vrcp.f32 %v3816_v31 }
0x273a   :  { %v7338_v7 = vpop.eup %7337  ;;  %7345 = vrcp.f32 %v3819_v35 }
0x273b   :  { %v3845_v5 = vmul.f32 %v7338_v7, %v7324_v0  ;;  %v7112_v32 = vpop.permute.xlu1 %7111  ;;  %v7340_v33 = vpop.eup %7339 }
0x273c   :  { %v3822_v34 = vpop.xlane.xlu0 %3821  ;;  %v7114_v45 = vunpack.i.h.bf16 %v7112_v32  ;;  %v7113_v61 = vunpack.i.l.bf16 %v7112_v32  ;;  %v3846_v37 = vmul.f32 %v7340_v33, %v8532_v59 }
0x273d   :  { %6298 = vmatprep.mubr.msk.f32.mxu1 %vm296_vm3, %v3845_v5  ;;  %7347 = vrcp.f32 %v3822_v34 }
0x273e   :  { %v6795_v41 = vpack.c.bf16 %v7114_v45, %v7113_v61  ;;  %v7342_v1 = vpop.eup %7341  ;;  %v4169_v45 = vld [vmem:[%s8897_s1 + $0x368] sm:$0xff] }
0x273f   :  { %v7117_v52 = vpop.permute.xlu1 %7116  ;;  %v3847_v20 = vmul.f32 %v7342_v1, %v8537_v14 }
0x2740   :  { %v3828_v36 = vpop.xlane.xlu0 %3827  ;;  %v7119_v51 = vunpack.i.h.bf16 %v7117_v52  ;;  %v7118_v3 = vunpack.i.l.bf16 %v7117_v52 }
0x2742   :  { %v6799_v54 = vpack.c.bf16 %v7119_v51, %v7118_v3 }
0x2743   :  { %v7344_v55 = vpop.eup %7343 }
0x2744   :  { %v3825_v47 = vpop.xlane.xlu0 %3824  ;;  %v7346_v56 = vpop.eup %7345  ;;  %v3848_v23 = vmul.f32 %v7344_v55, %v8543_v39 }
0x2745   :  { %7349 = vrcp.f32 %v3825_v47  ;;  %v3849_v12 = vmul.f32 %v7346_v56, %v8541_v2  ;;  %v4171_v56 = vld [vmem:[%s8897_s1 + $0x378] sm:$0xff] }
0x2746   :  { %7351 = vrcp.f32 %v3828_v36 }
0x2747   :  { %v7348_v53 = vpop.eup %7347 }
0x2748   :  { %v7107_v44 = vpop.permute.xlu0 %7106  ;;  %v3850_v40 = vmul.f32 %v7348_v53, %v8549_v17 }
0x2749   :  { %v7109_v46 = vunpack.i.h.bf16 %v7107_v44  ;;  %v7108_v48 = vunpack.i.l.bf16 %v7107_v44  ;;  %v4168_v44 = vld [vmem:[%s8897_s1 + $0x360] sm:$0xff] }
0x274a   :  { %v7120_v61 = vpack.i.bf16 %v4169_v45, %v4168_v44  ;;  %v6811_v53 = vpack.c.bf16 %v4169_v45, %v4168_v44 }
0x274b   :  { %v6791_v49 = vpack.c.bf16 %v7109_v46, %v7108_v48 }
0x274d   :  { %6792 = vmatprep.subr.bf16.mxu1 %v6791_v49 }
0x274e   :  { %6794 = vmatpush3.bf16.msra.mxu1 %v6791_v49 }
0x274f   :  { %6796 = vmatprep.subr.bf16.mxu1 %v6795_v41  ;;  %v7350_v57 = vpop.eup %7349 }
0x2750   :  { %v7352_v58 = vpop.eup %7351  ;;  %v3851_v59 = vmul.f32 %v7350_v57, %v7336_v27  ;;  %v5439_v57 = vld [vmem:[%s8897_s1 + $0x380] ss:$0 sm:$0xff] }
0x2751   :  { %v3852_v0 = vmul.f32 %v7352_v58, %v8553_v21 }
0x2752   :  { %6798 = vmatpush3.bf16.msra.mxu1 %v6795_v41 }
0x2753   :  { %6800 = vmatprep.subr.bf16.mxu1 %v6799_v54 }
0x2756   :  { %6802 = vmatpush3.bf16.msra.mxu1 %v6799_v54 }
0x2757   :  { %6804 = vmatprep.subr.bf16.mxu1 %v6803_v24 }
0x2759   :  { %6299 = vmatmul.mubr.msk.f32.vlgmr.msra.gmra.mrb[44].mxu1 %vm296_vm3, %v3846_v37 }
0x275a   :  { %6301 = vmatprep.mubr.msk.f32.mxu1 %vm296_vm3, %v3847_v20  ;;  %6806 = vmatpush3.bf16.msra.mxu1 %v6803_v24  ;;  %v4170_v20 = vld [vmem:[%s8897_s1 + $0x370] sm:$0xff] }
0x275b   :  { %6808 = vmatprep.subr.bf16.mxu1 %v6807_v29 }
0x275d   :  { %6302 = vmatmul.mubr.msk.f32.gmra.mrb[46].mxu1 %vm296_vm3, %v3848_v23  ;;  %v7125_v23 = vpack.i.bf16 %v4171_v56, %v4170_v20 }
0x275e   :  { %6304 = vmatprep.mubr.msk.f32.mxu1 %vm296_vm3, %v3849_v12  ;;  %6810 = vmatpush3.bf16.msra.mxu1 %v6807_v29  ;;  %v6815_v12 = vpack.c.bf16 %v4171_v56, %v4170_v20  ;;  %v7407_v56 = vld [vmem:[%s8898_s0 + $0x70] sm:$0xff] }
0x275f   :  { %6812 = vmatprep.subr.bf16.mxu1 %v6811_v53 }
0x2761   :  { %6305 = vmatmul.mubr.msk.f32.gmra.mrb[48].mxu1 %vm296_vm3, %v3850_v40 }
0x2762   :  { %6307 = vmatprep.mubr.msk.f32.mxu1 %vm296_vm3, %v3851_v59 }
0x2765   :  { %6308 = vmatmul.mubr.msk.f32.gmra.mrb[50].mxu1 %vm296_vm3, %v3852_v0 }
0x282c   :  { %v6300_v10 = vpop.f32.mrb[44].mxu1 }
0x282d   :  { %v3967_v11 = vpop.f32.mrb[45].mxu1 }
0x2830   :  { %v6303_v22 = vpop.f32.mrb[46].mxu1 }
0x2831   :  { %4010 = vrot.lane.b32.xlu1 %v6303_v22, %s7418_s28  ;;  %v3977_v14 = vpop.f32.mrb[47].mxu1  ;;  %v5437_v22 = vld [vmem:[%s8897_s1 + $0x350] ss:$0 sm:$0xff] }
0x2834   :  { %v6306_v50 = vpop.f32.mrb[48].mxu1 }
0x2835   :  { %4008 = vrot.lane.b32.xlu1 %v3977_v14, %s7418_s28  ;;  %v3987_v15 = vpop.f32.mrb[49].mxu1 }
0x2836   :  { %4016 = vrot.lane.b32.xlu0 %v3987_v15, %s7419_s29 }
0x2838   :  { %v6309_v38 = vpop.f32.mrb[50].mxu1 }
0x2839   :  { %4018 = vrot.lane.b32.xlu1 %v6306_v50, %s7419_s29  ;;  %v3997_v4 = vpop.f32.mrb[51].mxu1 }
0x283a   :  { %4024 = vrot.lane.b32.xlu0 %v3997_v4, %s7420_s30 }
0x283d   :  { %4026 = vrot.lane.b32.xlu1 %v6309_v38, %s7420_s30  ;;  %v5438_v38 = vld [vmem:[%s8897_s1 + $0x358] ss:$0 sm:$0xff] }
0x28a3   :  { %v4011_v2 = vpop.permute.xlu1 %4010 }
0x28a4   :  { %v4031_v27 = vsel %vm158_vm1, %v6300_v10, %v4011_v2 }
0x28a7   :  { %v4009_v39 = vpop.permute.xlu1 %4008 }
0x28a8   :  { %v4017_v16 = vpop.permute.xlu0 %4016  ;;  %v4030_v9 = vsel %vm158_vm1, %v3967_v11, %v4009_v39 }
0x28a9   :  { %v4032_v19 = vsel %vm572_vm4, %v4030_v9, %v4017_v16 }
0x28ab   :  { %v4019_v17 = vpop.permute.xlu1 %4018 }
0x28ac   :  { %v4025_v21 = vpop.permute.xlu0 %4024  ;;  %v4033_v28 = vsel %vm572_vm4, %v4031_v27, %v4019_v17 }
0x28ad   :  { %v4034_v25 = vsel %vm575_vm5, %v4032_v19, %v4025_v21 }
0x28ae   :  { %6318 = vmatprep.mubr.msk.f32.mxu1 %vm46_vm0, %v4034_v25 }
0x28af   :  { %v4027_v30 = vpop.permute.xlu1 %4026 }
0x28b0   :  { %v4035_v13 = vsel %vm575_vm5, %v4033_v28, %v4027_v30 }
0x28b1   :  { %6319 = vmatmul.mubr.msk.f32.vlgmr.msra.gmra.mrb[52].mxu1 %vm46_vm0, %v4035_v13 }
0x28b2   :  { %6814 = vmatpush3.bf16.msra.mxu1 %v6811_v53  ;;  %v7408_v53 = vld [vmem:[%s8898_s0 + $0x78] sm:$0xff] }
0x28b3   :  { %6816 = vmatprep.subr.bf16.mxu1 %v6815_v12 }
0x28b6   :  { %6818 = vmatpush3.bf16.msra.mxu1 %v6815_v12 }
0x2984   :  { %v6320_v31 = vpop.f32.mrb[52].mxu1 }
0x2985   :  { %v4123_v7 = vadd.f32 %v6320_v31, %v5434_v18  ;;  %v4117_v5 = vpop.f32.mrb[53].mxu1 }
0x2986   :  { %v4118_v34 = vadd.f32 %v5434_v18, %v4117_v5 }
0x2987   :  { %v4127_v35 = vadd.f32 %v4123_v7, %v8441_v43 }
0x2988   :  { %v4126_v36 = vadd.f32 %v4118_v34, %v8439_v42 }
0x2989   :  { %v4133_v32 = vsel %vm46_vm0, %v4127_v35, 0.0 }
0x298a   :  { %4134 = vadd.xlane.f32.xlu1 %v4133_v32  ;;  %v4130_v47 = vsel %vm46_vm0, %v4126_v36, 0.0 }
0x298b   :  { %4131 = vadd.xlane.f32.xlu0 %v4130_v47 }
0x29a1   :  { %7121 = vrot.lane.b32.xlu0 %v7120_v61, %s7416_s26 }
0x29a5   :  { %4275 = vrot.lane.b32.xlu0 %v5439_v57, %s7416_s26 }
0x2a17   :  { %v4135_v43 = vpop.xlane.xlu1 %4134 }
0x2a18   :  { %v4137_v46 = vmul.f32 0.03125, %v4135_v43  ;;  %v4132_v42 = vpop.xlane.xlu0 %4131 }
0x2a19   :  { %v4136_v48 = vmul.f32 0.03125, %v4132_v42 }
0x2a1a   :  { %v4139_v52 = vsub.f32 %v4127_v35, %v4137_v46 }
0x2a1b   :  { %v4138_v49 = vsub.f32 %v4126_v36, %v4136_v48 }
0x2a1c   :  { %v4141_v41 = vmul.f32 %v4139_v52, %v4139_v52  ;;  %v7122_v51 = vpop.permute.xlu0 %7121 }
0x2a1d   :  { %v7124_v3 = vunpack.i.h.bf16 %v7122_v51  ;;  %v7123_v54 = vunpack.i.l.bf16 %v7122_v51  ;;  %v4140_v1 = vmul.f32 %v4138_v49, %v4138_v49 }
0x2a1e   :  { %v4145_v33 = vsel %vm46_vm0, %v4141_v41, 0.0  ;;  %v7405_v41 = vld [vmem:[%s8898_s0 + $0x68] sm:$0xff] }
0x2a1f   :  { %4146 = vadd.xlane.f32.xlu1 %v4145_v33  ;;  %v6819_v37 = vpack.c.bf16 %v7124_v3, %v7123_v54  ;;  %v4142_v55 = vsel %vm46_vm0, %v4140_v1, 0.0  ;;  %v7406_v54 = vld [vmem:[%s8898_s0 + $0x60] sm:$0xff] }
0x2a21   :  { %6820 = vmatprep.subr.bf16.mxu0 %v6819_v37 }
0x2a22   :  { %6822 = vmatpush3.bf16.msra.mxu0 %v6819_v37 }
0x2a23   :  { %4143 = vadd.xlane.f32.xlu1 %v4142_v55 }
0x2a34   :  { %7126 = vrot.lane.b32.xlu1 %v7125_v23, %s7416_s26 }
0x2aac   :  { %v4147_v40 = vpop.xlane.xlu1 %4146 }
0x2aad   :  { %v4149_v58 = vmul.f32 0.03125, %v4147_v40 }
0x2aaf   :  { %v4151_v59 = vadd.f32 1e-05, %v4149_v58 }
0x2ab0   :  { %v4144_v0 = vpop.xlane.xlu1 %4143 }
0x2ab1   :  { %7353 = vrsqrt.f32 %v4151_v59  ;;  %v4148_v63 = vmul.f32 0.03125, %v4144_v0  ;;  %v7409_v59 = vld [vmem:[%s8898_s0 + $0x80] sm:$0xff] }
0x2ab3   :  { %v4150_v62 = vadd.f32 1e-05, %v4148_v63  ;;  %v7410_v63 = vld [vmem:[%s8898_s0 + $0x88] sm:$0xff] }
0x2ab4   :  { %v7127_v24 = vpop.permute.xlu1 %7126 }
0x2ab5   :  { %7355 = vrsqrt.f32 %v4150_v62  ;;  %v7129_v6 = vunpack.i.h.bf16 %v7127_v24  ;;  %v7128_v8 = vunpack.i.l.bf16 %v7127_v24 }
0x2ab7   :  { %v6823_v29 = vpack.c.bf16 %v7129_v6, %v7128_v8 }
0x2ab9   :  { %6824 = vmatprep.subr.bf16.mxu0 %v6823_v29 }
0x2aba   :  { %6826 = vmatpush3.bf16.msra.mxu0 %v6823_v29 }
0x2abb   :  { %v7354_v10 = vpop.eup %7353 }
0x2abc   :  { %v4155_v11 = vmul.f32 %v7354_v10, %v4139_v52  ;;  %v7411_v10 = vld [vmem:[%s8898_s0 + $0x90] sm:$0xff] }
0x2abd   :  { %6341 = vmatmul.mubr.msk.f32.vlgmr.msra.gmra.mrb[60].mxu0 %vm46_vm0, %v8182_v60  ;;  %v4276_v60 = vpop.permute.xlu0 %4275 }
0x2abe   :  { %v4161_v15 = vmul.f32 %v5437_v22, %v4155_v11 }
0x2abf   :  { %v7356_v14 = vpop.eup %7355 }
0x2ac0   :  { %v4154_v50 = vmul.f32 %v7356_v14, %v4138_v49  ;;  %v8641_v39 = vadd.f32 %v5438_v38, %v4161_v15 }
0x2ac2   :  { %v4160_v4 = vmul.f32 %v5437_v22, %v4154_v50  ;;  %v7412_v22 = vld [vmem:[%s8898_s0 + $0x98] sm:$0xff] }
0x2ac4   :  { %v8639_v2 = vadd.f32 %v5438_v38, %v4160_v4 }
0x2ac6   :  { %6329 = vmatprep.mubr.msk.f32.mxu1 %vm46_vm0, %v8639_v2 }
0x2ac7   :  { %6330 = vmatmul.mubr.msk.f32.vlgmr.msra.gmra.mrb[54].mxu1 %vm46_vm0, %v8641_v39 }
0x2b90   :  { %v6342_v16 = vpop.f32.mrb[60].mxu0 }
0x2b91   :  { %v4350_v9 = vadd.f32 %v6342_v16, %v4276_v60  ;;  %v4344_v17 = vpop.f32.mrb[61].mxu0 }
0x2b92   :  { %v4345_v19 = vadd.f32 %v4344_v17, %v4276_v60 }
0x2b94   :  { %v8647_v21 = vpack.i.bf16 %v4350_v9, %v4345_v19  ;;  %v6827_v25 = vpack.c.bf16 %v4350_v9, %v4345_v19 }
0x2b96   :  { %7141 = vrot.lane.b32.xlu1 %v8647_v21, %s7415_s25  ;;  %7131 = vrot.lane.b32.xlu0 %v8647_v21, %s7414_s24 }
0x2b97   :  { %6829 = vmatprep.subr.msk.bf16.mxu1 %vm7490_vm2, %v6827_v25 }
0x2b98   :  { %6832 = vmatpush3.bf16.xpose.msk.msra.mxu1 %vm7490_vm2, %v6827_v25 }
0x2b9a   :  { %v6331_v27 = vpop.f32.mrb[54].mxu1  ;;  %7136 = vrot.lane.b32.xlu0 %v8647_v21, %s7413_s23 }
0x2b9b   :  { %v4255_v28 = vadd.f32 %v6331_v27, %v5439_v57  ;;  %v4249_v30 = vpop.f32.mrb[55].mxu1 }
0x2b9c   :  { %v4250_v13 = vadd.f32 %v5439_v57, %v4249_v30 }
0x2b9d   :  { %4357 = vrot.lane.b32.xlu1 %v4255_v28, %s7414_s24 }
0x2b9e   :  { %6359 = vmatprep.mubr.msk.f32.mxu1 %vm158_vm1, %v4250_v13  ;;  %4355 = vrot.lane.b32.xlu0 %v4250_v13, %s7414_s24 }
0x2ba1   :  { %4361 = vrot.lane.b32.xlu1 %v4255_v28, %s7413_s23 }
0x2ba2   :  { %4359 = vrot.lane.b32.xlu0 %v4250_v13, %s7413_s23 }
0x2ba5   :  { %4365 = vrot.lane.b32.xlu1 %v4255_v28, %s7415_s25 }
0x2ba6   :  { %4363 = vrot.lane.b32.xlu0 %v4250_v13, %s7415_s25 }
0x2c08   :  { %v8666_v18 = vpop.permute.xlu1 %7141  ;;  %v8668_v31 = vpop.permute.xlu0 %7131 }
0x2c09   :  { %v7144_v7 = vunpack.i.h.bf16 %v8666_v18  ;;  %v7143_v5 = vunpack.i.l.bf16 %v8666_v18  ;;  %v7134_v34 = vunpack.i.h.bf16 %v8668_v31  ;;  %v7133_v35 = vunpack.i.l.bf16 %v8668_v31 }
0x2c0b   :  { %v6833_v36 = vpack.c.bf16 %v7134_v34, %v7133_v35  ;;  %v6845_v61 = vpack.c.bf16 %v7144_v7, %v7143_v5 }
0x2c0c   :  { %v8674_v32 = vpop.permute.xlu0 %7136 }
0x2c0d   :  { %v7139_v47 = vunpack.i.h.bf16 %v8674_v32  ;;  %v7138_v44 = vunpack.i.l.bf16 %v8674_v32  ;;  %6835 = vmatprep.subr.msk.bf16.mxu1 %vm7490_vm2, %v6833_v36 }
0x2c0e   :  { %6838 = vmatpush3.bf16.xpose.msk.msra.mxu1 %vm7490_vm2, %v6833_v36 }
0x2c0f   :  { %v6839_v45 = vpack.c.bf16 %v7139_v47, %v7138_v44  ;;  %v4358_v46 = vpop.permute.xlu1 %4357 }
0x2c10   :  { %v4356_v43 = vpop.permute.xlu0 %4355 }
0x2c11   :  { %6841 = vmatprep.subr.msk.bf16.mxu1 %vm7490_vm2, %v6839_v45 }
0x2c13   :  { %v4362_v48 = vpop.permute.xlu1 %4361 }
0x2c14   :  { %v4360_v42 = vpop.permute.xlu0 %4359 }
0x2c16   :  { %6844 = vmatpush3.bf16.xpose.msk.msra.mxu1 %vm7490_vm2, %v6839_v45 }
0x2c17   :  { %6847 = vmatprep.subr.msk.bf16.mxu1 %vm7490_vm2, %v6845_v61  ;;  %v4366_v49 = vpop.permute.xlu1 %4365 }
0x2c18   :  { %v4364_v52 = vpop.permute.xlu0 %4363 }
0x2c1e   :  { %6850 = vmatpush3.bf16.xpose.msk.msra.mxu1 %vm7490_vm2, %v6845_v61 }
0x2c25   :  { %6360 = vmatmul.mubr.msk.f32.vlgmr.msra.gmra.mrb[56].mxu1 %vm158_vm1, %v4255_v28 }
0x2c26   :  { %6362 = vmatprep.mubr.msk.f32.mxu1 %vm158_vm1, %v4356_v43 }
0x2c29   :  { %6363 = vmatmul.mubr.msk.f32.gmra.mrb[58].mxu1 %vm158_vm1, %v4358_v46 }
0x2c2a   :  { %6365 = vmatprep.mubr.msk.f32.mxu1 %vm158_vm1, %v4360_v42 }
0x2c2d   :  { %6366 = vmatmul.mubr.msk.f32.gmra.mrb[60].mxu1 %vm158_vm1, %v4362_v48 }
0x2c2e   :  { %6368 = vmatprep.mubr.msk.f32.mxu1 %vm158_vm1, %v4364_v52 }
0x2c31   :  { %6369 = vmatmul.mubr.msk.f32.gmra.mrb[62].mxu1 %vm158_vm1, %v4366_v49 }
0x2cf8   :  { %v6361_v26 = vpop.f32.mrb[56].mxu1 }
0x2cf9   :  { %v4485_v51 = vadd.f32 %v7405_v41, %v6361_v26  ;;  %v4479_v3 = vpop.f32.mrb[57].mxu1 }
0x2cfa   :  { %v4480_v33 = vadd.f32 %v7406_v54, %v4479_v3 }
0x2cfb   :  { %v4521_v1 = vsel %vm296_vm3, %v4485_v51, -inf }
0x2cfc   :  { %4522 = vmax.xlane.f32.xlu1 %v4521_v1  ;;  %v6364_v37 = vpop.f32.mrb[58].mxu1  ;;  %v4518_v55 = vsel %vm296_vm3, %v4480_v33, -inf }
0x2cfd   :  { %v4489_v20 = vpop.f32.mrb[59].mxu1  ;;  %4519 = vmax.xlane.f32.xlu0 %v4518_v55  ;;  %v4495_v12 = vadd.f32 %v7408_v53, %v6364_v37 }
0x2cfe   :  { %v4490_v23 = vadd.f32 %v7407_v56, %v4489_v20 }
0x2cff   :  { %v4527_v8 = vsel %vm296_vm3, %v4495_v12, -inf }
0x2d00   :  { %v6367_v57 = vpop.f32.mrb[60].mxu1  ;;  %v4524_v40 = vsel %vm296_vm3, %v4490_v23, -inf }
0x2d01   :  { %v4499_v58 = vpop.f32.mrb[61].mxu1  ;;  %4525 = vmax.xlane.f32.xlu0 %v4524_v40  ;;  %v4505_v62 = vadd.f32 %v7410_v63, %v6367_v57 }
0x2d02   :  { %v4500_v0 = vadd.f32 %v7409_v59, %v4499_v58 }
0x2d03   :  { %v4533_v15 = vsel %vm296_vm3, %v4505_v62, -inf }
0x2d04   :  { %v6370_v24 = vpop.f32.mrb[62].mxu1  ;;  %v4530_v6 = vsel %vm296_vm3, %v4500_v0, -inf }
0x2d05   :  { %v4509_v29 = vpop.f32.mrb[63].mxu1  ;;  %4531 = vmax.xlane.f32.xlu1 %v4530_v6  ;;  %4528 = vmax.xlane.f32.xlu0 %v4527_v8  ;;  %v4515_v14 = vadd.f32 %v7412_v22, %v6370_v24 }
0x2d06   :  { %v4510_v11 = vadd.f32 %v7411_v10, %v4509_v29 }
0x2d07   :  { %v4539_v38 = vsel %vm296_vm3, %v4515_v14, -inf }
0x2d08   :  { %v4536_v50 = vsel %vm296_vm3, %v4510_v11, -inf }
0x2d09   :  { %4537 = vmax.xlane.f32.xlu1 %v4536_v50  ;;  %4534 = vmax.xlane.f32.xlu0 %v4533_v15 }
0x2d0d   :  { %4540 = vmax.xlane.f32.xlu0 %v4539_v38 }
0x2d1a   :  { %7146 = vrot.lane.b32.xlu1 %v8647_v21, %s7416_s26 }
0x2d89   :  { %v4523_v4 = vpop.xlane.xlu1 %4522 }
0x2d8a   :  { %v4543_v60 = vsub.f32 %v4485_v51, %v4523_v4  ;;  %v4520_v16 = vpop.xlane.xlu0 %4519 }
0x2d8b   :  { %v4542_v9 = vsub.f32 %v4480_v33, %v4520_v16 }
0x2d8c   :  { %v4552_v17 = vmul.f32 1.442695, %v4543_v60 }
0x2d8d   :  { %v4550_v19 = vmul.f32 1.442695, %v4542_v9 }
0x2d8e   :  { %7357 = vpow2.f32 %v4552_v17  ;;  %v4526_v25 = vpop.xlane.xlu0 %4525 }
0x2d8f   :  { %7359 = vpow2.f32 %v4550_v19  ;;  %v4544_v27 = vsub.f32 %v4490_v23, %v4526_v25 }
0x2d91   :  { %v4554_v28 = vmul.f32 1.442695, %v4544_v27 }
0x2d92   :  { %v4532_v30 = vpop.xlane.xlu1 %4531  ;;  %v4529_v13 = vpop.xlane.xlu0 %4528 }
0x2d93   :  { %7361 = vpow2.f32 %v4554_v28  ;;  %v4546_v7 = vsub.f32 %v4500_v0, %v4532_v30  ;;  %v4545_v5 = vsub.f32 %v4495_v12, %v4529_v13 }
0x2d95   :  { %v4558_v34 = vmul.f32 1.442695, %v4546_v7  ;;  %v4556_v35 = vmul.f32 1.442695, %v4545_v5 }
0x2d96   :  { %v4538_v36 = vpop.xlane.xlu1 %4537  ;;  %v4535_v21 = vpop.xlane.xlu0 %4534 }
0x2d97   :  { %7363 = vpow2.f32 %v4558_v34  ;;  %v4547_v47 = vsub.f32 %v4505_v62, %v4535_v21  ;;  %v4548_v46 = vsub.f32 %v4510_v11, %v4538_v36 }
0x2d98   :  { %v8731_v44 = vpop.eup %7357  ;;  %7365 = vpow2.f32 %v4556_v35 }
0x2d99   :  { %v7360_v45 = vpop.eup %7359  ;;  %v4560_v61 = vmul.f32 1.442695, %v4547_v47  ;;  %v4569_v43 = vsel %vm296_vm3, %v8731_v44, 0.0  ;;  %v4562_v33 = vmul.f32 1.442695, %v4548_v46  ;;  %v4800_v46 = vld [vmem:[%s8897_s1 + $0x3a0] sm:$0xff] }
0x2d9a   :  { %v7147_v42 = vpop.permute.xlu1 %7146  ;;  %4570 = vadd.xlane.f32.xlu0 %v4569_v43  ;;  %v4541_v48 = vpop.xlane.xlu0 %4540  ;;  %v4566_v52 = vsel %vm296_vm3, %v7360_v45, 0.0  ;;  %v4799_v43 = vld [vmem:[%s8897_s1 + $0x398] sm:$0xff] }
0x2d9b   :  { %v7149_v49 = vunpack.i.h.bf16 %v7147_v42  ;;  %v7148_v26 = vunpack.i.l.bf16 %v7147_v42  ;;  %v4549_v41 = vsub.f32 %v4515_v14, %v4541_v48  ;;  %4567 = vadd.xlane.f32.xlu1 %v4566_v52  ;;  %7367 = vpow2.f32 %v4560_v61 }
0x2d9c   :  { %v6871_v42 = vpack.c.bf16 %v4800_v46, %v4799_v43  ;;  %v5471_v43 = vld [vmem:[%s8897_s1 + $0x3b0] ss:$0 sm:$0xff] }
0x2d9d   :  { %v8736_v51 = vpop.eup %7361  ;;  %v6851_v3 = vpack.c.bf16 %v7149_v49, %v7148_v26  ;;  %v4564_v54 = vmul.f32 1.442695, %v4549_v41 }
0x2d9e   :  { %v4572_v1 = vsel %vm296_vm3, %v8736_v51, 0.0 }
0x2d9f   :  { %7369 = vpow2.f32 %v4564_v54  ;;  %6852 = vmatprep.subr.bf16.mxu0 %v6851_v3  ;;  %4573 = vadd.xlane.f32.xlu1 %v4572_v1 }
0x2da0   :  { %6854 = vmatpush3.bf16.msra.mxu0 %v6851_v3  ;;  %7371 = vpow2.f32 %v4562_v33 }
0x2da1   :  { %v8740_v37 = vpop.eup %7363 }
0x2da2   :  { %v8742_v55 = vpop.eup %7365  ;;  %v4578_v20 = vsel %vm296_vm3, %v8740_v37, 0.0 }
0x2da3   :  { %4579 = vadd.xlane.f32.xlu1 %v4578_v20  ;;  %v4575_v56 = vsel %vm296_vm3, %v8742_v55, 0.0 }
0x2da4   :  { %4576 = vadd.xlane.f32.xlu0 %v4575_v56 }
0x2da5   :  { %v8748_v23 = vpop.eup %7367 }
0x2da6   :  { %v4581_v53 = vsel %vm296_vm3, %v8748_v23, 0.0 }
0x2da8   :  { %4582 = vadd.xlane.f32.xlu0 %v4581_v53 }
0x2da9   :  { %v8752_v12 = vpop.eup %7369 }
0x2daa   :  { %v4587_v57 = vsel %vm296_vm3, %v8752_v12, 0.0  ;;  %v7372_v40 = vpop.eup %7371 }
0x2dab   :  { %v4584_v58 = vsel %vm296_vm3, %v7372_v40, 0.0 }
0x2dac   :  { %4588 = vadd.xlane.f32.xlu0 %v4587_v57 }
0x2db0   :  { %4585 = vadd.xlane.f32.xlu0 %v4584_v58 }
0x2db4   :  { %7156 = vrot.lane.b32.xlu1 %v8674_v32, %s7416_s26 }
0x2db8   :  { %7161 = vrot.lane.b32.xlu1 %v8666_v18, %s7416_s26 }
0x2dc6   :  { %7151 = vrot.lane.b32.xlu0 %v8668_v31, %s7416_s26 }
0x2e27   :  { %v4571_v0 = vpop.xlane.xlu0 %4570 }
0x2e28   :  { %v4568_v59 = vpop.xlane.xlu1 %4567 }
0x2e29   :  { %7373 = vrcp.f32 %v4568_v59  ;;  %v5468_v59 = vld [vmem:[%s8897_s1 + $0x3a8] ss:$0 sm:$0xff] }
0x2e2a   :  { %7375 = vrcp.f32 %v4571_v0 }
0x2e2c   :  { %v4574_v63 = vpop.xlane.xlu1 %4573 }
0x2e2d   :  { %7377 = vrcp.f32 %v4574_v63 }
0x2e30   :  { %v4580_v29 = vpop.xlane.xlu1 %4579 }
0x2e31   :  { %v4577_v62 = vpop.xlane.xlu0 %4576 }
0x2e32   :  { %7379 = vrcp.f32 %v4577_v62 }
0x2e33   :  { %v7374_v24 = vpop.eup %7373  ;;  %7381 = vrcp.f32 %v4580_v29 }
0x2e34   :  { %v4606_v6 = vmul.f32 %v7374_v24, %v7360_v45  ;;  %v7157_v11 = vpop.permute.xlu1 %7156  ;;  %v7376_v17 = vpop.eup %7375  ;;  %v4798_v45 = vld [vmem:[%s8897_s1 + $0x390] sm:$0xff] }
0x2e35   :  { %v4583_v8 = vpop.xlane.xlu0 %4582  ;;  %v7159_v14 = vunpack.i.h.bf16 %v7157_v11  ;;  %v7158_v18 = vunpack.i.l.bf16 %v7157_v11  ;;  %v4607_v25 = vmul.f32 %v7376_v17, %v8731_v44  ;;  %v4797_v44 = vld [vmem:[%s8897_s1 + $0x388] sm:$0xff] }
0x2e36   :  { %6387 = vmatprep.mubr.msk.f32.mxu0 %vm296_vm3, %v4606_v6  ;;  %7383 = vrcp.f32 %v4583_v8  ;;  %v6867_v61 = vpack.c.bf16 %v4798_v45, %v4797_v44 }
0x2e37   :  { %v6859_v4 = vpack.c.bf16 %v7159_v14, %v7158_v18  ;;  %v7378_v19 = vpop.eup %7377 }
0x2e38   :  { %v7162_v31 = vpop.permute.xlu1 %7161  ;;  %v4608_v28 = vmul.f32 %v7378_v19, %v8736_v51  ;;  %v5021_v19 = vld [vmem:[%s8897_s1 + $0x3e8] sm:$0xff] }
0x2e39   :  { %v4589_v10 = vpop.xlane.xlu0 %4588  ;;  %v7164_v60 = vunpack.i.h.bf16 %v7162_v31  ;;  %v7163_v16 = vunpack.i.l.bf16 %v7162_v31 }
0x2e3b   :  { %v6863_v9 = vpack.c.bf16 %v7164_v60, %v7163_v16  ;;  %v4931_v16 = vld [vmem:[%s8897_s1 + $0x3d0] sm:$0xff] }
0x2e3c   :  { %v7380_v27 = vpop.eup %7379 }
0x2e3d   :  { %v4586_v32 = vpop.xlane.xlu0 %4585  ;;  %v7382_v30 = vpop.eup %7381  ;;  %v4609_v13 = vmul.f32 %v7380_v27, %v8742_v55  ;;  %v5023_v27 = vld [vmem:[%s8897_s1 + $0x3f8] sm:$0xff] }
0x2e3e   :  { %7385 = vrcp.f32 %v4586_v32  ;;  %v4610_v5 = vmul.f32 %v7382_v30, %v8740_v37  ;;  %v5024_v30 = vld [vmem:[%s8897_s1 + $0x400] sm:$0xff] }
0x2e3f   :  { %7387 = vrcp.f32 %v4589_v10 }
0x2e40   :  { %v7384_v7 = vpop.eup %7383 }
0x2e41   :  { %v7152_v22 = vpop.permute.xlu0 %7151  ;;  %v4611_v35 = vmul.f32 %v7384_v7, %v8748_v23  ;;  %v5025_v7 = vld [vmem:[%s8897_s1 + $0x408] sm:$0xff] }
0x2e42   :  { %v7154_v50 = vunpack.i.h.bf16 %v7152_v22  ;;  %v7153_v15 = vunpack.i.l.bf16 %v7152_v22 }
0x2e44   :  { %v6855_v38 = vpack.c.bf16 %v7154_v50, %v7153_v15 }
0x2e46   :  { %6856 = vmatprep.subr.bf16.mxu0 %v6855_v38 }
0x2e47   :  { %6858 = vmatpush3.bf16.msra.mxu0 %v6855_v38 }
0x2e48   :  { %6860 = vmatprep.subr.bf16.mxu0 %v6859_v4  ;;  %v7386_v34 = vpop.eup %7385 }
0x2e49   :  { %v7388_v36 = vpop.eup %7387  ;;  %v4612_v21 = vmul.f32 %v7386_v34, %v7372_v40 }
0x2e4a   :  { %v4613_v47 = vmul.f32 %v7388_v36, %v8752_v12 }
0x2e4b   :  { %6862 = vmatpush3.bf16.msra.mxu0 %v6859_v4  ;;  %v4930_v4 = vld [vmem:[%s8897_s1 + $0x3c8] sm:$0xff] }
0x2e4c   :  { %6864 = vmatprep.subr.bf16.mxu0 %v6863_v9 }
0x2e4f   :  { %6866 = vmatpush3.bf16.msra.mxu0 %v6863_v9  ;;  %v4932_v9 = vld [vmem:[%s8897_s1 + $0x3d8] sm:$0xff] }
0x2e50   :  { %6868 = vmatprep.subr.bf16.mxu0 %v6867_v61  ;;  %v6879_v17 = vpack.c.bf16 %v4932_v9, %v4931_v16 }
0x2e52   :  { %6388 = vmatmul.mubr.msk.f32.vlgmr.msra.gmra.mrb[62].mxu0 %vm296_vm3, %v4607_v25  ;;  %v5022_v25 = vld [vmem:[%s8897_s1 + $0x3f0] sm:$0xff] }
0x2e53   :  { %6390 = vmatprep.mubr.msk.f32.mxu0 %vm296_vm3, %v4608_v28  ;;  %6870 = vmatpush3.bf16.msra.mxu0 %v6867_v61  ;;  %v6883_v28 = vpack.c.bf16 %v5022_v25, %v5021_v19 }
0x2e54   :  { %6872 = vmatprep.subr.bf16.mxu0 %v6871_v42 }
0x2e55   :  { %6884 = vmatprep.subr.bf16.mxu1 %v6883_v28 }
0x2e56   :  { %6391 = vmatmul.mubr.msk.f32.gmra.mrb[64].mxu0 %vm296_vm3, %v4609_v13  ;;  %v6887_v13 = vpack.c.bf16 %v5024_v30, %v5023_v27  ;;  %6886 = vmatpush3.bf16.msra.mxu1 %v6883_v28  ;;  %v5479_v28 = vld [vmem:[%s8897_s1 + $0x430] ss:$0 sm:$0xff] }
0x2e57   :  { %6393 = vmatprep.mubr.msk.f32.mxu0 %vm296_vm3, %v4610_v5  ;;  %6874 = vmatpush3.bf16.msra.mxu0 %v6871_v42  ;;  %v5026_v5 = vld [vmem:[%s8897_s1 + $0x410] sm:$0xff]  ;;  %v5472_v42 = vld [vmem:[%s8897_s1 + $0x3b8] ss:$0 sm:$0xff] }
0x2e58   :  { %6888 = vmatprep.subr.bf16.mxu1 %v6887_v13  ;;  %v6891_v34 = vpack.c.bf16 %v5026_v5, %v5025_v7  ;;  %v5480_v5 = vld [vmem:[%s8897_s1 + $0x438] ss:$0 sm:$0xff] }
0x2e5a   :  { %6394 = vmatmul.mubr.msk.f32.gmra.mrb[66].mxu0 %vm296_vm3, %v4611_v35  ;;  %6890 = vmatpush3.bf16.msra.mxu1 %v6887_v13 }
0x2e5b   :  { %6396 = vmatprep.mubr.msk.f32.mxu0 %vm296_vm3, %v4612_v21  ;;  %6892 = vmatprep.subr.bf16.mxu1 %v6891_v34 }
0x2e5e   :  { %6397 = vmatmul.mubr.msk.f32.gmra.mrb[68].mxu0 %vm296_vm3, %v4613_v47  ;;  %6894 = vmatpush3.bf16.msra.mxu1 %v6891_v34 }
0x2f25   :  { %v6389_v48 = vpop.f32.mrb[62].mxu0 }
0x2f26   :  { %v4728_v52 = vpop.f32.mrb[63].mxu0 }
0x2f29   :  { %v6392_v49 = vpop.f32.mrb[64].mxu0 }
0x2f2a   :  { %4771 = vrot.lane.b32.xlu1 %v6392_v49, %s7418_s28  ;;  %v4738_v26 = vpop.f32.mrb[65].mxu0 }
0x2f2d   :  { %v6395_v41 = vpop.f32.mrb[66].mxu0 }
0x2f2e   :  { %4769 = vrot.lane.b32.xlu1 %v4738_v26, %s7418_s28  ;;  %v4748_v51 = vpop.f32.mrb[67].mxu0 }
0x2f2f   :  { %4777 = vrot.lane.b32.xlu0 %v4748_v51, %s7419_s29 }
0x2f31   :  { %v6398_v3 = vpop.f32.mrb[68].mxu0 }
0x2f32   :  { %4779 = vrot.lane.b32.xlu1 %v6395_v41, %s7419_s29  ;;  %v4758_v54 = vpop.f32.mrb[69].mxu0 }
0x2f33   :  { %4785 = vrot.lane.b32.xlu0 %v4758_v54, %s7420_s30  ;;  %v5028_v54 = vld [vmem:[%s8897_s1 + $0x420] sm:$0xff] }
0x2f36   :  { %4787 = vrot.lane.b32.xlu1 %v6398_v3, %s7420_s30  ;;  %v5027_v3 = vld [vmem:[%s8897_s1 + $0x418] sm:$0xff] }
0x2f9c   :  { %v4772_v33 = vpop.permute.xlu1 %4771 }
0x2f9d   :  { %v4792_v12 = vsel %vm158_vm1, %v6389_v48, %v4772_v33  ;;  %v6895_v33 = vpack.c.bf16 %v5028_v54, %v5027_v3 }
0x2f9f   :  { %6896 = vmatprep.subr.bf16.mxu1 %v6895_v33 }
0x2fa0   :  { %v4770_v1 = vpop.permute.xlu1 %4769  ;;  %6898 = vmatpush3.bf16.msra.mxu1 %v6895_v33 }
0x2fa1   :  { %v4778_v37 = vpop.permute.xlu0 %4777  ;;  %v4791_v55 = vsel %vm158_vm1, %v4728_v52, %v4770_v1  ;;  %v5473_v1 = vld [vmem:[%s8897_s1 + $0x3e0] ss:$0 sm:$0xff] }
0x2fa2   :  { %v4793_v56 = vsel %vm572_vm4, %v4791_v55, %v4778_v37 }
0x2fa4   :  { %v4780_v20 = vpop.permute.xlu1 %4779 }
0x2fa5   :  { %v4786_v23 = vpop.permute.xlu0 %4785  ;;  %v4794_v57 = vsel %vm572_vm4, %v4792_v12, %v4780_v20  ;;  %v5476_v12 = vld [vmem:[%s8897_s1 + $0x428] ss:$0 sm:$0xff] }
0x2fa6   :  { %v4795_v53 = vsel %vm575_vm5, %v4793_v56, %v4786_v23 }
0x2fa7   :  { %6407 = vmatprep.mubr.msk.f32.mxu0 %vm46_vm0, %v4795_v53 }
0x2fa8   :  { %v4788_v40 = vpop.permute.xlu1 %4787 }
0x2fa9   :  { %v4796_v58 = vsel %vm575_vm5, %v4794_v57, %v4788_v40 }
0x2faa   :  { %6408 = vmatmul.mubr.msk.f32.vlgmr.msra.gmra.mrb[70].mxu0 %vm46_vm0, %v4796_v58 }
0x307d   :  { %v6409_v0 = vpop.f32.mrb[70].mxu0 }
0x307e   :  { %v4884_v63 = vadd.f32 %v6409_v0, %v5468_v59  ;;  %v4878_v62 = vpop.f32.mrb[71].mxu0 }
0x307f   :  { %v4879_v24 = vadd.f32 %v5468_v59, %v4878_v62 }
0x3080   :  { %v4888_v6 = vadd.f32 %v4884_v63, %v8641_v39 }
0x3081   :  { %v4887_v8 = vadd.f32 %v4879_v24, %v8639_v2  ;;  %v4929_v2 = vld [vmem:[%s8897_s1 + $0x3c0] sm:$0xff] }
0x3082   :  { %v4894_v29 = vsel %vm46_vm0, %v4888_v6, 0.0  ;;  %v6875_v60 = vpack.c.bf16 %v4930_v4, %v4929_v2  ;;  %v5160_v2 = vld [vmem:[%s8897_s1 + $0x458] sm:$0xff] }
0x3083   :  { %4895 = vadd.xlane.f32.xlu1 %v4894_v29  ;;  %v4891_v10 = vsel %vm46_vm0, %v4887_v8, 0.0 }
0x3084   :  { %4892 = vadd.xlane.f32.xlu0 %v4891_v10  ;;  %6876 = vmatprep.subr.bf16.mxu0 %v6875_v60 }
0x3085   :  { %6878 = vmatpush3.bf16.msra.mxu0 %v6875_v60 }
0x3086   :  { %6880 = vmatprep.subr.bf16.mxu0 %v6879_v17 }
0x3089   :  { %6882 = vmatpush3.bf16.msra.mxu0 %v6879_v17 }
0x3110   :  { %v4896_v11 = vpop.xlane.xlu1 %4895 }
0x3111   :  { %v4898_v32 = vmul.f32 0.03125, %v4896_v11  ;;  %v4893_v22 = vpop.xlane.xlu0 %4892 }
0x3112   :  { %v4897_v14 = vmul.f32 0.03125, %v4893_v22 }
0x3113   :  { %v4900_v18 = vsub.f32 %v4888_v6, %v4898_v32 }
0x3114   :  { %v4899_v50 = vsub.f32 %v4887_v8, %v4897_v14 }
0x3115   :  { %v4902_v38 = vmul.f32 %v4900_v18, %v4900_v18 }
0x3116   :  { %v4901_v15 = vmul.f32 %v4899_v50, %v4899_v50 }
0x3117   :  { %v4906_v39 = vsel %vm46_vm0, %v4902_v38, 0.0 }
0x3118   :  { %v4903_v31 = vsel %vm46_vm0, %v4901_v15, 0.0  ;;  %v5157_v15 = vld [vmem:[%s8897_s1 + $0x440] sm:$0xff] }
0x3119   :  { %4904 = vadd.xlane.f32.xlu0 %v4903_v31  ;;  %v5158_v31 = vld [vmem:[%s8897_s1 + $0x448] sm:$0xff] }
0x311a   :  { %v6899_v38 = vpack.c.bf16 %v5158_v31, %v5157_v15 }
0x311c   :  { %6900 = vmatprep.subr.bf16.mxu0 %v6899_v38 }
0x311d   :  { %4907 = vadd.xlane.f32.xlu0 %v4906_v39  ;;  %v5159_v39 = vld [vmem:[%s8897_s1 + $0x450] sm:$0xff] }
0x311e   :  { %v6903_v4 = vpack.c.bf16 %v5160_v2, %v5159_v39 }
0x31a6   :  { %v4905_v35 = vpop.xlane.xlu0 %4904 }
0x31a7   :  { %v4909_v36 = vmul.f32 0.03125, %v4905_v35 }
0x31a9   :  { %v4911_v21 = vadd.f32 1e-05, %v4909_v36 }
0x31aa   :  { %v4908_v47 = vpop.xlane.xlu0 %4907 }
0x31ab   :  { %7389 = vrsqrt.f32 %v4911_v21  ;;  %v4910_v44 = vmul.f32 0.03125, %v4908_v47  ;;  %v5481_v47 = vld [vmem:[%s8897_s1 + $0x460] ss:$0 sm:$0xff] }
0x31ad   :  { %v4912_v45 = vadd.f32 1e-05, %v4910_v44 }
0x31af   :  { %7391 = vrsqrt.f32 %v4912_v45 }
0x31b5   :  { %v7390_v61 = vpop.eup %7389 }
0x31b6   :  { %v4915_v46 = vmul.f32 %v7390_v61, %v4899_v50 }
0x31b8   :  { %v4921_v48 = vmul.f32 %v5471_v43, %v4915_v46 }
0x31b9   :  { %v7392_v52 = vpop.eup %7391 }
0x31ba   :  { %v4916_v49 = vmul.f32 %v7392_v52, %v4900_v18  ;;  %v4927_v26 = vadd.f32 %v5472_v42, %v4921_v48 }
0x31bc   :  { %v4922_v41 = vmul.f32 %v5471_v43, %v4916_v49  ;;  %6418 = vmatprep.mubr.msk.f32.mxu0 %vm46_vm0, %v4927_v26 }
0x31be   :  { %v4928_v51 = vadd.f32 %v5472_v42, %v4922_v41 }
0x31c0   :  { %6419 = vmatmul.mubr.msk.f32.vlgmr.msra.gmra.mrb[72].mxu0 %vm46_vm0, %v4928_v51 }
0x31c1   :  { %6902 = vmatpush3.bf16.msra.mxu0 %v6899_v38 }
0x31c2   :  { %6904 = vmatprep.subr.bf16.mxu0 %v6903_v4 }
0x31c5   :  { %6906 = vmatpush3.bf16.msra.mxu0 %v6903_v4 }
0x3293   :  { %v6420_v37 = vpop.f32.mrb[72].mxu0 }
0x3294   :  { %v5016_v55 = vadd.f32 %v6420_v37, %v5473_v1  ;;  %v5010_v20 = vpop.f32.mrb[73].mxu0 }
0x3295   :  { %v5011_v56 = vadd.f32 %v5473_v1, %v5010_v20 }
0x3296   :  { %v5020_v53 = vmax.f32 %v5016_v55, 0.0 }
0x3297   :  { %v5019_v23 = vmax.f32 %v5011_v56, 0.0 }
0x3299   :  { %6437 = vmatprep.mubr.msk.f32.mxu1 %vm296_vm3, %v5019_v23 }
0x329a   :  { %6438 = vmatmul.mubr.msk.f32.vlgmr.msra.gmra.mrb[64].mxu1 %vm296_vm3, %v5020_v53 }
0x336d   :  { %v6439_v57 = vpop.f32.mrb[64].mxu1 }
0x336e   :  { %v5112_v40 = vadd.f32 %v6439_v57, %v5476_v12  ;;  %v5106_v58 = vpop.f32.mrb[65].mxu1 }
0x336f   :  { %v5107_v59 = vadd.f32 %v5476_v12, %v5106_v58 }
0x3370   :  { %v5116_v0 = vadd.f32 %v5112_v40, %v4928_v51 }
0x3371   :  { %v5115_v63 = vadd.f32 %v5107_v59, %v4927_v26 }
0x3372   :  { %v5122_v62 = vsel %vm46_vm0, %v5116_v0, 0.0 }
0x3373   :  { %5123 = vadd.xlane.f32.xlu0 %v5122_v62  ;;  %v5119_v24 = vsel %vm46_vm0, %v5115_v63, 0.0 }
0x3374   :  { %5120 = vadd.xlane.f32.xlu1 %v5119_v24 }
0x3400   :  { %v5124_v6 = vpop.xlane.xlu0 %5123 }
0x3401   :  { %v5126_v8 = vmul.f32 0.03125, %v5124_v6  ;;  %v5121_v29 = vpop.xlane.xlu1 %5120 }
0x3402   :  { %v5125_v10 = vmul.f32 0.03125, %v5121_v29 }
0x3403   :  { %v5128_v11 = vsub.f32 %v5116_v0, %v5126_v8 }
0x3404   :  { %v5127_v32 = vsub.f32 %v5115_v63, %v5125_v10 }
0x3405   :  { %v5130_v22 = vmul.f32 %v5128_v11, %v5128_v11 }
0x3406   :  { %v5129_v14 = vmul.f32 %v5127_v32, %v5127_v32 }
0x3407   :  { %v5134_v18 = vsel %vm46_vm0, %v5130_v22, 0.0 }
0x3408   :  { %5135 = vadd.xlane.f32.xlu0 %v5134_v18  ;;  %v5131_v50 = vsel %vm46_vm0, %v5129_v14, 0.0 }
0x3409   :  { %5132 = vadd.xlane.f32.xlu1 %v5131_v50 }
0x3495   :  { %v5136_v60 = vpop.xlane.xlu0 %5135 }
0x3496   :  { %v5138_v16 = vmul.f32 0.03125, %v5136_v60  ;;  %v5133_v9 = vpop.xlane.xlu1 %5132 }
0x3497   :  { %v5137_v17 = vmul.f32 0.03125, %v5133_v9 }
0x3498   :  { %v5140_v19 = vadd.f32 1e-05, %v5138_v16 }
0x3499   :  { %v5139_v25 = vadd.f32 1e-05, %v5137_v17 }
0x349a   :  { %7393 = vrsqrt.f32 %v5140_v19 }
0x349b   :  { %7395 = vrsqrt.f32 %v5139_v25 }
0x34a4   :  { %v7394_v27 = vpop.eup %7393 }
0x34a5   :  { %v7396_v30 = vpop.eup %7395  ;;  %v5144_v13 = vmul.f32 %v7394_v27, %v5128_v11 }
0x34a6   :  { %v5143_v7 = vmul.f32 %v7396_v30, %v5127_v32 }
0x34a7   :  { %v5150_v34 = vmul.f32 %v5479_v28, %v5144_v13 }
0x34a8   :  { %v5149_v35 = vmul.f32 %v5479_v28, %v5143_v7 }
0x34a9   :  { %v5156_v21 = vadd.f32 %v5480_v5, %v5150_v34 }
0x34aa   :  { %v5155_v36 = vadd.f32 %v5480_v5, %v5149_v35 }
0x34ac   :  { %6448 = vmatprep.mubr.msk.f32.mxu0 %vm46_vm0, %v5155_v36 }
0x34ad   :  { %6449 = vmatmul.mubr.msk.f32.vlgmr.msra.gmra.mrb[74].mxu0 %vm46_vm0, %v5156_v21 }
0x3580   :  { %v6450_v44 = vpop.f32.mrb[74].mxu0 }
0x3581   :  { %v5244_v45 = vadd.f32 %v6450_v44, %v5481_v47  ;;  %v5238_v61 = vpop.f32.mrb[75].mxu0 }
0x3582   :  { %v5239_v43 = vadd.f32 %v5481_v47, %v5238_v61 }
0x3583   :  { %5248 = vst [vmem:[%s8899_s2 + $0x8] sm:$0xff] %v5244_v45 }
0x3584   :  { %5247 = vst [vmem:[%s8899_s2] sm:$0xff] %v5239_v43 }

</bundles_post_ra>
